<compile_context>
chip_gen: v6e
topology: v6e:2x2x1
jax: 0.10.0
libtpu: 0.0.40
codegen_flags: <defaults>
</compile_context>

<pallas_src>
import jax
import jax.numpy as jnp
from jax.experimental import pallas as pl
from jax.experimental.pallas import tpu as pltpu


# ---------------------------------------------------------------------------
# VMEM budget / tile selection helpers
# ---------------------------------------------------------------------------
def _vmem_limit():
    """Scoped VMEM limit: half of physical (v5e/v6e -> 64 MiB, v7x -> 32 MiB),
    conservative 32 MiB fallback if the query is unavailable."""
    try:
        cap = int(pltpu.get_tpu_info().vmem_capacity_bytes)
        return int(min(max(cap // 2, 32 * 1024 * 1024), 96 * 1024 * 1024))
    except Exception:
        return 32 * 1024 * 1024


def _pick_s_tile(S, cap):
    """Largest valid npoint tile: the full axis when S <= cap, else the largest
    multiple of 128 <= cap that divides S (TPU tiling wants 128-multiples or the
    full dim on the lane axis)."""
    if S <= cap:
        return S
    t = (cap // 128) * 128
    while t >= 128:
        if S % t == 0:
            return t
        t -= 128
    # TODO(synk): pad npoint up to a multiple of 128 and mask instead of falling back
    # to a full-axis block for pathological npoint values (e.g. 1000).
    return S


def _dist_s_tile(S, N, limit):
    # ~6 live (N, TS) f32/i32 intermediates in the selection; keep them < limit/2.
    cap = max(128, (limit // 2) // (6 * 4 * max(N, 1)))
    return _pick_s_tile(S, min(cap, 512))


def _mlp_s_tile(S, C_pad, ns, limit):
    # double-buffered bf16 grouped block (2 * C_pad * ns * TS * 2 B) < ~limit/3.
    cap = max(128, limit // (12 * C_pad * ns))
    return _pick_s_tile(S, min(cap, 512))


def _cumsum_rows(x):
    """Inclusive cumulative sum along axis 0 via log-step shift-and-add (avoids
    relying on a lax.cumsum lowering inside Mosaic)."""
    n = x.shape[0]
    s = 1
    while s < n:
        shifted = jnp.concatenate(
            [jnp.zeros((s,) + x.shape[1:], x.dtype), x[:-s]], axis=0)
        x = x + shifted
        s *= 2
    return x


# ---------------------------------------------------------------------------
# Pallas kernel 1: furthest point sampling (VMEM-resident, lane-dense (3, N)).
# ---------------------------------------------------------------------------
def _make_fps_kernel(npoint, N):
    def kernel(xt_ref, out_ref):
        x = xt_ref[0].astype(jnp.float32)                                # (3, N)
        col = jax.lax.broadcasted_iota(jnp.int32, (1, N), 1)
        out_lane = jax.lax.broadcasted_iota(jnp.int32, (1, npoint), 1)

        def body(i, carry):
            far, dist, out_vec = carry                                   # (1,1) i32, (1,N) f32, (1,npoint) i32
            out_vec = jnp.where(out_lane == i, far, out_vec)             # idx[i] = far
            sel = col == far
            pt = jnp.sum(jnp.where(sel, x, 0.0), axis=1, keepdims=True)  # (3, 1) coords of far
            d = jnp.sum((x - pt) * (x - pt), axis=0, keepdims=True)      # (1, N)
            dist = jnp.minimum(dist, d)
            maxd = jnp.max(dist, axis=1, keepdims=True)                  # (1, 1)
            far = jnp.min(jnp.where(dist == maxd, col, N),
                          axis=1, keepdims=True).astype(jnp.int32)       # first argmax
            return far, dist, out_vec

        init = (jnp.zeros((1, 1), jnp.int32),
                jnp.full((1, N), 1e10, jnp.float32),
                jnp.zeros((1, npoint), jnp.int32))
        _, _, out_vec = jax.lax.fori_loop(0, npoint, body, init)
        out_ref[0] = out_vec

    return kernel


def furthest_point_sample(xyz_t, npoint):
    """xyz_t: (B, 3, N) -> (B, npoint) int32.  Matches the CUDA op (seeded at index 0)."""
    B, _, N = xyz_t.shape
    out = pl.pallas_call(
        _make_fps_kernel(npoint, N),
        out_shape=jax.ShapeDtypeStruct((B, 1, npoint), jnp.int32),
        grid=(B,),
        in_specs=[pl.BlockSpec((1, 3, N), lambda b: (b, 0, 0))],
        out_specs=pl.BlockSpec((1, 1, npoint), lambda b: (b, 0, 0)),
        compiler_params=pltpu.CompilerParams(
            dimension_semantics=("parallel",),
            vmem_limit_bytes=_vmem_limit()),
    )(xyz_t)
    return out.reshape(B, npoint)


# ---------------------------------------------------------------------------
# Pallas kernel 2: fused multi-radius ball query.
#   d2[n, i] = |p_n - q_i|^2 via one MXU matmul of augmented points; the first
#   `nsample` within-radius indices per query are found with a rank (cumsum of the
#   mask) + independent masked min-reductions; idx is stored lane-dense (ns, TS).
#   CUDA ball_query semantics: unfilled slots copy the first hit, empty groups -> 0.
# ---------------------------------------------------------------------------
def _make_ballquery_kernel(radius_nsample, N):
    def kernel(p_ref, q_ref, *idx_refs):
        p = p_ref[0]                                            # (N, 5): [x, y, z, |p|^2, 1]
        q = q_ref[0]                                            # (5, TS): [-2x, -2y, -2z, 1, |q|^2]
        TS = q.shape[1]
        d2 = jax.lax.dot_general(p, q, (((1,), (0,)), ((), ())),
                                 preferred_element_type=jnp.float32)    # (N, TS)
        d2 = jnp.maximum(d2, 0.0)                               # clamp cancellation
        row = jax.lax.broadcasted_iota(jnp.int32, (N, TS), 0)

        for (radius, ns), idx_ref in zip(radius_nsample, idx_refs):
            r2 = float(radius) * float(radius)
            avail = d2 < r2                                     # (N, TS)
            rank = _cumsum_rows(avail.astype(jnp.int32))        # (N, TS) inclusive rank
            rows = []
            for j in range(ns):                                 # independent reductions
                hit = jnp.logical_and(avail, rank == (j + 1))
                rows.append(jnp.min(jnp.where(hit, row, N), axis=0, keepdims=True))
            idx = jnp.concatenate(rows, axis=0)                 # (ns, TS)
            first = idx[0:1, :]
            idx = jnp.where(idx == N, first, idx)               # pad with first hit
            idx = jnp.where(idx == N, 0, idx)                   # empty group -> 0
            idx_ref[0] = idx.astype(jnp.int32)

    return kernel


def ball_query_fused(new_xyz, xyz, radius_nsample):
    """new_xyz: (B, S, 3), xyz: (B, N, 3), radius_nsample: [(radius, nsample), ...]
    -> tuple of (B, nsample_k, S) int32, one per grouper (d2 computed once)."""
    B, S, _ = new_xyz.shape
    _, N, _ = xyz.shape

    pp = jnp.sum(xyz * xyz, axis=-1, keepdims=True)                       # (B, N, 1)
    p_aug = jnp.concatenate([xyz, pp, jnp.ones_like(pp)], axis=-1)        # (B, N, 5)
    new_xyz_t = jnp.transpose(new_xyz, (0, 2, 1))                         # (B, 3, S)
    qq = jnp.sum(new_xyz_t * new_xyz_t, axis=1, keepdims=True)            # (B, 1, S)
    q_aug = jnp.concatenate([-2.0 * new_xyz_t, jnp.ones_like(qq), qq], axis=1)  # (B, 5, S)

    limit = _vmem_limit()
    TS = _dist_s_tile(S, N, limit)
    grid = (B, S // TS)

    out_shape = tuple(jax.ShapeDtypeStruct((B, ns, S), jnp.int32)
                      for _, ns in radius_nsample)
    out_specs = tuple(pl.BlockSpec((1, ns, TS), lambda b, s: (b, 0, s))
                      for _, ns in radius_nsample)

    res = pl.pallas_call(
        _make_ballquery_kernel(list(radius_nsample), N),
        out_shape=out_shape,
        grid=grid,
        in_specs=[pl.BlockSpec((1, N, 5), lambda b, s: (b, 0, 0)),
                  pl.BlockSpec((1, 5, TS), lambda b, s: (b, 0, s))],
        out_specs=out_specs,
        compiler_params=pltpu.CompilerParams(
            dimension_semantics=("parallel", "parallel"),
            vmem_limit_bytes=limit),
    )(p_aug, q_aug)
    if not isinstance(res, (list, tuple)):
        res = (res,)
    return tuple(res)


# ---------------------------------------------------------------------------
# Pallas kernel 3: channel-first pointwise MLP (1x1 Conv + BN folded) + ReLU +
# max-pool over nsample, fused.  Per-neighbour processing keeps the peak f32
# activation at (C_out, TS) and stores a lane-dense (C_out, npoint) block.
# ---------------------------------------------------------------------------
def _make_sa_mlp_kernel(num_layers, ns):
    def kernel(*refs):
        x_ref = refs[0]
        o_ref = refs[-1]
        wb = refs[1:-1]

        x = x_ref[0]                                            # (C_pad, ns, TS) bf16
        pooled = None
        # NOTE: ns is small (8-64); the loop is unrolled on purpose so the scheduler
        # sees the independent matmuls and the running max fuses the pooling.
        for j in range(ns):
            h = x[:, j, :]                                      # (C_pad, TS)
            for l in range(num_layers):
                w = wb[2 * l][...]                              # (C_out_l, C_in_l) bf16
                b = wb[2 * l + 1][...]                          # (C_out_l, 1)      f32
                z = jax.lax.dot_general(
                    w, h, (((1,), (0,)), ((), ())),
                    preferred_element_type=jnp.float32)         # f32 accumulation
                a = jnp.maximum(z + b, 0.0)                     # bias + ReLU in f32
                h = a if l == num_layers - 1 else a.astype(jnp.bfloat16)
            pooled = h if pooled is None else jnp.maximum(pooled, h)
        o_ref[0] = pooled.astype(o_ref.dtype)                   # lane-dense (C_out, TS)

    return kernel


def sa_mlp_maxpool(grouped, weights, biases):
    """grouped: (B, C_in, ns, S) f32 (channel-first).  weights[l]: (C_out_l, C_in_l),
    biases[l]: (C_out_l, 1).  Returns (B, C_out, S) f32 (PyTorch output order)."""
    B, C_in, ns, S = grouped.shape
    C_out = weights[-1].shape[0]
    num_layers = len(weights)

    # Pad C_in to a multiple of 8 with zero channels + zero weight columns (exact).
    pad = (-C_in) % 8
    if pad:
        grouped = jnp.pad(grouped, ((0, 0), (0, pad), (0, 0), (0, 0)))
        weights = [jnp.pad(weights[0], ((0, 0), (0, pad)))] + list(weights[1:])
    C_pad = C_in + pad

    # bf16 MXU operands (halves DMA/VMEM of the grouped block); bias/ReLU/max stay f32.
    grouped = grouped.astype(jnp.bfloat16)
    weights = [w.astype(jnp.bfloat16) for w in weights]
    biases = [b.astype(jnp.float32) for b in biases]

    limit = _vmem_limit()
    TS = _mlp_s_tile(S, C_pad, ns, limit)
    grid = (B, S // TS)

    in_specs = [pl.BlockSpec((1, C_pad, ns, TS), lambda b, s: (b, 0, 0, s))]
    args = [grouped]
    for w, bvec in zip(weights, biases):
        in_specs.append(pl.BlockSpec(w.shape, lambda b, s: (0, 0)))      # resident
        in_specs.append(pl.BlockSpec(bvec.shape, lambda b, s: (0, 0)))   # resident
        args.append(w)
        args.append(bvec)

    return pl.pallas_call(
        _make_sa_mlp_kernel(num_layers, ns),
        out_shape=jax.ShapeDtypeStruct((B, C_out, S), jnp.float32),
        grid=grid,
        in_specs=in_specs,
        out_specs=pl.BlockSpec((1, C_out, TS), lambda b, s: (b, 0, s)),
        compiler_params=pltpu.CompilerParams(
            dimension_semantics=("parallel", "parallel"),
            vmem_limit_bytes=limit),
    )(*args)


# ---------------------------------------------------------------------------
# Glue (plain JAX): index gathers
# ---------------------------------------------------------------------------
def _gather_rows(points, idx):
    """points: (B, N, C), idx: (B, ...) int32 -> (B, ..., C)."""
    return jax.vmap(lambda p, i: p[i])(points, idx)


def _gather_cols(points_t, idx):
    """points_t: (B, C, N), idx: (B, ...) int32 -> (B, C, ...)."""
    return jax.vmap(lambda p, i: p[:, i])(points_t, idx)


# ---------------------------------------------------------------------------
# Forward pass mirroring _PointnetSAModuleBase.forward
# ---------------------------------------------------------------------------
def pointnet_sa_forward(xyz, features, params):
    """xyz: (B, N, 3), features: (B, N, C) or None.
    Returns new_xyz (B, npoint, 3), new_features (B, sum_k C_out_k, npoint)."""
    npoint = params["npoint"]
    xyz_t = jnp.transpose(xyz, (0, 2, 1))                             # (B, 3, N)

    fps_idx = furthest_point_sample(xyz_t, npoint)                    # (B, npoint)   [Pallas]
    new_xyz = _gather_rows(xyz, fps_idx)                              # (B, npoint, 3)
    new_xyz_t = jnp.transpose(new_xyz, (0, 2, 1))                     # (B, 3, npoint)

    groupers = params["groupers"]
    idx_list = ball_query_fused(
        new_xyz, xyz, [(g["radius"], g["nsample"]) for g in groupers])  # [Pallas, fused]

    feats_t = None if features is None else jnp.transpose(features, (0, 2, 1))  # (B, C, N)

    feats_out = []
    for g, idx in zip(groupers, idx_list):
        # TODO(synk): fuse this idx-driven gather + concat into the MLP kernel (manual
        # DMA / one-hot MXU gather from pl.ANY refs) to remove the grouped HBM round trip.
        grouped_xyz = _gather_cols(xyz_t, idx) - new_xyz_t[:, :, None, :]   # (B, 3, ns, S)
        if feats_t is not None:
            grouped = jnp.concatenate(
                [grouped_xyz, _gather_cols(feats_t, idx)], axis=1)          # (B, C_in, ns, S)
        else:
            grouped = grouped_xyz
        feats_out.append(sa_mlp_maxpool(grouped, g["weights"], g["biases"]))  # [Pallas]
    return new_xyz, jnp.concatenate(feats_out, axis=1)


def init_params(key, npoint, grouper_cfg):
    groupers = []
    for cfg in grouper_cfg:
        ws, bs = [], []
        dims = cfg["mlp"]
        for cin, cout in zip(dims[:-1], dims[1:]):
            key, k1, k2 = jax.random.split(key, 3)
            # Conv2d(1x1, bias=False) + BatchNorm2d folded into one affine (W, b),
            # stored channel-first: W (C_out, C_in), b (C_out, 1).
            ws.append(jax.random.normal(k1, (cout, cin), jnp.float32) * 0.1)
            bs.append(jax.random.normal(k2, (cout, 1), jnp.float32) * 0.01)
        groupers.append({"radius": cfg["radius"], "nsample": cfg["nsample"],
                         "weights": ws, "biases": bs})
    return {"npoint": npoint, "groupers": groupers}


# ---------------------------------------------------------------------------
# Pure-jnp references (no Pallas)
# ---------------------------------------------------------------------------
def furthest_point_sample_ref(xyz, npoint):
    def single(pts):
        N = pts.shape[0]

        def body(i, carry):
            dist, far, idxs = carry
            idxs = idxs.at[i].set(far)
            d = jnp.sum((pts - pts[far]) ** 2, axis=-1)
            dist = jnp.minimum(dist, d)
            far = jnp.argmax(dist).astype(jnp.int32)
            return dist, far, idxs

        init = (jnp.full((N,), 1e10, jnp.float32), jnp.int32(0),
                jnp.zeros((npoint,), jnp.int32))
        return jax.lax.fori_loop(0, npoint, body, init)[2]

    return jax.vmap(single)(xyz)


def _pairwise_d2_ref(q, p):
    qq = jnp.sum(q * q, axis=-1, keepdims=True)               # (B, S, 1)
    pp = jnp.sum(p * p, axis=-1)[:, None, :]                  # (B, 1, N)
    cross = jnp.einsum('bsc,bnc->bsn', q, p)
    return jnp.maximum(qq + pp - 2.0 * cross, 0.0)


def _ball_query_ref(radius, nsample, d2):
    B, S, N = d2.shape
    within = d2 < radius * radius
    cand = jnp.where(within, jnp.arange(N, dtype=jnp.int32)[None, None, :], N)
    idx = jnp.sort(cand, axis=-1)[..., :nsample]
    first = idx[..., :1]
    idx = jnp.where(idx == N, first, idx)
    return jnp.where(idx == N, 0, idx).astype(jnp.int32)


def reference_forward(xyz, features, params, mixed_precision=False):
    """Pure-jnp reference.  mixed_precision=True mimics the kernel's bf16-operand /
    f32-accumulate matmuls for a tight comparison; False is the full-f32 spec."""
    npoint = params["npoint"]
    fps_idx = furthest_point_sample_ref(xyz, npoint)
    new_xyz = _gather_rows(xyz, fps_idx)
    d2 = _pairwise_d2_ref(new_xyz, xyz)
    feats_out = []
    for g in params["groupers"]:
        idx = _ball_query_ref(g["radius"], g["nsample"], d2)             # (B, S, ns)
        grouped_xyz = _gather_rows(xyz, idx) - new_xyz[:, :, None, :]
        grouped = jnp.concatenate([grouped_xyz, _gather_rows(features, idx)], axis=-1)
        h = grouped
        for w, b in zip(g["weights"], g["biases"]):
            if mixed_precision:
                z = jnp.einsum('bsnc,dc->bsnd', h.astype(jnp.bfloat16),
                               w.astype(jnp.bfloat16),
                               preferred_element_type=jnp.float32)
            else:
                z = jnp.einsum('bsnc,dc->bsnd', h, w)
            h = jnp.maximum(z + b.reshape(1, 1, 1, -1), 0.0)
        feats_out.append(jnp.transpose(jnp.max(h, axis=2), (0, 2, 1)))
    return new_xyz, jnp.concatenate(feats_out, axis=1)


if __name__ == "__main__":
    key = jax.random.PRNGKey(0)
    B, N, C_feat, npoint = 2, 16, 4, 8
    k1, k2, k3 = jax.random.split(key, 3)
    xyz = jax.random.normal(k1, (B, N, 3), jnp.float32)
    features = jax.random.normal(k2, (B, N, C_feat), jnp.float32)

    grouper_cfg = [
        {"radius": 0.8, "nsample": 8,  "mlp": [3 + C_feat, 16, 32]},
        {"radius": 1.6, "nsample": 16, "mlp": [3 + C_feat, 16, 64]},
    ]
    params = init_params(k3, npoint, grouper_cfg)

    fwd = jax.jit(lambda x, f: pointnet_sa_forward(x, f, params))
    new_xyz, new_features = fwd(xyz, features)
    jax.block_until_ready((new_xyz, new_features))

    assert new_xyz.shape == (B, npoint, 3)
    assert new_features.shape == (B, 32 + 64, npoint)

    # Tight check against a reference that uses the same bf16-operand / f32-accumulate
    # matmul convention as the kernel.
    ref_xyz, ref_feat_mp = reference_forward(xyz, features, params, mixed_precision=True)
    assert jnp.allclose(new_xyz, ref_xyz, atol=1e-5), "new_xyz mismatch"
    assert jnp.allclose(new_features, ref_feat_mp, atol=2e-3, rtol=2e-3), \
        "new_features mismatch vs mixed-precision reference"

    # Looser check against the full-f32 spec (mixed-precision MXU tolerance).
    _, ref_feat_f32 = reference_forward(xyz, features, params, mixed_precision=False)
    assert jnp.allclose(new_features, ref_feat_f32, atol=3e-2, rtol=3e-2), \
        "new_features mismatch vs f32 reference"

    print("KERNEL_OK")
</pallas_src>

<mosaic_0001>
module attributes {stable_mosaic.version = 11 : i64} {
  func.func @kernel(%arg0: i32, %arg1: memref<1x3x16xf32, #tpu.memory_space<vmem>>, %arg2: memref<1x1x8xi32, #tpu.memory_space<vmem>>) attributes {dimension_semantics = [#tpu.dimension_semantics<parallel>], iteration_bounds = array<i64: 2>, scalar_prefetch = 0 : i64, scratch_operands = 0 : i64, tpu.core_type = #tpu.core_type<tc>, window_params = [{transform_indices = @transform_0, window_bounds = array<i64: 1, 3, 16>}, {transform_indices = @transform_1, window_bounds = array<i64: 1, 1, 8>}]} {
    %c0 = arith.constant 0 : index
    %c0_0 = arith.constant 0 : index
    %c0_1 = arith.constant 0 : index
    %0 = vector.load %arg1[%c0, %c0_0, %c0_1] : memref<1x3x16xf32, #tpu.memory_space<vmem>>, vector<1x3x16xf32>
    %1 = vector.shape_cast %0 : vector<1x3x16xf32> to vector<3x16xf32>
    %2 = tpu.iota {dimensions = array<i32: 1>} : vector<1x16xi32>
    %3 = tpu.iota {dimensions = array<i32: 1>} : vector<1x8xi32>
    %c0_i32 = arith.constant 0 : i32
    %4 = vector.broadcast %c0_i32 : i32 to vector<1x1xi32>
    %cst = arith.constant 1.000000e+10 : f32
    %5 = vector.broadcast %cst : f32 to vector<1x16xf32>
    %c0_i32_2 = arith.constant 0 : i32
    %6 = vector.broadcast %c0_i32_2 : i32 to vector<1x8xi32>
    %c0_i32_3 = arith.constant 0 : i32
    %c8_i32 = arith.constant 8 : i32
    %7 = arith.addi %c0_i32_3, %c8_i32 : i32
    %c1_i32 = arith.constant 1 : i32
    %8:3 = scf.for %arg3 = %c0_i32_3 to %7 step %c1_i32 iter_args(%arg4 = %4, %arg5 = %5, %arg6 = %6) -> (vector<1x1xi32>, vector<1x16xf32>, vector<1x8xi32>)  : i32 {
      %12 = vector.broadcast %arg3 : i32 to vector<1x8xi32>
      %13 = arith.cmpi eq, %3, %12 : vector<1x8xi32>
      %14 = vector.shape_cast %arg4 : vector<1x1xi32> to vector<1x1xi32>
      %15 = vector.broadcast %14 : vector<1x1xi32> to vector<1x8xi32>
      %16 = arith.select %13, %15, %arg6 : vector<1x8xi1>, vector<1x8xi32>
      %17 = vector.broadcast %arg4 : vector<1x1xi32> to vector<1x16xi32>
      %18 = arith.cmpi eq, %2, %17 : vector<1x16xi32>
      %cst_8 = arith.constant 0.000000e+00 : f32
      %19 = vector.shape_cast %18 : vector<1x16xi1> to vector<1x16xi1>
      %20 = vector.broadcast %19 : vector<1x16xi1> to vector<3x16xi1>
      %21 = vector.broadcast %cst_8 : f32 to vector<3x16xf32>
      %22 = arith.select %20, %1, %21 : vector<3x16xi1>, vector<3x16xf32>
      %cst_9 = arith.constant dense<0.000000e+00> : vector<3xf32>
      %23 = vector.multi_reduction <add>, %22, %cst_9 [1] : vector<3x16xf32> to vector<3xf32>
      %24 = vector.shape_cast %23 : vector<3xf32> to vector<3x1xf32>
      %25 = vector.broadcast %24 : vector<3x1xf32> to vector<3x16xf32>
      %26 = arith.subf %1, %25 : vector<3x16xf32>
      %27 = vector.broadcast %24 : vector<3x1xf32> to vector<3x16xf32>
      %28 = arith.subf %1, %27 : vector<3x16xf32>
      %29 = arith.mulf %26, %28 : vector<3x16xf32>
      %cst_10 = arith.constant dense<0.000000e+00> : vector<16xf32>
      %30 = vector.multi_reduction <add>, %29, %cst_10 [0] : vector<3x16xf32> to vector<16xf32>
      %31 = vector.shape_cast %30 : vector<16xf32> to vector<1x16xf32>
      %32 = arith.minimumf %arg5, %31 : vector<1x16xf32>
      %cst_11 = arith.constant dense<0xFF800000> : vector<1xf32>
      %33 = vector.multi_reduction <maximumf>, %32, %cst_11 [1] : vector<1x16xf32> to vector<1xf32>
      %34 = vector.shape_cast %33 : vector<1xf32> to vector<1x1xf32>
      %35 = vector.broadcast %34 : vector<1x1xf32> to vector<1x16xf32>
      %36 = arith.cmpf oeq, %32, %35 : vector<1x16xf32>
      %c16_i32 = arith.constant 16 : i32
      %37 = vector.broadcast %c16_i32 : i32 to vector<1x16xi32>
      %38 = arith.select %36, %2, %37 : vector<1x16xi1>, vector<1x16xi32>
      %cst_12 = arith.constant dense<2147483647> : vector<1xi32>
      %39 = vector.multi_reduction <minsi>, %38, %cst_12 [1] : vector<1x16xi32> to vector<1xi32>
      %40 = vector.shape_cast %39 : vector<1xi32> to vector<1x1xi32>
      scf.yield %40, %32, %16 : vector<1x1xi32>, vector<1x16xf32>, vector<1x8xi32>
    }
    %c8_i32_4 = arith.constant 8 : i32
    %c0_5 = arith.constant 0 : index
    %c0_6 = arith.constant 0 : index
    %c0_7 = arith.constant 0 : index
    %9 = vector.load %arg2[%c0_5, %c0_6, %c0_7] : memref<1x1x8xi32, #tpu.memory_space<vmem>>, vector<1x1x8xi32>
    %10 = vector.shape_cast %9 : vector<1x1x8xi32> to vector<1x8xi32>
    %11 = vector.shape_cast %8#2 : vector<1x8xi32> to vector<1x1x8xi32>
    tpu.vector_store %arg2[%c0_5, %c0_6, %c0_7], %11 {strides = array<i32>} : memref<1x1x8xi32, #tpu.memory_space<vmem>>, vector<1x1x8xi32>,
    return
  }
  func.func @transform_0(%arg0: i32) -> (i32, i32, i32) {
    %c0_i32 = arith.constant 0 : i32
    %c0_i32_0 = arith.constant 0 : i32
    %c0_i32_1 = arith.constant 0 : i32
    return %arg0, %c0_i32, %c0_i32_0 : i32, i32, i32
  }
  func.func @transform_1(%arg0: i32) -> (i32, i32, i32) {
    %c0_i32 = arith.constant 0 : i32
    %c0_i32_0 = arith.constant 0 : i32
    %c0_i32_1 = arith.constant 0 : i32
    return %arg0, %c0_i32, %c0_i32_0 : i32, i32, i32
  }
}

module attributes {stable_mosaic.version = 11 : i64} {
  func.func @kernel(%arg0: i32, %arg1: i32, %arg2: memref<1x16x5xf32, #tpu.memory_space<vmem>>, %arg3: memref<1x5x8xf32, #tpu.memory_space<vmem>>, %arg4: memref<1x8x8xi32, #tpu.memory_space<vmem>>, %arg5: memref<1x16x8xi32, #tpu.memory_space<vmem>>) attributes {dimension_semantics = [#tpu.dimension_semantics<parallel>, #tpu.dimension_semantics<parallel>], iteration_bounds = array<i64: 2, 1>, scalar_prefetch = 0 : i64, scratch_operands = 0 : i64, tpu.core_type = #tpu.core_type<tc>, window_params = [{transform_indices = @transform_0, window_bounds = array<i64: 1, 16, 5>}, {transform_indices = @transform_1, window_bounds = array<i64: 1, 5, 8>}, {transform_indices = @transform_2, window_bounds = array<i64: 1, 8, 8>}, {transform_indices = @transform_3, window_bounds = array<i64: 1, 16, 8>}]} {
    %c0 = arith.constant 0 : index
    %c0_0 = arith.constant 0 : index
    %c0_1 = arith.constant 0 : index
    %0 = vector.load %arg2[%c0, %c0_0, %c0_1] : memref<1x16x5xf32, #tpu.memory_space<vmem>>, vector<1x16x5xf32>
    %1 = vector.shape_cast %0 : vector<1x16x5xf32> to vector<16x5xf32>
    %c0_2 = arith.constant 0 : index
    %c0_3 = arith.constant 0 : index
    %c0_4 = arith.constant 0 : index
    %2 = vector.load %arg3[%c0_2, %c0_3, %c0_4] : memref<1x5x8xf32, #tpu.memory_space<vmem>>, vector<1x5x8xf32>
    %3 = vector.shape_cast %2 : vector<1x5x8xf32> to vector<5x8xf32>
    %cst = arith.constant dense<0.000000e+00> : vector<16x8xf32>
    %4 = tpu.matmul %1, %3, %cst {dimension_numbers = #tpu.dot_dimension_numbers<[1], [0], [0], [1], [0, 0, 1, 1], [], []>} : vector<16x5xf32>, vector<5x8xf32>, vector<16x8xf32> -> vector<16x8xf32>
    %cst_5 = arith.constant 0.000000e+00 : f32
    %5 = vector.broadcast %cst_5 : f32 to vector<16x8xf32>
    %6 = arith.maximumf %4, %5 : vector<16x8xf32>
    %7 = tpu.iota {dimensions = array<i32: 0>} : vector<16x8xi32>
    %cst_6 = arith.constant 6.400000e-01 : f32
    %8 = vector.broadcast %cst_6 : f32 to vector<16x8xf32>
    %9 = arith.cmpf olt, %6, %8 : vector<16x8xf32>
    %10 = arith.extui %9 : vector<16x8xi1> to vector<16x8xi32>
    %c0_i32 = arith.constant 0 : i32
    %11 = vector.broadcast %c0_i32 : i32 to vector<1x8xi32>
    %12 = vector.extract_strided_slice %10 {offsets = [0, 0], sizes = [15, 8], strides = [1, 1]} : vector<16x8xi32> to vector<15x8xi32>
    %13 = tpu.concatenate %11, %12 in 0 : vector<1x8xi32>, vector<15x8xi32> -> vector<16x8xi32>
    %14 = arith.addi %10, %13 : vector<16x8xi32>
    %c0_i32_7 = arith.constant 0 : i32
    %15 = vector.broadcast %c0_i32_7 : i32 to vector<2x8xi32>
    %16 = vector.extract_strided_slice %14 {offsets = [0, 0], sizes = [14, 8], strides = [1, 1]} : vector<16x8xi32> to vector<14x8xi32>
    %17 = tpu.concatenate %15, %16 in 0 : vector<2x8xi32>, vector<14x8xi32> -> vector<16x8xi32>
    %18 = arith.addi %14, %17 : vector<16x8xi32>
    %c0_i32_8 = arith.constant 0 : i32
    %19 = vector.broadcast %c0_i32_8 : i32 to vector<4x8xi32>
    %20 = vector.extract_strided_slice %18 {offsets = [0, 0], sizes = [12, 8], strides = [1, 1]} : vector<16x8xi32> to vector<12x8xi32>
    %21 = tpu.concatenate %19, %20 in 0 : vector<4x8xi32>, vector<12x8xi32> -> vector<16x8xi32>
    %22 = arith.addi %18, %21 : vector<16x8xi32>
    %c0_i32_9 = arith.constant 0 : i32
    %23 = vector.broadcast %c0_i32_9 : i32 to vector<8x8xi32>
    %24 = vector.extract_strided_slice %22 {offsets = [0, 0], sizes = [8, 8], strides = [1, 1]} : vector<16x8xi32> to vector<8x8xi32>
    %25 = tpu.concatenate %23, %24 in 0 : vector<8x8xi32>, vector<8x8xi32> -> vector<16x8xi32>
    %26 = arith.addi %22, %25 : vector<16x8xi32>
    %c1_i32 = arith.constant 1 : i32
    %27 = vector.broadcast %c1_i32 : i32 to vector<16x8xi32>
    %28 = arith.cmpi eq, %26, %27 : vector<16x8xi32>
    %29 = arith.andi %9, %28 : vector<16x8xi1>
    %c16_i32 = arith.constant 16 : i32
    %30 = vector.broadcast %c16_i32 : i32 to vector<16x8xi32>
    %31 = arith.select %29, %7, %30 : vector<16x8xi1>, vector<16x8xi32>
    %cst_10 = arith.constant dense<2147483647> : vector<8xi32>
    %32 = vector.multi_reduction <minsi>, %31, %cst_10 [0] : vector<16x8xi32> to vector<8xi32>
    %33 = vector.shape_cast %32 : vector<8xi32> to vector<1x8xi32>
    %c2_i32 = arith.constant 2 : i32
    %34 = vector.broadcast %c2_i32 : i32 to vector<16x8xi32>
    %35 = arith.cmpi eq, %26, %34 : vector<16x8xi32>
    %36 = arith.andi %9, %35 : vector<16x8xi1>
    %c16_i32_11 = arith.constant 16 : i32
    %37 = vector.broadcast %c16_i32_11 : i32 to vector<16x8xi32>
    %38 = arith.select %36, %7, %37 : vector<16x8xi1>, vector<16x8xi32>
    %cst_12 = arith.constant dense<2147483647> : vector<8xi32>
    %39 = vector.multi_reduction <minsi>, %38, %cst_12 [0] : vector<16x8xi32> to vector<8xi32>
    %40 = vector.shape_cast %39 : vector<8xi32> to vector<1x8xi32>
    %c3_i32 = arith.constant 3 : i32
    %41 = vector.broadcast %c3_i32 : i32 to vector<16x8xi32>
    %42 = arith.cmpi eq, %26, %41 : vector<16x8xi32>
    %43 = arith.andi %9, %42 : vector<16x8xi1>
    %c16_i32_13 = arith.constant 16 : i32
    %44 = vector.broadcast %c16_i32_13 : i32 to vector<16x8xi32>
    %45 = arith.select %43, %7, %44 : vector<16x8xi1>, vector<16x8xi32>
    %cst_14 = arith.constant dense<2147483647> : vector<8xi32>
    %46 = vector.multi_reduction <minsi>, %45, %cst_14 [0] : vector<16x8xi32> to vector<8xi32>
    %47 = vector.shape_cast %46 : vector<8xi32> to vector<1x8xi32>
    %c4_i32 = arith.constant 4 : i32
    %48 = vector.broadcast %c4_i32 : i32 to vector<16x8xi32>
    %49 = arith.cmpi eq, %26, %48 : vector<16x8xi32>
    %50 = arith.andi %9, %49 : vector<16x8xi1>
    %c16_i32_15 = arith.constant 16 : i32
    %51 = vector.broadcast %c16_i32_15 : i32 to vector<16x8xi32>
    %52 = arith.select %50, %7, %51 : vector<16x8xi1>, vector<16x8xi32>
    %cst_16 = arith.constant dense<2147483647> : vector<8xi32>
    %53 = vector.multi_reduction <minsi>, %52, %cst_16 [0] : vector<16x8xi32> to vector<8xi32>
    %54 = vector.shape_cast %53 : vector<8xi32> to vector<1x8xi32>
    %c5_i32 = arith.constant 5 : i32
    %55 = vector.broadcast %c5_i32 : i32 to vector<16x8xi32>
    %56 = arith.cmpi eq, %26, %55 : vector<16x8xi32>
    %57 = arith.andi %9, %56 : vector<16x8xi1>
    %c16_i32_17 = arith.constant 16 : i32
    %58 = vector.broadcast %c16_i32_17 : i32 to vector<16x8xi32>
    %59 = arith.select %57, %7, %58 : vector<16x8xi1>, vector<16x8xi32>
    %cst_18 = arith.constant dense<2147483647> : vector<8xi32>
    %60 = vector.multi_reduction <minsi>, %59, %cst_18 [0] : vector<16x8xi32> to vector<8xi32>
    %61 = vector.shape_cast %60 : vector<8xi32> to vector<1x8xi32>
    %c6_i32 = arith.constant 6 : i32
    %62 = vector.broadcast %c6_i32 : i32 to vector<16x8xi32>
    %63 = arith.cmpi eq, %26, %62 : vector<16x8xi32>
    %64 = arith.andi %9, %63 : vector<16x8xi1>
    %c16_i32_19 = arith.constant 16 : i32
    %65 = vector.broadcast %c16_i32_19 : i32 to vector<16x8xi32>
    %66 = arith.select %64, %7, %65 : vector<16x8xi1>, vector<16x8xi32>
    %cst_20 = arith.constant dense<2147483647> : vector<8xi32>
    %67 = vector.multi_reduction <minsi>, %66, %cst_20 [0] : vector<16x8xi32> to vector<8xi32>
    %68 = vector.shape_cast %67 : vector<8xi32> to vector<1x8xi32>
    %c7_i32 = arith.constant 7 : i32
    %69 = vector.broadcast %c7_i32 : i32 to vector<16x8xi32>
    %70 = arith.cmpi eq, %26, %69 : vector<16x8xi32>
    %71 = arith.andi %9, %70 : vector<16x8xi1>
    %c16_i32_21 = arith.constant 16 : i32
    %72 = vector.broadcast %c16_i32_21 : i32 to vector<16x8xi32>
    %73 = arith.select %71, %7, %72 : vector<16x8xi1>, vector<16x8xi32>
    %cst_22 = arith.constant dense<2147483647> : vector<8xi32>
    %74 = vector.multi_reduction <minsi>, %73, %cst_22 [0] : vector<16x8xi32> to vector<8xi32>
    %75 = vector.shape_cast %74 : vector<8xi32> to vector<1x8xi32>
    %c8_i32 = arith.constant 8 : i32
    %76 = vector.broadcast %c8_i32 : i32 to vector<16x8xi32>
    %77 = arith.cmpi eq, %26, %76 : vector<16x8xi32>
    %78 = arith.andi %9, %77 : vector<16x8xi1>
    %c16_i32_23 = arith.constant 16 : i32
    %79 = vector.broadcast %c16_i32_23 : i32 to vector<16x8xi32>
    %80 = arith.select %78, %7, %79 : vector<16x8xi1>, vector<16x8xi32>
    %cst_24 = arith.constant dense<2147483647> : vector<8xi32>
    %81 = vector.multi_reduction <minsi>, %80, %cst_24 [0] : vector<16x8xi32> to vector<8xi32>
    %82 = vector.shape_cast %81 : vector<8xi32> to vector<1x8xi32>
    %83 = tpu.concatenate %33, %40, %47, %54, %61, %68, %75, %82 in 0 : vector<1x8xi32>, vector<1x8xi32>, vector<1x8xi32>, vector<1x8xi32>, vector<1x8xi32>, vector<1x8xi32>, vector<1x8xi32>, vector<1x8xi32> -> vector<8x8xi32>
    %84 = vector.extract_strided_slice %83 {offsets = [0, 0], sizes = [1, 8], strides = [1, 1]} : vector<8x8xi32> to vector<1x8xi32>
    %c16_i32_25 = arith.constant 16 : i32
    %85 = vector.broadcast %c16_i32_25 : i32 to vector<8x8xi32>
    %86 = arith.cmpi eq, %83, %85 : vector<8x8xi32>
    %87 = vector.shape_cast %84 : vector<1x8xi32> to vector<1x8xi32>
    %88 = vector.broadcast %87 : vector<1x8xi32> to vector<8x8xi32>
    %89 = arith.select %86, %88, %83 : vector<8x8xi1>, vector<8x8xi32>
    %c16_i32_26 = arith.constant 16 : i32
    %90 = vector.broadcast %c16_i32_26 : i32 to vector<8x8xi32>
    %91 = arith.cmpi eq, %89, %90 : vector<8x8xi32>
    %c0_i32_27 = arith.constant 0 : i32
    %92 = vector.broadcast %c0_i32_27 : i32 to vector<8x8xi32>
    %93 = arith.select %91, %92, %89 : vector<8x8xi1>, vector<8x8xi32>
    %c0_28 = arith.constant 0 : index
    %c0_29 = arith.constant 0 : index
    %c0_30 = arith.constant 0 : index
    %94 = vector.load %arg4[%c0_28, %c0_29, %c0_30] : memref<1x8x8xi32, #tpu.memory_space<vmem>>, vector<1x8x8xi32>
    %95 = vector.shape_cast %94 : vector<1x8x8xi32> to vector<8x8xi32>
    %96 = vector.shape_cast %93 : vector<8x8xi32> to vector<1x8x8xi32>
    tpu.vector_store %arg4[%c0_28, %c0_29, %c0_30], %96 {strides = array<i32>} : memref<1x8x8xi32, #tpu.memory_space<vmem>>, vector<1x8x8xi32>,
    %cst_31 = arith.constant 2.560000e+00 : f32
    %97 = vector.broadcast %cst_31 : f32 to vector<16x8xf32>
    %98 = arith.cmpf olt, %6, %97 : vector<16x8xf32>
    %99 = arith.extui %98 : vector<16x8xi1> to vector<16x8xi32>
    %c0_i32_32 = arith.constant 0 : i32
    %100 = vector.broadcast %c0_i32_32 : i32 to vector<1x8xi32>
    %101 = vector.extract_strided_slice %99 {offsets = [0, 0], sizes = [15, 8], strides = [1, 1]} : vector<16x8xi32> to vector<15x8xi32>
    %102 = tpu.concatenate %100, %101 in 0 : vector<1x8xi32>, vector<15x8xi32> -> vector<16x8xi32>
    %103 = arith.addi %99, %102 : vector<16x8xi32>
    %c0_i32_33 = arith.constant 0 : i32
    %104 = vector.broadcast %c0_i32_33 : i32 to vector<2x8xi32>
    %105 = vector.extract_strided_slice %103 {offsets = [0, 0], sizes = [14, 8], strides = [1, 1]} : vector<16x8xi32> to vector<14x8xi32>
    %106 = tpu.concatenate %104, %105 in 0 : vector<2x8xi32>, vector<14x8xi32> -> vector<16x8xi32>
    %107 = arith.addi %103, %106 : vector<16x8xi32>
    %c0_i32_34 = arith.constant 0 : i32
    %108 = vector.broadcast %c0_i32_34 : i32 to vector<4x8xi32>
    %109 = vector.extract_strided_slice %107 {offsets = [0, 0], sizes = [12, 8], strides = [1, 1]} : vector<16x8xi32> to vector<12x8xi32>
    %110 = tpu.concatenate %108, %109 in 0 : vector<4x8xi32>, vector<12x8xi32> -> vector<16x8xi32>
    %111 = arith.addi %107, %110 : vector<16x8xi32>
    %c0_i32_35 = arith.constant 0 : i32
    %112 = vector.broadcast %c0_i32_35 : i32 to vector<8x8xi32>
    %113 = vector.extract_strided_slice %111 {offsets = [0, 0], sizes = [8, 8], strides = [1, 1]} : vector<16x8xi32> to vector<8x8xi32>
    %114 = tpu.concatenate %112, %113 in 0 : vector<8x8xi32>, vector<8x8xi32> -> vector<16x8xi32>
    %115 = arith.addi %111, %114 : vector<16x8xi32>
    %c1_i32_36 = arith.constant 1 : i32
    %116 = vector.broadcast %c1_i32_36 : i32 to vector<16x8xi32>
    %117 = arith.cmpi eq, %115, %116 : vector<16x8xi32>
    %118 = arith.andi %98, %117 : vector<16x8xi1>
    %c16_i32_37 = arith.constant 16 : i32
    %119 = vector.broadcast %c16_i32_37 : i32 to vector<16x8xi32>
    %120 = arith.select %118, %7, %119 : vector<16x8xi1>, vector<16x8xi32>
    %cst_38 = arith.constant dense<2147483647> : vector<8xi32>
    %121 = vector.multi_reduction <minsi>, %120, %cst_38 [0] : vector<16x8xi32> to vector<8xi32>
    %122 = vector.shape_cast %121 : vector<8xi32> to vector<1x8xi32>
    %c2_i32_39 = arith.constant 2 : i32
    %123 = vector.broadcast %c2_i32_39 : i32 to vector<16x8xi32>
    %124 = arith.cmpi eq, %115, %123 : vector<16x8xi32>
    %125 = arith.andi %98, %124 : vector<16x8xi1>
    %c16_i32_40 = arith.constant 16 : i32
    %126 = vector.broadcast %c16_i32_40 : i32 to vector<16x8xi32>
    %127 = arith.select %125, %7, %126 : vector<16x8xi1>, vector<16x8xi32>
    %cst_41 = arith.constant dense<2147483647> : vector<8xi32>
    %128 = vector.multi_reduction <minsi>, %127, %cst_41 [0] : vector<16x8xi32> to vector<8xi32>
    %129 = vector.shape_cast %128 : vector<8xi32> to vector<1x8xi32>
    %c3_i32_42 = arith.constant 3 : i32
    %130 = vector.broadcast %c3_i32_42 : i32 to vector<16x8xi32>
    %131 = arith.cmpi eq, %115, %130 : vector<16x8xi32>
    %132 = arith.andi %98, %131 : vector<16x8xi1>
    %c16_i32_43 = arith.constant 16 : i32
    %133 = vector.broadcast %c16_i32_43 : i32 to vector<16x8xi32>
    %134 = arith.select %132, %7, %133 : vector<16x8xi1>, vector<16x8xi32>
    %cst_44 = arith.constant dense<2147483647> : vector<8xi32>
    %135 = vector.multi_reduction <minsi>, %134, %cst_44 [0] : vector<16x8xi32> to vector<8xi32>
    %136 = vector.shape_cast %135 : vector<8xi32> to vector<1x8xi32>
    %c4_i32_45 = arith.constant 4 : i32
    %137 = vector.broadcast %c4_i32_45 : i32 to vector<16x8xi32>
    %138 = arith.cmpi eq, %115, %137 : vector<16x8xi32>
    %139 = arith.andi %98, %138 : vector<16x8xi1>
    %c16_i32_46 = arith.constant 16 : i32
    %140 = vector.broadcast %c16_i32_46 : i32 to vector<16x8xi32>
    %141 = arith.select %139, %7, %140 : vector<16x8xi1>, vector<16x8xi32>
    %cst_47 = arith.constant dense<2147483647> : vector<8xi32>
    %142 = vector.multi_reduction <minsi>, %141, %cst_47 [0] : vector<16x8xi32> to vector<8xi32>
    %143 = vector.shape_cast %142 : vector<8xi32> to vector<1x8xi32>
    %c5_i32_48 = arith.constant 5 : i32
    %144 = vector.broadcast %c5_i32_48 : i32 to vector<16x8xi32>
    %145 = arith.cmpi eq, %115, %144 : vector<16x8xi32>
    %146 = arith.andi %98, %145 : vector<16x8xi1>
    %c16_i32_49 = arith.constant 16 : i32
    %147 = vector.broadcast %c16_i32_49 : i32 to vector<16x8xi32>
    %148 = arith.select %146, %7, %147 : vector<16x8xi1>, vector<16x8xi32>
    %cst_50 = arith.constant dense<2147483647> : vector<8xi32>
    %149 = vector.multi_reduction <minsi>, %148, %cst_50 [0] : vector<16x8xi32> to vector<8xi32>
    %150 = vector.shape_cast %149 : vector<8xi32> to vector<1x8xi32>
    %c6_i32_51 = arith.constant 6 : i32
    %151 = vector.broadcast %c6_i32_51 : i32 to vector<16x8xi32>
    %152 = arith.cmpi eq, %115, %151 : vector<16x8xi32>
    %153 = arith.andi %98, %152 : vector<16x8xi1>
    %c16_i32_52 = arith.constant 16 : i32
    %154 = vector.broadcast %c16_i32_52 : i32 to vector<16x8xi32>
    %155 = arith.select %153, %7, %154 : vector<16x8xi1>, vector<16x8xi32>
    %cst_53 = arith.constant dense<2147483647> : vector<8xi32>
    %156 = vector.multi_reduction <minsi>, %155, %cst_53 [0] : vector<16x8xi32> to vector<8xi32>
    %157 = vector.shape_cast %156 : vector<8xi32> to vector<1x8xi32>
    %c7_i32_54 = arith.constant 7 : i32
    %158 = vector.broadcast %c7_i32_54 : i32 to vector<16x8xi32>
    %159 = arith.cmpi eq, %115, %158 : vector<16x8xi32>
    %160 = arith.andi %98, %159 : vector<16x8xi1>
    %c16_i32_55 = arith.constant 16 : i32
    %161 = vector.broadcast %c16_i32_55 : i32 to vector<16x8xi32>
    %162 = arith.select %160, %7, %161 : vector<16x8xi1>, vector<16x8xi32>
    %cst_56 = arith.constant dense<2147483647> : vector<8xi32>
    %163 = vector.multi_reduction <minsi>, %162, %cst_56 [0] : vector<16x8xi32> to vector<8xi32>
    %164 = vector.shape_cast %163 : vector<8xi32> to vector<1x8xi32>
    %c8_i32_57 = arith.constant 8 : i32
    %165 = vector.broadcast %c8_i32_57 : i32 to vector<16x8xi32>
    %166 = arith.cmpi eq, %115, %165 : vector<16x8xi32>
    %167 = arith.andi %98, %166 : vector<16x8xi1>
    %c16_i32_58 = arith.constant 16 : i32
    %168 = vector.broadcast %c16_i32_58 : i32 to vector<16x8xi32>
    %169 = arith.select %167, %7, %168 : vector<16x8xi1>, vector<16x8xi32>
    %cst_59 = arith.constant dense<2147483647> : vector<8xi32>
    %170 = vector.multi_reduction <minsi>, %169, %cst_59 [0] : vector<16x8xi32> to vector<8xi32>
    %171 = vector.shape_cast %170 : vector<8xi32> to vector<1x8xi32>
    %c9_i32 = arith.constant 9 : i32
    %172 = vector.broadcast %c9_i32 : i32 to vector<16x8xi32>
    %173 = arith.cmpi eq, %115, %172 : vector<16x8xi32>
    %174 = arith.andi %98, %173 : vector<16x8xi1>
    %c16_i32_60 = arith.constant 16 : i32
    %175 = vector.broadcast %c16_i32_60 : i32 to vector<16x8xi32>
    %176 = arith.select %174, %7, %175 : vector<16x8xi1>, vector<16x8xi32>
    %cst_61 = arith.constant dense<2147483647> : vector<8xi32>
    %177 = vector.multi_reduction <minsi>, %176, %cst_61 [0] : vector<16x8xi32> to vector<8xi32>
    %178 = vector.shape_cast %177 : vector<8xi32> to vector<1x8xi32>
    %c10_i32 = arith.constant 10 : i32
    %179 = vector.broadcast %c10_i32 : i32 to vector<16x8xi32>
    %180 = arith.cmpi eq, %115, %179 : vector<16x8xi32>
    %181 = arith.andi %98, %180 : vector<16x8xi1>
    %c16_i32_62 = arith.constant 16 : i32
    %182 = vector.broadcast %c16_i32_62 : i32 to vector<16x8xi32>
    %183 = arith.select %181, %7, %182 : vector<16x8xi1>, vector<16x8xi32>
    %cst_63 = arith.constant dense<2147483647> : vector<8xi32>
    %184 = vector.multi_reduction <minsi>, %183, %cst_63 [0] : vector<16x8xi32> to vector<8xi32>
    %185 = vector.shape_cast %184 : vector<8xi32> to vector<1x8xi32>
    %c11_i32 = arith.constant 11 : i32
    %186 = vector.broadcast %c11_i32 : i32 to vector<16x8xi32>
    %187 = arith.cmpi eq, %115, %186 : vector<16x8xi32>
    %188 = arith.andi %98, %187 : vector<16x8xi1>
    %c16_i32_64 = arith.constant 16 : i32
    %189 = vector.broadcast %c16_i32_64 : i32 to vector<16x8xi32>
    %190 = arith.select %188, %7, %189 : vector<16x8xi1>, vector<16x8xi32>
    %cst_65 = arith.constant dense<2147483647> : vector<8xi32>
    %191 = vector.multi_reduction <minsi>, %190, %cst_65 [0] : vector<16x8xi32> to vector<8xi32>
    %192 = vector.shape_cast %191 : vector<8xi32> to vector<1x8xi32>
    %c12_i32 = arith.constant 12 : i32
    %193 = vector.broadcast %c12_i32 : i32 to vector<16x8xi32>
    %194 = arith.cmpi eq, %115, %193 : vector<16x8xi32>
    %195 = arith.andi %98, %194 : vector<16x8xi1>
    %c16_i32_66 = arith.constant 16 : i32
    %196 = vector.broadcast %c16_i32_66 : i32 to vector<16x8xi32>
    %197 = arith.select %195, %7, %196 : vector<16x8xi1>, vector<16x8xi32>
    %cst_67 = arith.constant dense<2147483647> : vector<8xi32>
    %198 = vector.multi_reduction <minsi>, %197, %cst_67 [0] : vector<16x8xi32> to vector<8xi32>
    %199 = vector.shape_cast %198 : vector<8xi32> to vector<1x8xi32>
    %c13_i32 = arith.constant 13 : i32
    %200 = vector.broadcast %c13_i32 : i32 to vector<16x8xi32>
    %201 = arith.cmpi eq, %115, %200 : vector<16x8xi32>
    %202 = arith.andi %98, %201 : vector<16x8xi1>
    %c16_i32_68 = arith.constant 16 : i32
    %203 = vector.broadcast %c16_i32_68 : i32 to vector<16x8xi32>
    %204 = arith.select %202, %7, %203 : vector<16x8xi1>, vector<16x8xi32>
    %cst_69 = arith.constant dense<2147483647> : vector<8xi32>
    %205 = vector.multi_reduction <minsi>, %204, %cst_69 [0] : vector<16x8xi32> to vector<8xi32>
    %206 = vector.shape_cast %205 : vector<8xi32> to vector<1x8xi32>
    %c14_i32 = arith.constant 14 : i32
    %207 = vector.broadcast %c14_i32 : i32 to vector<16x8xi32>
    %208 = arith.cmpi eq, %115, %207 : vector<16x8xi32>
    %209 = arith.andi %98, %208 : vector<16x8xi1>
    %c16_i32_70 = arith.constant 16 : i32
    %210 = vector.broadcast %c16_i32_70 : i32 to vector<16x8xi32>
    %211 = arith.select %209, %7, %210 : vector<16x8xi1>, vector<16x8xi32>
    %cst_71 = arith.constant dense<2147483647> : vector<8xi32>
    %212 = vector.multi_reduction <minsi>, %211, %cst_71 [0] : vector<16x8xi32> to vector<8xi32>
    %213 = vector.shape_cast %212 : vector<8xi32> to vector<1x8xi32>
    %c15_i32 = arith.constant 15 : i32
    %214 = vector.broadcast %c15_i32 : i32 to vector<16x8xi32>
    %215 = arith.cmpi eq, %115, %214 : vector<16x8xi32>
    %216 = arith.andi %98, %215 : vector<16x8xi1>
    %c16_i32_72 = arith.constant 16 : i32
    %217 = vector.broadcast %c16_i32_72 : i32 to vector<16x8xi32>
    %218 = arith.select %216, %7, %217 : vector<16x8xi1>, vector<16x8xi32>
    %cst_73 = arith.constant dense<2147483647> : vector<8xi32>
    %219 = vector.multi_reduction <minsi>, %218, %cst_73 [0] : vector<16x8xi32> to vector<8xi32>
    %220 = vector.shape_cast %219 : vector<8xi32> to vector<1x8xi32>
    %c16_i32_74 = arith.constant 16 : i32
    %221 = vector.broadcast %c16_i32_74 : i32 to vector<16x8xi32>
    %222 = arith.cmpi eq, %115, %221 : vector<16x8xi32>
    %223 = arith.andi %98, %222 : vector<16x8xi1>
    %c16_i32_75 = arith.constant 16 : i32
    %224 = vector.broadcast %c16_i32_75 : i32 to vector<16x8xi32>
    %225 = arith.select %223, %7, %224 : vector<16x8xi1>, vector<16x8xi32>
    %cst_76 = arith.constant dense<2147483647> : vector<8xi32>
    %226 = vector.multi_reduction <minsi>, %225, %cst_76 [0] : vector<16x8xi32> to vector<8xi32>
    %227 = vector.shape_cast %226 : vector<8xi32> to vector<1x8xi32>
    %228 = tpu.concatenate %122, %129, %136, %143, %150, %157, %164, %171, %178, %185, %192, %199, %206, %213, %220, %227 in 0 : vector<1x8xi32>, vector<1x8xi32>, vector<1x8xi32>, vector<1x8xi32>, vector<1x8xi32>, vector<1x8xi32>, vector<1x8xi32>, vector<1x8xi32>, vector<1x8xi32>, vector<1x8xi32>, vector<1x8xi32>, vector<1x8xi32>, vector<1x8xi32>, vector<1x8xi32>, vector<1x8xi32>, vector<1x8xi32> -> vector<16x8xi32>
    %229 = vector.extract_strided_slice %228 {offsets = [0, 0], sizes = [1, 8], strides = [1, 1]} : vector<16x8xi32> to vector<1x8xi32>
    %c16_i32_77 = arith.constant 16 : i32
    %230 = vector.broadcast %c16_i32_77 : i32 to vector<16x8xi32>
    %231 = arith.cmpi eq, %228, %230 : vector<16x8xi32>
    %232 = vector.shape_cast %229 : vector<1x8xi32> to vector<1x8xi32>
    %233 = vector.broadcast %232 : vector<1x8xi32> to vector<16x8xi32>
    %234 = arith.select %231, %233, %228 : vector<16x8xi1>, vector<16x8xi32>
    %c16_i32_78 = arith.constant 16 : i32
    %235 = vector.broadcast %c16_i32_78 : i32 to vector<16x8xi32>
    %236 = arith.cmpi eq, %234, %235 : vector<16x8xi32>
    %c0_i32_79 = arith.constant 0 : i32
    %237 = vector.broadcast %c0_i32_79 : i32 to vector<16x8xi32>
    %238 = arith.select %236, %237, %234 : vector<16x8xi1>, vector<16x8xi32>
    %c0_80 = arith.constant 0 : index
    %c0_81 = arith.constant 0 : index
    %c0_82 = arith.constant 0 : index
    %239 = vector.load %arg5[%c0_80, %c0_81, %c0_82] : memref<1x16x8xi32, #tpu.memory_space<vmem>>, vector<1x16x8xi32>
    %240 = vector.shape_cast %239 : vector<1x16x8xi32> to vector<16x8xi32>
    %241 = vector.shape_cast %238 : vector<16x8xi32> to vector<1x16x8xi32>
    tpu.vector_store %arg5[%c0_80, %c0_81, %c0_82], %241 {strides = array<i32>} : memref<1x16x8xi32, #tpu.memory_space<vmem>>, vector<1x16x8xi32>,
    return
  }
  func.func @transform_0(%arg0: i32, %arg1: i32) -> (i32, i32, i32) {
    %c0_i32 = arith.constant 0 : i32
    %c0_i32_0 = arith.constant 0 : i32
    %c0_i32_1 = arith.constant 0 : i32
    return %arg0, %c0_i32, %c0_i32_0 : i32, i32, i32
  }
  func.func @transform_1(%arg0: i32, %arg1: i32) -> (i32, i32, i32) {
    %c0_i32 = arith.constant 0 : i32
    %c0_i32_0 = arith.constant 0 : i32
    return %arg0, %c0_i32, %arg1 : i32, i32, i32
  }
  func.func @transform_2(%arg0: i32, %arg1: i32) -> (i32, i32, i32) {
    %c0_i32 = arith.constant 0 : i32
    %c0_i32_0 = arith.constant 0 : i32
    return %arg0, %c0_i32, %arg1 : i32, i32, i32
  }
  func.func @transform_3(%arg0: i32, %arg1: i32) -> (i32, i32, i32) {
    %c0_i32 = arith.constant 0 : i32
    %c0_i32_0 = arith.constant 0 : i32
    return %arg0, %c0_i32, %arg1 : i32, i32, i32
  }
}

module attributes {stable_mosaic.version = 11 : i64} {
  func.func @kernel(%arg0: i32, %arg1: i32, %arg2: memref<1x8x16x8xbf16, #tpu.memory_space<vmem>>, %arg3: memref<16x8xbf16, #tpu.memory_space<vmem>>, %arg4: memref<16x1xf32, #tpu.memory_space<vmem>>, %arg5: memref<64x16xbf16, #tpu.memory_space<vmem>>, %arg6: memref<64x1xf32, #tpu.memory_space<vmem>>, %arg7: memref<1x64x8xf32, #tpu.memory_space<vmem>>) attributes {dimension_semantics = [#tpu.dimension_semantics<parallel>, #tpu.dimension_semantics<parallel>], iteration_bounds = array<i64: 2, 1>, scalar_prefetch = 0 : i64, scratch_operands = 0 : i64, tpu.core_type = #tpu.core_type<tc>, window_params = [{transform_indices = @transform_0, window_bounds = array<i64: 1, 8, 16, 8>}, {pipeline_mode = #tpu.pipeline_mode<synchronous>, transform_indices = @transform_1, window_bounds = array<i64: 16, 8>}, {pipeline_mode = #tpu.pipeline_mode<synchronous>, transform_indices = @transform_2, window_bounds = array<i64: 16, 1>}, {pipeline_mode = #tpu.pipeline_mode<synchronous>, transform_indices = @transform_3, window_bounds = array<i64: 64, 16>}, {pipeline_mode = #tpu.pipeline_mode<synchronous>, transform_indices = @transform_4, window_bounds = array<i64: 64, 1>}, {transform_indices = @transform_5, window_bounds = array<i64: 1, 64, 8>}]} {
    %c0 = arith.constant 0 : index
    %c0_0 = arith.constant 0 : index
    %c0_1 = arith.constant 0 : index
    %c0_2 = arith.constant 0 : index
    %0 = vector.load %arg2[%c0, %c0_0, %c0_1, %c0_2] : memref<1x8x16x8xbf16, #tpu.memory_space<vmem>>, vector<1x8x16x8xbf16>
    %1 = vector.shape_cast %0 : vector<1x8x16x8xbf16> to vector<8x16x8xbf16>
    %2 = vector.extract_strided_slice %1 {offsets = [0, 0, 0], sizes = [8, 1, 8], strides = [1, 1, 1]} : vector<8x16x8xbf16> to vector<8x1x8xbf16>
    %3 = vector.shape_cast %2 : vector<8x1x8xbf16> to vector<8x8xbf16>
    %c0_3 = arith.constant 0 : index
    %c0_4 = arith.constant 0 : index
    %4 = vector.load %arg3[%c0_3, %c0_4] : memref<16x8xbf16, #tpu.memory_space<vmem>>, vector<16x8xbf16>
    %c0_5 = arith.constant 0 : index
    %c0_6 = arith.constant 0 : index
    %5 = vector.load %arg4[%c0_5, %c0_6] : memref<16x1xf32, #tpu.memory_space<vmem>>, vector<16x1xf32>
    %cst = arith.constant dense<0.000000e+00> : vector<16x8xf32>
    %6 = tpu.matmul %4, %3, %cst {dimension_numbers = #tpu.dot_dimension_numbers<[1], [0], [0], [1], [0, 0, 1, 1], [], []>} : vector<16x8xbf16>, vector<8x8xbf16>, vector<16x8xf32> -> vector<16x8xf32>
    %7 = vector.broadcast %5 : vector<16x1xf32> to vector<16x8xf32>
    %8 = arith.addf %6, %7 : vector<16x8xf32>
    %cst_7 = arith.constant 0.000000e+00 : f32
    %9 = vector.broadcast %cst_7 : f32 to vector<16x8xf32>
    %10 = arith.maximumf %8, %9 : vector<16x8xf32>
    %11 = arith.truncf %10 : vector<16x8xf32> to vector<16x8xbf16>
    %c0_8 = arith.constant 0 : index
    %c0_9 = arith.constant 0 : index
    %12 = vector.load %arg5[%c0_8, %c0_9] : memref<64x16xbf16, #tpu.memory_space<vmem>>, vector<64x16xbf16>
    %c0_10 = arith.constant 0 : index
    %c0_11 = arith.constant 0 : index
    %13 = vector.load %arg6[%c0_10, %c0_11] : memref<64x1xf32, #tpu.memory_space<vmem>>, vector<64x1xf32>
    %cst_12 = arith.constant dense<0.000000e+00> : vector<64x8xf32>
    %14 = tpu.matmul %12, %11, %cst_12 {dimension_numbers = #tpu.dot_dimension_numbers<[1], [0], [0], [1], [0, 0, 1, 1], [], []>} : vector<64x16xbf16>, vector<16x8xbf16>, vector<64x8xf32> -> vector<64x8xf32>
    %15 = vector.broadcast %13 : vector<64x1xf32> to vector<64x8xf32>
    %16 = arith.addf %14, %15 : vector<64x8xf32>
    %cst_13 = arith.constant 0.000000e+00 : f32
    %17 = vector.broadcast %cst_13 : f32 to vector<64x8xf32>
    %18 = arith.maximumf %16, %17 : vector<64x8xf32>
    %19 = vector.extract_strided_slice %1 {offsets = [0, 1, 0], sizes = [8, 1, 8], strides = [1, 1, 1]} : vector<8x16x8xbf16> to vector<8x1x8xbf16>
    %20 = vector.shape_cast %19 : vector<8x1x8xbf16> to vector<8x8xbf16>
    %c0_14 = arith.constant 0 : index
    %c0_15 = arith.constant 0 : index
    %21 = vector.load %arg3[%c0_14, %c0_15] : memref<16x8xbf16, #tpu.memory_space<vmem>>, vector<16x8xbf16>
    %c0_16 = arith.constant 0 : index
    %c0_17 = arith.constant 0 : index
    %22 = vector.load %arg4[%c0_16, %c0_17] : memref<16x1xf32, #tpu.memory_space<vmem>>, vector<16x1xf32>
    %cst_18 = arith.constant dense<0.000000e+00> : vector<16x8xf32>
    %23 = tpu.matmul %21, %20, %cst_18 {dimension_numbers = #tpu.dot_dimension_numbers<[1], [0], [0], [1], [0, 0, 1, 1], [], []>} : vector<16x8xbf16>, vector<8x8xbf16>, vector<16x8xf32> -> vector<16x8xf32>
    %24 = vector.broadcast %22 : vector<16x1xf32> to vector<16x8xf32>
    %25 = arith.addf %23, %24 : vector<16x8xf32>
    %cst_19 = arith.constant 0.000000e+00 : f32
    %26 = vector.broadcast %cst_19 : f32 to vector<16x8xf32>
    %27 = arith.maximumf %25, %26 : vector<16x8xf32>
    %28 = arith.truncf %27 : vector<16x8xf32> to vector<16x8xbf16>
    %c0_20 = arith.constant 0 : index
    %c0_21 = arith.constant 0 : index
    %29 = vector.load %arg5[%c0_20, %c0_21] : memref<64x16xbf16, #tpu.memory_space<vmem>>, vector<64x16xbf16>
    %c0_22 = arith.constant 0 : index
    %c0_23 = arith.constant 0 : index
    %30 = vector.load %arg6[%c0_22, %c0_23] : memref<64x1xf32, #tpu.memory_space<vmem>>, vector<64x1xf32>
    %cst_24 = arith.constant dense<0.000000e+00> : vector<64x8xf32>
    %31 = tpu.matmul %29, %28, %cst_24 {dimension_numbers = #tpu.dot_dimension_numbers<[1], [0], [0], [1], [0, 0, 1, 1], [], []>} : vector<64x16xbf16>, vector<16x8xbf16>, vector<64x8xf32> -> vector<64x8xf32>
    %32 = vector.broadcast %30 : vector<64x1xf32> to vector<64x8xf32>
    %33 = arith.addf %31, %32 : vector<64x8xf32>
    %cst_25 = arith.constant 0.000000e+00 : f32
    %34 = vector.broadcast %cst_25 : f32 to vector<64x8xf32>
    %35 = arith.maximumf %33, %34 : vector<64x8xf32>
    %36 = arith.maximumf %18, %35 : vector<64x8xf32>
    %37 = vector.extract_strided_slice %1 {offsets = [0, 2, 0], sizes = [8, 1, 8], strides = [1, 1, 1]} : vector<8x16x8xbf16> to vector<8x1x8xbf16>
    %38 = vector.shape_cast %37 : vector<8x1x8xbf16> to vector<8x8xbf16>
    %c0_26 = arith.constant 0 : index
    %c0_27 = arith.constant 0 : index
    %39 = vector.load %arg3[%c0_26, %c0_27] : memref<16x8xbf16, #tpu.memory_space<vmem>>, vector<16x8xbf16>
    %c0_28 = arith.constant 0 : index
    %c0_29 = arith.constant 0 : index
    %40 = vector.load %arg4[%c0_28, %c0_29] : memref<16x1xf32, #tpu.memory_space<vmem>>, vector<16x1xf32>
    %cst_30 = arith.constant dense<0.000000e+00> : vector<16x8xf32>
    %41 = tpu.matmul %39, %38, %cst_30 {dimension_numbers = #tpu.dot_dimension_numbers<[1], [0], [0], [1], [0, 0, 1, 1], [], []>} : vector<16x8xbf16>, vector<8x8xbf16>, vector<16x8xf32> -> vector<16x8xf32>
    %42 = vector.broadcast %40 : vector<16x1xf32> to vector<16x8xf32>
    %43 = arith.addf %41, %42 : vector<16x8xf32>
    %cst_31 = arith.constant 0.000000e+00 : f32
    %44 = vector.broadcast %cst_31 : f32 to vector<16x8xf32>
    %45 = arith.maximumf %43, %44 : vector<16x8xf32>
    %46 = arith.truncf %45 : vector<16x8xf32> to vector<16x8xbf16>
    %c0_32 = arith.constant 0 : index
    %c0_33 = arith.constant 0 : index
    %47 = vector.load %arg5[%c0_32, %c0_33] : memref<64x16xbf16, #tpu.memory_space<vmem>>, vector<64x16xbf16>
    %c0_34 = arith.constant 0 : index
    %c0_35 = arith.constant 0 : index
    %48 = vector.load %arg6[%c0_34, %c0_35] : memref<64x1xf32, #tpu.memory_space<vmem>>, vector<64x1xf32>
    %cst_36 = arith.constant dense<0.000000e+00> : vector<64x8xf32>
    %49 = tpu.matmul %47, %46, %cst_36 {dimension_numbers = #tpu.dot_dimension_numbers<[1], [0], [0], [1], [0, 0, 1, 1], [], []>} : vector<64x16xbf16>, vector<16x8xbf16>, vector<64x8xf32> -> vector<64x8xf32>
    %50 = vector.broadcast %48 : vector<64x1xf32> to vector<64x8xf32>
    %51 = arith.addf %49, %50 : vector<64x8xf32>
    %cst_37 = arith.constant 0.000000e+00 : f32
    %52 = vector.broadcast %cst_37 : f32 to vector<64x8xf32>
    %53 = arith.maximumf %51, %52 : vector<64x8xf32>
    %54 = arith.maximumf %36, %53 : vector<64x8xf32>
    %55 = vector.extract_strided_slice %1 {offsets = [0, 3, 0], sizes = [8, 1, 8], strides = [1, 1, 1]} : vector<8x16x8xbf16> to vector<8x1x8xbf16>
    %56 = vector.shape_cast %55 : vector<8x1x8xbf16> to vector<8x8xbf16>
    %c0_38 = arith.constant 0 : index
    %c0_39 = arith.constant 0 : index
    %57 = vector.load %arg3[%c0_38, %c0_39] : memref<16x8xbf16, #tpu.memory_space<vmem>>, vector<16x8xbf16>
    %c0_40 = arith.constant 0 : index
    %c0_41 = arith.constant 0 : index
    %58 = vector.load %arg4[%c0_40, %c0_41] : memref<16x1xf32, #tpu.memory_space<vmem>>, vector<16x1xf32>
    %cst_42 = arith.constant dense<0.000000e+00> : vector<16x8xf32>
    %59 = tpu.matmul %57, %56, %cst_42 {dimension_numbers = #tpu.dot_dimension_numbers<[1], [0], [0], [1], [0, 0, 1, 1], [], []>} : vector<16x8xbf16>, vector<8x8xbf16>, vector<16x8xf32> -> vector<16x8xf32>
    %60 = vector.broadcast %58 : vector<16x1xf32> to vector<16x8xf32>
    %61 = arith.addf %59, %60 : vector<16x8xf32>
    %cst_43 = arith.constant 0.000000e+00 : f32
    %62 = vector.broadcast %cst_43 : f32 to vector<16x8xf32>
    %63 = arith.maximumf %61, %62 : vector<16x8xf32>
    %64 = arith.truncf %63 : vector<16x8xf32> to vector<16x8xbf16>
    %c0_44 = arith.constant 0 : index
    %c0_45 = arith.constant 0 : index
    %65 = vector.load %arg5[%c0_44, %c0_45] : memref<64x16xbf16, #tpu.memory_space<vmem>>, vector<64x16xbf16>
    %c0_46 = arith.constant 0 : index
    %c0_47 = arith.constant 0 : index
    %66 = vector.load %arg6[%c0_46, %c0_47] : memref<64x1xf32, #tpu.memory_space<vmem>>, vector<64x1xf32>
    %cst_48 = arith.constant dense<0.000000e+00> : vector<64x8xf32>
    %67 = tpu.matmul %65, %64, %cst_48 {dimension_numbers = #tpu.dot_dimension_numbers<[1], [0], [0], [1], [0, 0, 1, 1], [], []>} : vector<64x16xbf16>, vector<16x8xbf16>, vector<64x8xf32> -> vector<64x8xf32>
    %68 = vector.broadcast %66 : vector<64x1xf32> to vector<64x8xf32>
    %69 = arith.addf %67, %68 : vector<64x8xf32>
    %cst_49 = arith.constant 0.000000e+00 : f32
    %70 = vector.broadcast %cst_49 : f32 to vector<64x8xf32>
    %71 = arith.maximumf %69, %70 : vector<64x8xf32>
    %72 = arith.maximumf %54, %71 : vector<64x8xf32>
    %73 = vector.extract_strided_slice %1 {offsets = [0, 4, 0], sizes = [8, 1, 8], strides = [1, 1, 1]} : vector<8x16x8xbf16> to vector<8x1x8xbf16>
    %74 = vector.shape_cast %73 : vector<8x1x8xbf16> to vector<8x8xbf16>
    %c0_50 = arith.constant 0 : index
    %c0_51 = arith.constant 0 : index
    %75 = vector.load %arg3[%c0_50, %c0_51] : memref<16x8xbf16, #tpu.memory_space<vmem>>, vector<16x8xbf16>
    %c0_52 = arith.constant 0 : index
    %c0_53 = arith.constant 0 : index
    %76 = vector.load %arg4[%c0_52, %c0_53] : memref<16x1xf32, #tpu.memory_space<vmem>>, vector<16x1xf32>
    %cst_54 = arith.constant dense<0.000000e+00> : vector<16x8xf32>
    %77 = tpu.matmul %75, %74, %cst_54 {dimension_numbers = #tpu.dot_dimension_numbers<[1], [0], [0], [1], [0, 0, 1, 1], [], []>} : vector<16x8xbf16>, vector<8x8xbf16>, vector<16x8xf32> -> vector<16x8xf32>
    %78 = vector.broadcast %76 : vector<16x1xf32> to vector<16x8xf32>
    %79 = arith.addf %77, %78 : vector<16x8xf32>
    %cst_55 = arith.constant 0.000000e+00 : f32
    %80 = vector.broadcast %cst_55 : f32 to vector<16x8xf32>
    %81 = arith.maximumf %79, %80 : vector<16x8xf32>
    %82 = arith.truncf %81 : vector<16x8xf32> to vector<16x8xbf16>
    %c0_56 = arith.constant 0 : index
    %c0_57 = arith.constant 0 : index
    %83 = vector.load %arg5[%c0_56, %c0_57] : memref<64x16xbf16, #tpu.memory_space<vmem>>, vector<64x16xbf16>
    %c0_58 = arith.constant 0 : index
    %c0_59 = arith.constant 0 : index
    %84 = vector.load %arg6[%c0_58, %c0_59] : memref<64x1xf32, #tpu.memory_space<vmem>>, vector<64x1xf32>
    %cst_60 = arith.constant dense<0.000000e+00> : vector<64x8xf32>
    %85 = tpu.matmul %83, %82, %cst_60 {dimension_numbers = #tpu.dot_dimension_numbers<[1], [0], [0], [1], [0, 0, 1, 1], [], []>} : vector<64x16xbf16>, vector<16x8xbf16>, vector<64x8xf32> -> vector<64x8xf32>
    %86 = vector.broadcast %84 : vector<64x1xf32> to vector<64x8xf32>
    %87 = arith.addf %85, %86 : vector<64x8xf32>
    %cst_61 = arith.constant 0.000000e+00 : f32
    %88 = vector.broadcast %cst_61 : f32 to vector<64x8xf32>
    %89 = arith.maximumf %87, %88 : vector<64x8xf32>
    %90 = arith.maximumf %72, %89 : vector<64x8xf32>
    %91 = vector.extract_strided_slice %1 {offsets = [0, 5, 0], sizes = [8, 1, 8], strides = [1, 1, 1]} : vector<8x16x8xbf16> to vector<8x1x8xbf16>
    %92 = vector.shape_cast %91 : vector<8x1x8xbf16> to vector<8x8xbf16>
    %c0_62 = arith.constant 0 : index
    %c0_63 = arith.constant 0 : index
    %93 = vector.load %arg3[%c0_62, %c0_63] : memref<16x8xbf16, #tpu.memory_space<vmem>>, vector<16x8xbf16>
    %c0_64 = arith.constant 0 : index
    %c0_65 = arith.constant 0 : index
    %94 = vector.load %arg4[%c0_64, %c0_65] : memref<16x1xf32, #tpu.memory_space<vmem>>, vector<16x1xf32>
    %cst_66 = arith.constant dense<0.000000e+00> : vector<16x8xf32>
    %95 = tpu.matmul %93, %92, %cst_66 {dimension_numbers = #tpu.dot_dimension_numbers<[1], [0], [0], [1], [0, 0, 1, 1], [], []>} : vector<16x8xbf16>, vector<8x8xbf16>, vector<16x8xf32> -> vector<16x8xf32>
    %96 = vector.broadcast %94 : vector<16x1xf32> to vector<16x8xf32>
    %97 = arith.addf %95, %96 : vector<16x8xf32>
    %cst_67 = arith.constant 0.000000e+00 : f32
    %98 = vector.broadcast %cst_67 : f32 to vector<16x8xf32>
    %99 = arith.maximumf %97, %98 : vector<16x8xf32>
    %100 = arith.truncf %99 : vector<16x8xf32> to vector<16x8xbf16>
    %c0_68 = arith.constant 0 : index
    %c0_69 = arith.constant 0 : index
    %101 = vector.load %arg5[%c0_68, %c0_69] : memref<64x16xbf16, #tpu.memory_space<vmem>>, vector<64x16xbf16>
    %c0_70 = arith.constant 0 : index
    %c0_71 = arith.constant 0 : index
    %102 = vector.load %arg6[%c0_70, %c0_71] : memref<64x1xf32, #tpu.memory_space<vmem>>, vector<64x1xf32>
    %cst_72 = arith.constant dense<0.000000e+00> : vector<64x8xf32>
    %103 = tpu.matmul %101, %100, %cst_72 {dimension_numbers = #tpu.dot_dimension_numbers<[1], [0], [0], [1], [0, 0, 1, 1], [], []>} : vector<64x16xbf16>, vector<16x8xbf16>, vector<64x8xf32> -> vector<64x8xf32>
    %104 = vector.broadcast %102 : vector<64x1xf32> to vector<64x8xf32>
    %105 = arith.addf %103, %104 : vector<64x8xf32>
    %cst_73 = arith.constant 0.000000e+00 : f32
    %106 = vector.broadcast %cst_73 : f32 to vector<64x8xf32>
    %107 = arith.maximumf %105, %106 : vector<64x8xf32>
    %108 = arith.maximumf %90, %107 : vector<64x8xf32>
    %109 = vector.extract_strided_slice %1 {offsets = [0, 6, 0], sizes = [8, 1, 8], strides = [1, 1, 1]} : vector<8x16x8xbf16> to vector<8x1x8xbf16>
    %110 = vector.shape_cast %109 : vector<8x1x8xbf16> to vector<8x8xbf16>
    %c0_74 = arith.constant 0 : index
    %c0_75 = arith.constant 0 : index
    %111 = vector.load %arg3[%c0_74, %c0_75] : memref<16x8xbf16, #tpu.memory_space<vmem>>, vector<16x8xbf16>
    %c0_76 = arith.constant 0 : index
    %c0_77 = arith.constant 0 : index
    %112 = vector.load %arg4[%c0_76, %c0_77] : memref<16x1xf32, #tpu.memory_space<vmem>>, vector<16x1xf32>
    %cst_78 = arith.constant dense<0.000000e+00> : vector<16x8xf32>
    %113 = tpu.matmul %111, %110, %cst_78 {dimension_numbers = #tpu.dot_dimension_numbers<[1], [0], [0], [1], [0, 0, 1, 1], [], []>} : vector<16x8xbf16>, vector<8x8xbf16>, vector<16x8xf32> -> vector<16x8xf32>
    %114 = vector.broadcast %112 : vector<16x1xf32> to vector<16x8xf32>
    %115 = arith.addf %113, %114 : vector<16x8xf32>
    %cst_79 = arith.constant 0.000000e+00 : f32
    %116 = vector.broadcast %cst_79 : f32 to vector<16x8xf32>
    %117 = arith.maximumf %115, %116 : vector<16x8xf32>
    %118 = arith.truncf %117 : vector<16x8xf32> to vector<16x8xbf16>
    %c0_80 = arith.constant 0 : index
    %c0_81 = arith.constant 0 : index
    %119 = vector.load %arg5[%c0_80, %c0_81] : memref<64x16xbf16, #tpu.memory_space<vmem>>, vector<64x16xbf16>
    %c0_82 = arith.constant 0 : index
    %c0_83 = arith.constant 0 : index
    %120 = vector.load %arg6[%c0_82, %c0_83] : memref<64x1xf32, #tpu.memory_space<vmem>>, vector<64x1xf32>
    %cst_84 = arith.constant dense<0.000000e+00> : vector<64x8xf32>
    %121 = tpu.matmul %119, %118, %cst_84 {dimension_numbers = #tpu.dot_dimension_numbers<[1], [0], [0], [1], [0, 0, 1, 1], [], []>} : vector<64x16xbf16>, vector<16x8xbf16>, vector<64x8xf32> -> vector<64x8xf32>
    %122 = vector.broadcast %120 : vector<64x1xf32> to vector<64x8xf32>
    %123 = arith.addf %121, %122 : vector<64x8xf32>
    %cst_85 = arith.constant 0.000000e+00 : f32
    %124 = vector.broadcast %cst_85 : f32 to vector<64x8xf32>
    %125 = arith.maximumf %123, %124 : vector<64x8xf32>
    %126 = arith.maximumf %108, %125 : vector<64x8xf32>
    %127 = vector.extract_strided_slice %1 {offsets = [0, 7, 0], sizes = [8, 1, 8], strides = [1, 1, 1]} : vector<8x16x8xbf16> to vector<8x1x8xbf16>
    %128 = vector.shape_cast %127 : vector<8x1x8xbf16> to vector<8x8xbf16>
    %c0_86 = arith.constant 0 : index
    %c0_87 = arith.constant 0 : index
    %129 = vector.load %arg3[%c0_86, %c0_87] : memref<16x8xbf16, #tpu.memory_space<vmem>>, vector<16x8xbf16>
    %c0_88 = arith.constant 0 : index
    %c0_89 = arith.constant 0 : index
    %130 = vector.load %arg4[%c0_88, %c0_89] : memref<16x1xf32, #tpu.memory_space<vmem>>, vector<16x1xf32>
    %cst_90 = arith.constant dense<0.000000e+00> : vector<16x8xf32>
    %131 = tpu.matmul %129, %128, %cst_90 {dimension_numbers = #tpu.dot_dimension_numbers<[1], [0], [0], [1], [0, 0, 1, 1], [], []>} : vector<16x8xbf16>, vector<8x8xbf16>, vector<16x8xf32> -> vector<16x8xf32>
    %132 = vector.broadcast %130 : vector<16x1xf32> to vector<16x8xf32>
    %133 = arith.addf %131, %132 : vector<16x8xf32>
    %cst_91 = arith.constant 0.000000e+00 : f32
    %134 = vector.broadcast %cst_91 : f32 to vector<16x8xf32>
    %135 = arith.maximumf %133, %134 : vector<16x8xf32>
    %136 = arith.truncf %135 : vector<16x8xf32> to vector<16x8xbf16>
    %c0_92 = arith.constant 0 : index
    %c0_93 = arith.constant 0 : index
    %137 = vector.load %arg5[%c0_92, %c0_93] : memref<64x16xbf16, #tpu.memory_space<vmem>>, vector<64x16xbf16>
    %c0_94 = arith.constant 0 : index
    %c0_95 = arith.constant 0 : index
    %138 = vector.load %arg6[%c0_94, %c0_95] : memref<64x1xf32, #tpu.memory_space<vmem>>, vector<64x1xf32>
    %cst_96 = arith.constant dense<0.000000e+00> : vector<64x8xf32>
    %139 = tpu.matmul %137, %136, %cst_96 {dimension_numbers = #tpu.dot_dimension_numbers<[1], [0], [0], [1], [0, 0, 1, 1], [], []>} : vector<64x16xbf16>, vector<16x8xbf16>, vector<64x8xf32> -> vector<64x8xf32>
    %140 = vector.broadcast %138 : vector<64x1xf32> to vector<64x8xf32>
    %141 = arith.addf %139, %140 : vector<64x8xf32>
    %cst_97 = arith.constant 0.000000e+00 : f32
    %142 = vector.broadcast %cst_97 : f32 to vector<64x8xf32>
    %143 = arith.maximumf %141, %142 : vector<64x8xf32>
    %144 = arith.maximumf %126, %143 : vector<64x8xf32>
    %145 = vector.extract_strided_slice %1 {offsets = [0, 8, 0], sizes = [8, 1, 8], strides = [1, 1, 1]} : vector<8x16x8xbf16> to vector<8x1x8xbf16>
    %146 = vector.shape_cast %145 : vector<8x1x8xbf16> to vector<8x8xbf16>
    %c0_98 = arith.constant 0 : index
    %c0_99 = arith.constant 0 : index
    %147 = vector.load %arg3[%c0_98, %c0_99] : memref<16x8xbf16, #tpu.memory_space<vmem>>, vector<16x8xbf16>
    %c0_100 = arith.constant 0 : index
    %c0_101 = arith.constant 0 : index
    %148 = vector.load %arg4[%c0_100, %c0_101] : memref<16x1xf32, #tpu.memory_space<vmem>>, vector<16x1xf32>
    %cst_102 = arith.constant dense<0.000000e+00> : vector<16x8xf32>
    %149 = tpu.matmul %147, %146, %cst_102 {dimension_numbers = #tpu.dot_dimension_numbers<[1], [0], [0], [1], [0, 0, 1, 1], [], []>} : vector<16x8xbf16>, vector<8x8xbf16>, vector<16x8xf32> -> vector<16x8xf32>
    %150 = vector.broadcast %148 : vector<16x1xf32> to vector<16x8xf32>
    %151 = arith.addf %149, %150 : vector<16x8xf32>
    %cst_103 = arith.constant 0.000000e+00 : f32
    %152 = vector.broadcast %cst_103 : f32 to vector<16x8xf32>
    %153 = arith.maximumf %151, %152 : vector<16x8xf32>
    %154 = arith.truncf %153 : vector<16x8xf32> to vector<16x8xbf16>
    %c0_104 = arith.constant 0 : index
    %c0_105 = arith.constant 0 : index
    %155 = vector.load %arg5[%c0_104, %c0_105] : memref<64x16xbf16, #tpu.memory_space<vmem>>, vector<64x16xbf16>
    %c0_106 = arith.constant 0 : index
    %c0_107 = arith.constant 0 : index
    %156 = vector.load %arg6[%c0_106, %c0_107] : memref<64x1xf32, #tpu.memory_space<vmem>>, vector<64x1xf32>
    %cst_108 = arith.constant dense<0.000000e+00> : vector<64x8xf32>
    %157 = tpu.matmul %155, %154, %cst_108 {dimension_numbers = #tpu.dot_dimension_numbers<[1], [0], [0], [1], [0, 0, 1, 1], [], []>} : vector<64x16xbf16>, vector<16x8xbf16>, vector<64x8xf32> -> vector<64x8xf32>
    %158 = vector.broadcast %156 : vector<64x1xf32> to vector<64x8xf32>
    %159 = arith.addf %157, %158 : vector<64x8xf32>
    %cst_109 = arith.constant 0.000000e+00 : f32
    %160 = vector.broadcast %cst_109 : f32 to vector<64x8xf32>
    %161 = arith.maximumf %159, %160 : vector<64x8xf32>
    %162 = arith.maximumf %144, %161 : vector<64x8xf32>
    %163 = vector.extract_strided_slice %1 {offsets = [0, 9, 0], sizes = [8, 1, 8], strides = [1, 1, 1]} : vector<8x16x8xbf16> to vector<8x1x8xbf16>
    %164 = vector.shape_cast %163 : vector<8x1x8xbf16> to vector<8x8xbf16>
    %c0_110 = arith.constant 0 : index
    %c0_111 = arith.constant 0 : index
    %165 = vector.load %arg3[%c0_110, %c0_111] : memref<16x8xbf16, #tpu.memory_space<vmem>>, vector<16x8xbf16>
    %c0_112 = arith.constant 0 : index
    %c0_113 = arith.constant 0 : index
    %166 = vector.load %arg4[%c0_112, %c0_113] : memref<16x1xf32, #tpu.memory_space<vmem>>, vector<16x1xf32>
    %cst_114 = arith.constant dense<0.000000e+00> : vector<16x8xf32>
    %167 = tpu.matmul %165, %164, %cst_114 {dimension_numbers = #tpu.dot_dimension_numbers<[1], [0], [0], [1], [0, 0, 1, 1], [], []>} : vector<16x8xbf16>, vector<8x8xbf16>, vector<16x8xf32> -> vector<16x8xf32>
    %168 = vector.broadcast %166 : vector<16x1xf32> to vector<16x8xf32>
    %169 = arith.addf %167, %168 : vector<16x8xf32>
    %cst_115 = arith.constant 0.000000e+00 : f32
    %170 = vector.broadcast %cst_115 : f32 to vector<16x8xf32>
    %171 = arith.maximumf %169, %170 : vector<16x8xf32>
    %172 = arith.truncf %171 : vector<16x8xf32> to vector<16x8xbf16>
    %c0_116 = arith.constant 0 : index
    %c0_117 = arith.constant 0 : index
    %173 = vector.load %arg5[%c0_116, %c0_117] : memref<64x16xbf16, #tpu.memory_space<vmem>>, vector<64x16xbf16>
    %c0_118 = arith.constant 0 : index
    %c0_119 = arith.constant 0 : index
    %174 = vector.load %arg6[%c0_118, %c0_119] : memref<64x1xf32, #tpu.memory_space<vmem>>, vector<64x1xf32>
    %cst_120 = arith.constant dense<0.000000e+00> : vector<64x8xf32>
    %175 = tpu.matmul %173, %172, %cst_120 {dimension_numbers = #tpu.dot_dimension_numbers<[1], [0], [0], [1], [0, 0, 1, 1], [], []>} : vector<64x16xbf16>, vector<16x8xbf16>, vector<64x8xf32> -> vector<64x8xf32>
    %176 = vector.broadcast %174 : vector<64x1xf32> to vector<64x8xf32>
    %177 = arith.addf %175, %176 : vector<64x8xf32>
    %cst_121 = arith.constant 0.000000e+00 : f32
    %178 = vector.broadcast %cst_121 : f32 to vector<64x8xf32>
    %179 = arith.maximumf %177, %178 : vector<64x8xf32>
    %180 = arith.maximumf %162, %179 : vector<64x8xf32>
    %181 = vector.extract_strided_slice %1 {offsets = [0, 10, 0], sizes = [8, 1, 8], strides = [1, 1, 1]} : vector<8x16x8xbf16> to vector<8x1x8xbf16>
    %182 = vector.shape_cast %181 : vector<8x1x8xbf16> to vector<8x8xbf16>
    %c0_122 = arith.constant 0 : index
    %c0_123 = arith.constant 0 : index
    %183 = vector.load %arg3[%c0_122, %c0_123] : memref<16x8xbf16, #tpu.memory_space<vmem>>, vector<16x8xbf16>
    %c0_124 = arith.constant 0 : index
    %c0_125 = arith.constant 0 : index
    %184 = vector.load %arg4[%c0_124, %c0_125] : memref<16x1xf32, #tpu.memory_space<vmem>>, vector<16x1xf32>
    %cst_126 = arith.constant dense<0.000000e+00> : vector<16x8xf32>
    %185 = tpu.matmul %183, %182, %cst_126 {dimension_numbers = #tpu.dot_dimension_numbers<[1], [0], [0], [1], [0, 0, 1, 1], [], []>} : vector<16x8xbf16>, vector<8x8xbf16>, vector<16x8xf32> -> vector<16x8xf32>
    %186 = vector.broadcast %184 : vector<16x1xf32> to vector<16x8xf32>
    %187 = arith.addf %185, %186 : vector<16x8xf32>
    %cst_127 = arith.constant 0.000000e+00 : f32
    %188 = vector.broadcast %cst_127 : f32 to vector<16x8xf32>
    %189 = arith.maximumf %187, %188 : vector<16x8xf32>
    %190 = arith.truncf %189 : vector<16x8xf32> to vector<16x8xbf16>
    %c0_128 = arith.constant 0 : index
    %c0_129 = arith.constant 0 : index
    %191 = vector.load %arg5[%c0_128, %c0_129] : memref<64x16xbf16, #tpu.memory_space<vmem>>, vector<64x16xbf16>
    %c0_130 = arith.constant 0 : index
    %c0_131 = arith.constant 0 : index
    %192 = vector.load %arg6[%c0_130, %c0_131] : memref<64x1xf32, #tpu.memory_space<vmem>>, vector<64x1xf32>
    %cst_132 = arith.constant dense<0.000000e+00> : vector<64x8xf32>
    %193 = tpu.matmul %191, %190, %cst_132 {dimension_numbers = #tpu.dot_dimension_numbers<[1], [0], [0], [1], [0, 0, 1, 1], [], []>} : vector<64x16xbf16>, vector<16x8xbf16>, vector<64x8xf32> -> vector<64x8xf32>
    %194 = vector.broadcast %192 : vector<64x1xf32> to vector<64x8xf32>
    %195 = arith.addf %193, %194 : vector<64x8xf32>
    %cst_133 = arith.constant 0.000000e+00 : f32
    %196 = vector.broadcast %cst_133 : f32 to vector<64x8xf32>
    %197 = arith.maximumf %195, %196 : vector<64x8xf32>
    %198 = arith.maximumf %180, %197 : vector<64x8xf32>
    %199 = vector.extract_strided_slice %1 {offsets = [0, 11, 0], sizes = [8, 1, 8], strides = [1, 1, 1]} : vector<8x16x8xbf16> to vector<8x1x8xbf16>
    %200 = vector.shape_cast %199 : vector<8x1x8xbf16> to vector<8x8xbf16>
    %c0_134 = arith.constant 0 : index
    %c0_135 = arith.constant 0 : index
    %201 = vector.load %arg3[%c0_134, %c0_135] : memref<16x8xbf16, #tpu.memory_space<vmem>>, vector<16x8xbf16>
    %c0_136 = arith.constant 0 : index
    %c0_137 = arith.constant 0 : index
    %202 = vector.load %arg4[%c0_136, %c0_137] : memref<16x1xf32, #tpu.memory_space<vmem>>, vector<16x1xf32>
    %cst_138 = arith.constant dense<0.000000e+00> : vector<16x8xf32>
    %203 = tpu.matmul %201, %200, %cst_138 {dimension_numbers = #tpu.dot_dimension_numbers<[1], [0], [0], [1], [0, 0, 1, 1], [], []>} : vector<16x8xbf16>, vector<8x8xbf16>, vector<16x8xf32> -> vector<16x8xf32>
    %204 = vector.broadcast %202 : vector<16x1xf32> to vector<16x8xf32>
    %205 = arith.addf %203, %204 : vector<16x8xf32>
    %cst_139 = arith.constant 0.000000e+00 : f32
    %206 = vector.broadcast %cst_139 : f32 to vector<16x8xf32>
    %207 = arith.maximumf %205, %206 : vector<16x8xf32>
    %208 = arith.truncf %207 : vector<16x8xf32> to vector<16x8xbf16>
    %c0_140 = arith.constant 0 : index
    %c0_141 = arith.constant 0 : index
    %209 = vector.load %arg5[%c0_140, %c0_141] : memref<64x16xbf16, #tpu.memory_space<vmem>>, vector<64x16xbf16>
    %c0_142 = arith.constant 0 : index
    %c0_143 = arith.constant 0 : index
    %210 = vector.load %arg6[%c0_142, %c0_143] : memref<64x1xf32, #tpu.memory_space<vmem>>, vector<64x1xf32>
    %cst_144 = arith.constant dense<0.000000e+00> : vector<64x8xf32>
    %211 = tpu.matmul %209, %208, %cst_144 {dimension_numbers = #tpu.dot_dimension_numbers<[1], [0], [0], [1], [0, 0, 1, 1], [], []>} : vector<64x16xbf16>, vector<16x8xbf16>, vector<64x8xf32> -> vector<64x8xf32>
    %212 = vector.broadcast %210 : vector<64x1xf32> to vector<64x8xf32>
    %213 = arith.addf %211, %212 : vector<64x8xf32>
    %cst_145 = arith.constant 0.000000e+00 : f32
    %214 = vector.broadcast %cst_145 : f32 to vector<64x8xf32>
    %215 = arith.maximumf %213, %214 : vector<64x8xf32>
    %216 = arith.maximumf %198, %215 : vector<64x8xf32>
    %217 = vector.extract_strided_slice %1 {offsets = [0, 12, 0], sizes = [8, 1, 8], strides = [1, 1, 1]} : vector<8x16x8xbf16> to vector<8x1x8xbf16>
    %218 = vector.shape_cast %217 : vector<8x1x8xbf16> to vector<8x8xbf16>
    %c0_146 = arith.constant 0 : index
    %c0_147 = arith.constant 0 : index
    %219 = vector.load %arg3[%c0_146, %c0_147] : memref<16x8xbf16, #tpu.memory_space<vmem>>, vector<16x8xbf16>
    %c0_148 = arith.constant 0 : index
    %c0_149 = arith.constant 0 : index
    %220 = vector.load %arg4[%c0_148, %c0_149] : memref<16x1xf32, #tpu.memory_space<vmem>>, vector<16x1xf32>
    %cst_150 = arith.constant dense<0.000000e+00> : vector<16x8xf32>
    %221 = tpu.matmul %219, %218, %cst_150 {dimension_numbers = #tpu.dot_dimension_numbers<[1], [0], [0], [1], [0, 0, 1, 1], [], []>} : vector<16x8xbf16>, vector<8x8xbf16>, vector<16x8xf32> -> vector<16x8xf32>
    %222 = vector.broadcast %220 : vector<16x1xf32> to vector<16x8xf32>
    %223 = arith.addf %221, %222 : vector<16x8xf32>
    %cst_151 = arith.constant 0.000000e+00 : f32
    %224 = vector.broadcast %cst_151 : f32 to vector<16x8xf32>
    %225 = arith.maximumf %223, %224 : vector<16x8xf32>
    %226 = arith.truncf %225 : vector<16x8xf32> to vector<16x8xbf16>
    %c0_152 = arith.constant 0 : index
    %c0_153 = arith.constant 0 : index
    %227 = vector.load %arg5[%c0_152, %c0_153] : memref<64x16xbf16, #tpu.memory_space<vmem>>, vector<64x16xbf16>
    %c0_154 = arith.constant 0 : index
    %c0_155 = arith.constant 0 : index
    %228 = vector.load %arg6[%c0_154, %c0_155] : memref<64x1xf32, #tpu.memory_space<vmem>>, vector<64x1xf32>
    %cst_156 = arith.constant dense<0.000000e+00> : vector<64x8xf32>
    %229 = tpu.matmul %227, %226, %cst_156 {dimension_numbers = #tpu.dot_dimension_numbers<[1], [0], [0], [1], [0, 0, 1, 1], [], []>} : vector<64x16xbf16>, vector<16x8xbf16>, vector<64x8xf32> -> vector<64x8xf32>
    %230 = vector.broadcast %228 : vector<64x1xf32> to vector<64x8xf32>
    %231 = arith.addf %229, %230 : vector<64x8xf32>
    %cst_157 = arith.constant 0.000000e+00 : f32
    %232 = vector.broadcast %cst_157 : f32 to vector<64x8xf32>
    %233 = arith.maximumf %231, %232 : vector<64x8xf32>
    %234 = arith.maximumf %216, %233 : vector<64x8xf32>
    %235 = vector.extract_strided_slice %1 {offsets = [0, 13, 0], sizes = [8, 1, 8], strides = [1, 1, 1]} : vector<8x16x8xbf16> to vector<8x1x8xbf16>
    %236 = vector.shape_cast %235 : vector<8x1x8xbf16> to vector<8x8xbf16>
    %c0_158 = arith.constant 0 : index
    %c0_159 = arith.constant 0 : index
    %237 = vector.load %arg3[%c0_158, %c0_159] : memref<16x8xbf16, #tpu.memory_space<vmem>>, vector<16x8xbf16>
    %c0_160 = arith.constant 0 : index
    %c0_161 = arith.constant 0 : index
    %238 = vector.load %arg4[%c0_160, %c0_161] : memref<16x1xf32, #tpu.memory_space<vmem>>, vector<16x1xf32>
    %cst_162 = arith.constant dense<0.000000e+00> : vector<16x8xf32>
    %239 = tpu.matmul %237, %236, %cst_162 {dimension_numbers = #tpu.dot_dimension_numbers<[1], [0], [0], [1], [0, 0, 1, 1], [], []>} : vector<16x8xbf16>, vector<8x8xbf16>, vector<16x8xf32> -> vector<16x8xf32>
    %240 = vector.broadcast %238 : vector<16x1xf32> to vector<16x8xf32>
    %241 = arith.addf %239, %240 : vector<16x8xf32>
    %cst_163 = arith.constant 0.000000e+00 : f32
    %242 = vector.broadcast %cst_163 : f32 to vector<16x8xf32>
    %243 = arith.maximumf %241, %242 : vector<16x8xf32>
    %244 = arith.truncf %243 : vector<16x8xf32> to vector<16x8xbf16>
    %c0_164 = arith.constant 0 : index
    %c0_165 = arith.constant 0 : index
    %245 = vector.load %arg5[%c0_164, %c0_165] : memref<64x16xbf16, #tpu.memory_space<vmem>>, vector<64x16xbf16>
    %c0_166 = arith.constant 0 : index
    %c0_167 = arith.constant 0 : index
    %246 = vector.load %arg6[%c0_166, %c0_167] : memref<64x1xf32, #tpu.memory_space<vmem>>, vector<64x1xf32>
    %cst_168 = arith.constant dense<0.000000e+00> : vector<64x8xf32>
    %247 = tpu.matmul %245, %244, %cst_168 {dimension_numbers = #tpu.dot_dimension_numbers<[1], [0], [0], [1], [0, 0, 1, 1], [], []>} : vector<64x16xbf16>, vector<16x8xbf16>, vector<64x8xf32> -> vector<64x8xf32>
    %248 = vector.broadcast %246 : vector<64x1xf32> to vector<64x8xf32>
    %249 = arith.addf %247, %248 : vector<64x8xf32>
    %cst_169 = arith.constant 0.000000e+00 : f32
    %250 = vector.broadcast %cst_169 : f32 to vector<64x8xf32>
    %251 = arith.maximumf %249, %250 : vector<64x8xf32>
    %252 = arith.maximumf %234, %251 : vector<64x8xf32>
    %253 = vector.extract_strided_slice %1 {offsets = [0, 14, 0], sizes = [8, 1, 8], strides = [1, 1, 1]} : vector<8x16x8xbf16> to vector<8x1x8xbf16>
    %254 = vector.shape_cast %253 : vector<8x1x8xbf16> to vector<8x8xbf16>
    %c0_170 = arith.constant 0 : index
    %c0_171 = arith.constant 0 : index
    %255 = vector.load %arg3[%c0_170, %c0_171] : memref<16x8xbf16, #tpu.memory_space<vmem>>, vector<16x8xbf16>
    %c0_172 = arith.constant 0 : index
    %c0_173 = arith.constant 0 : index
    %256 = vector.load %arg4[%c0_172, %c0_173] : memref<16x1xf32, #tpu.memory_space<vmem>>, vector<16x1xf32>
    %cst_174 = arith.constant dense<0.000000e+00> : vector<16x8xf32>
    %257 = tpu.matmul %255, %254, %cst_174 {dimension_numbers = #tpu.dot_dimension_numbers<[1], [0], [0], [1], [0, 0, 1, 1], [], []>} : vector<16x8xbf16>, vector<8x8xbf16>, vector<16x8xf32> -> vector<16x8xf32>
    %258 = vector.broadcast %256 : vector<16x1xf32> to vector<16x8xf32>
    %259 = arith.addf %257, %258 : vector<16x8xf32>
    %cst_175 = arith.constant 0.000000e+00 : f32
    %260 = vector.broadcast %cst_175 : f32 to vector<16x8xf32>
    %261 = arith.maximumf %259, %260 : vector<16x8xf32>
    %262 = arith.truncf %261 : vector<16x8xf32> to vector<16x8xbf16>
    %c0_176 = arith.constant 0 : index
    %c0_177 = arith.constant 0 : index
    %263 = vector.load %arg5[%c0_176, %c0_177] : memref<64x16xbf16, #tpu.memory_space<vmem>>, vector<64x16xbf16>
    %c0_178 = arith.constant 0 : index
    %c0_179 = arith.constant 0 : index
    %264 = vector.load %arg6[%c0_178, %c0_179] : memref<64x1xf32, #tpu.memory_space<vmem>>, vector<64x1xf32>
    %cst_180 = arith.constant dense<0.000000e+00> : vector<64x8xf32>
    %265 = tpu.matmul %263, %262, %cst_180 {dimension_numbers = #tpu.dot_dimension_numbers<[1], [0], [0], [1], [0, 0, 1, 1], [], []>} : vector<64x16xbf16>, vector<16x8xbf16>, vector<64x8xf32> -> vector<64x8xf32>
    %266 = vector.broadcast %264 : vector<64x1xf32> to vector<64x8xf32>
    %267 = arith.addf %265, %266 : vector<64x8xf32>
    %cst_181 = arith.constant 0.000000e+00 : f32
    %268 = vector.broadcast %cst_181 : f32 to vector<64x8xf32>
    %269 = arith.maximumf %267, %268 : vector<64x8xf32>
    %270 = arith.maximumf %252, %269 : vector<64x8xf32>
    %271 = vector.extract_strided_slice %1 {offsets = [0, 15, 0], sizes = [8, 1, 8], strides = [1, 1, 1]} : vector<8x16x8xbf16> to vector<8x1x8xbf16>
    %272 = vector.shape_cast %271 : vector<8x1x8xbf16> to vector<8x8xbf16>
    %c0_182 = arith.constant 0 : index
    %c0_183 = arith.constant 0 : index
    %273 = vector.load %arg3[%c0_182, %c0_183] : memref<16x8xbf16, #tpu.memory_space<vmem>>, vector<16x8xbf16>
    %c0_184 = arith.constant 0 : index
    %c0_185 = arith.constant 0 : index
    %274 = vector.load %arg4[%c0_184, %c0_185] : memref<16x1xf32, #tpu.memory_space<vmem>>, vector<16x1xf32>
    %cst_186 = arith.constant dense<0.000000e+00> : vector<16x8xf32>
    %275 = tpu.matmul %273, %272, %cst_186 {dimension_numbers = #tpu.dot_dimension_numbers<[1], [0], [0], [1], [0, 0, 1, 1], [], []>} : vector<16x8xbf16>, vector<8x8xbf16>, vector<16x8xf32> -> vector<16x8xf32>
    %276 = vector.broadcast %274 : vector<16x1xf32> to vector<16x8xf32>
    %277 = arith.addf %275, %276 : vector<16x8xf32>
    %cst_187 = arith.constant 0.000000e+00 : f32
    %278 = vector.broadcast %cst_187 : f32 to vector<16x8xf32>
    %279 = arith.maximumf %277, %278 : vector<16x8xf32>
    %280 = arith.truncf %279 : vector<16x8xf32> to vector<16x8xbf16>
    %c0_188 = arith.constant 0 : index
    %c0_189 = arith.constant 0 : index
    %281 = vector.load %arg5[%c0_188, %c0_189] : memref<64x16xbf16, #tpu.memory_space<vmem>>, vector<64x16xbf16>
    %c0_190 = arith.constant 0 : index
    %c0_191 = arith.constant 0 : index
    %282 = vector.load %arg6[%c0_190, %c0_191] : memref<64x1xf32, #tpu.memory_space<vmem>>, vector<64x1xf32>
    %cst_192 = arith.constant dense<0.000000e+00> : vector<64x8xf32>
    %283 = tpu.matmul %281, %280, %cst_192 {dimension_numbers = #tpu.dot_dimension_numbers<[1], [0], [0], [1], [0, 0, 1, 1], [], []>} : vector<64x16xbf16>, vector<16x8xbf16>, vector<64x8xf32> -> vector<64x8xf32>
    %284 = vector.broadcast %282 : vector<64x1xf32> to vector<64x8xf32>
    %285 = arith.addf %283, %284 : vector<64x8xf32>
    %cst_193 = arith.constant 0.000000e+00 : f32
    %286 = vector.broadcast %cst_193 : f32 to vector<64x8xf32>
    %287 = arith.maximumf %285, %286 : vector<64x8xf32>
    %288 = arith.maximumf %270, %287 : vector<64x8xf32>
    %c0_194 = arith.constant 0 : index
    %c0_195 = arith.constant 0 : index
    %c0_196 = arith.constant 0 : index
    %289 = vector.load %arg7[%c0_194, %c0_195, %c0_196] : memref<1x64x8xf32, #tpu.memory_space<vmem>>, vector<1x64x8xf32>
    %290 = vector.shape_cast %289 : vector<1x64x8xf32> to vector<64x8xf32>
    %291 = vector.shape_cast %288 : vector<64x8xf32> to vector<1x64x8xf32>
    tpu.vector_store %arg7[%c0_194, %c0_195, %c0_196], %291 {strides = array<i32>} : memref<1x64x8xf32, #tpu.memory_space<vmem>>, vector<1x64x8xf32>,
    return
  }
  func.func @transform_0(%arg0: i32, %arg1: i32) -> (i32, i32, i32, i32) {
    %c0_i32 = arith.constant 0 : i32
    %c0_i32_0 = arith.constant 0 : i32
    %c0_i32_1 = arith.constant 0 : i32
    return %arg0, %c0_i32, %c0_i32_0, %arg1 : i32, i32, i32, i32
  }
  func.func @transform_1(%arg0: i32, %arg1: i32) -> (i32, i32) {
    %c0_i32 = arith.constant 0 : i32
    %c0_i32_0 = arith.constant 0 : i32
    %c0_i32_1 = arith.constant 0 : i32
    return %c0_i32, %c0_i32_0 : i32, i32
  }
  func.func @transform_2(%arg0: i32, %arg1: i32) -> (i32, i32) {
    %c0_i32 = arith.constant 0 : i32
    %c0_i32_0 = arith.constant 0 : i32
    %c0_i32_1 = arith.constant 0 : i32
    return %c0_i32, %c0_i32_0 : i32, i32
  }
  func.func @transform_3(%arg0: i32, %arg1: i32) -> (i32, i32) {
    %c0_i32 = arith.constant 0 : i32
    %c0_i32_0 = arith.constant 0 : i32
    %c0_i32_1 = arith.constant 0 : i32
    return %c0_i32, %c0_i32_0 : i32, i32
  }
  func.func @transform_4(%arg0: i32, %arg1: i32) -> (i32, i32) {
    %c0_i32 = arith.constant 0 : i32
    %c0_i32_0 = arith.constant 0 : i32
    %c0_i32_1 = arith.constant 0 : i32
    return %c0_i32, %c0_i32_0 : i32, i32
  }
  func.func @transform_5(%arg0: i32, %arg1: i32) -> (i32, i32, i32) {
    %c0_i32 = arith.constant 0 : i32
    %c0_i32_0 = arith.constant 0 : i32
    return %arg0, %c0_i32, %arg1 : i32, i32, i32
  }
}

module attributes {stable_mosaic.version = 11 : i64} {
  func.func @kernel(%arg0: i32, %arg1: i32, %arg2: memref<1x8x8x8xbf16, #tpu.memory_space<vmem>>, %arg3: memref<16x8xbf16, #tpu.memory_space<vmem>>, %arg4: memref<16x1xf32, #tpu.memory_space<vmem>>, %arg5: memref<32x16xbf16, #tpu.memory_space<vmem>>, %arg6: memref<32x1xf32, #tpu.memory_space<vmem>>, %arg7: memref<1x32x8xf32, #tpu.memory_space<vmem>>) attributes {dimension_semantics = [#tpu.dimension_semantics<parallel>, #tpu.dimension_semantics<parallel>], iteration_bounds = array<i64: 2, 1>, scalar_prefetch = 0 : i64, scratch_operands = 0 : i64, tpu.core_type = #tpu.core_type<tc>, window_params = [{transform_indices = @transform_0, window_bounds = array<i64: 1, 8, 8, 8>}, {pipeline_mode = #tpu.pipeline_mode<synchronous>, transform_indices = @transform_1, window_bounds = array<i64: 16, 8>}, {pipeline_mode = #tpu.pipeline_mode<synchronous>, transform_indices = @transform_2, window_bounds = array<i64: 16, 1>}, {pipeline_mode = #tpu.pipeline_mode<synchronous>, transform_indices = @transform_3, window_bounds = array<i64: 32, 16>}, {pipeline_mode = #tpu.pipeline_mode<synchronous>, transform_indices = @transform_4, window_bounds = array<i64: 32, 1>}, {transform_indices = @transform_5, window_bounds = array<i64: 1, 32, 8>}]} {
    %c0 = arith.constant 0 : index
    %c0_0 = arith.constant 0 : index
    %c0_1 = arith.constant 0 : index
    %c0_2 = arith.constant 0 : index
    %0 = vector.load %arg2[%c0, %c0_0, %c0_1, %c0_2] : memref<1x8x8x8xbf16, #tpu.memory_space<vmem>>, vector<1x8x8x8xbf16>
    %1 = vector.shape_cast %0 : vector<1x8x8x8xbf16> to vector<8x8x8xbf16>
    %2 = vector.extract_strided_slice %1 {offsets = [0, 0, 0], sizes = [8, 1, 8], strides = [1, 1, 1]} : vector<8x8x8xbf16> to vector<8x1x8xbf16>
    %3 = vector.shape_cast %2 : vector<8x1x8xbf16> to vector<8x8xbf16>
    %c0_3 = arith.constant 0 : index
    %c0_4 = arith.constant 0 : index
    %4 = vector.load %arg3[%c0_3, %c0_4] : memref<16x8xbf16, #tpu.memory_space<vmem>>, vector<16x8xbf16>
    %c0_5 = arith.constant 0 : index
    %c0_6 = arith.constant 0 : index
    %5 = vector.load %arg4[%c0_5, %c0_6] : memref<16x1xf32, #tpu.memory_space<vmem>>, vector<16x1xf32>
    %cst = arith.constant dense<0.000000e+00> : vector<16x8xf32>
    %6 = tpu.matmul %4, %3, %cst {dimension_numbers = #tpu.dot_dimension_numbers<[1], [0], [0], [1], [0, 0, 1, 1], [], []>} : vector<16x8xbf16>, vector<8x8xbf16>, vector<16x8xf32> -> vector<16x8xf32>
    %7 = vector.broadcast %5 : vector<16x1xf32> to vector<16x8xf32>
    %8 = arith.addf %6, %7 : vector<16x8xf32>
    %cst_7 = arith.constant 0.000000e+00 : f32
    %9 = vector.broadcast %cst_7 : f32 to vector<16x8xf32>
    %10 = arith.maximumf %8, %9 : vector<16x8xf32>
    %11 = arith.truncf %10 : vector<16x8xf32> to vector<16x8xbf16>
    %c0_8 = arith.constant 0 : index
    %c0_9 = arith.constant 0 : index
    %12 = vector.load %arg5[%c0_8, %c0_9] : memref<32x16xbf16, #tpu.memory_space<vmem>>, vector<32x16xbf16>
    %c0_10 = arith.constant 0 : index
    %c0_11 = arith.constant 0 : index
    %13 = vector.load %arg6[%c0_10, %c0_11] : memref<32x1xf32, #tpu.memory_space<vmem>>, vector<32x1xf32>
    %cst_12 = arith.constant dense<0.000000e+00> : vector<32x8xf32>
    %14 = tpu.matmul %12, %11, %cst_12 {dimension_numbers = #tpu.dot_dimension_numbers<[1], [0], [0], [1], [0, 0, 1, 1], [], []>} : vector<32x16xbf16>, vector<16x8xbf16>, vector<32x8xf32> -> vector<32x8xf32>
    %15 = vector.broadcast %13 : vector<32x1xf32> to vector<32x8xf32>
    %16 = arith.addf %14, %15 : vector<32x8xf32>
    %cst_13 = arith.constant 0.000000e+00 : f32
    %17 = vector.broadcast %cst_13 : f32 to vector<32x8xf32>
    %18 = arith.maximumf %16, %17 : vector<32x8xf32>
    %19 = vector.extract_strided_slice %1 {offsets = [0, 1, 0], sizes = [8, 1, 8], strides = [1, 1, 1]} : vector<8x8x8xbf16> to vector<8x1x8xbf16>
    %20 = vector.shape_cast %19 : vector<8x1x8xbf16> to vector<8x8xbf16>
    %c0_14 = arith.constant 0 : index
    %c0_15 = arith.constant 0 : index
    %21 = vector.load %arg3[%c0_14, %c0_15] : memref<16x8xbf16, #tpu.memory_space<vmem>>, vector<16x8xbf16>
    %c0_16 = arith.constant 0 : index
    %c0_17 = arith.constant 0 : index
    %22 = vector.load %arg4[%c0_16, %c0_17] : memref<16x1xf32, #tpu.memory_space<vmem>>, vector<16x1xf32>
    %cst_18 = arith.constant dense<0.000000e+00> : vector<16x8xf32>
    %23 = tpu.matmul %21, %20, %cst_18 {dimension_numbers = #tpu.dot_dimension_numbers<[1], [0], [0], [1], [0, 0, 1, 1], [], []>} : vector<16x8xbf16>, vector<8x8xbf16>, vector<16x8xf32> -> vector<16x8xf32>
    %24 = vector.broadcast %22 : vector<16x1xf32> to vector<16x8xf32>
    %25 = arith.addf %23, %24 : vector<16x8xf32>
    %cst_19 = arith.constant 0.000000e+00 : f32
    %26 = vector.broadcast %cst_19 : f32 to vector<16x8xf32>
    %27 = arith.maximumf %25, %26 : vector<16x8xf32>
    %28 = arith.truncf %27 : vector<16x8xf32> to vector<16x8xbf16>
    %c0_20 = arith.constant 0 : index
    %c0_21 = arith.constant 0 : index
    %29 = vector.load %arg5[%c0_20, %c0_21] : memref<32x16xbf16, #tpu.memory_space<vmem>>, vector<32x16xbf16>
    %c0_22 = arith.constant 0 : index
    %c0_23 = arith.constant 0 : index
    %30 = vector.load %arg6[%c0_22, %c0_23] : memref<32x1xf32, #tpu.memory_space<vmem>>, vector<32x1xf32>
    %cst_24 = arith.constant dense<0.000000e+00> : vector<32x8xf32>
    %31 = tpu.matmul %29, %28, %cst_24 {dimension_numbers = #tpu.dot_dimension_numbers<[1], [0], [0], [1], [0, 0, 1, 1], [], []>} : vector<32x16xbf16>, vector<16x8xbf16>, vector<32x8xf32> -> vector<32x8xf32>
    %32 = vector.broadcast %30 : vector<32x1xf32> to vector<32x8xf32>
    %33 = arith.addf %31, %32 : vector<32x8xf32>
    %cst_25 = arith.constant 0.000000e+00 : f32
    %34 = vector.broadcast %cst_25 : f32 to vector<32x8xf32>
    %35 = arith.maximumf %33, %34 : vector<32x8xf32>
    %36 = arith.maximumf %18, %35 : vector<32x8xf32>
    %37 = vector.extract_strided_slice %1 {offsets = [0, 2, 0], sizes = [8, 1, 8], strides = [1, 1, 1]} : vector<8x8x8xbf16> to vector<8x1x8xbf16>
    %38 = vector.shape_cast %37 : vector<8x1x8xbf16> to vector<8x8xbf16>
    %c0_26 = arith.constant 0 : index
    %c0_27 = arith.constant 0 : index
    %39 = vector.load %arg3[%c0_26, %c0_27] : memref<16x8xbf16, #tpu.memory_space<vmem>>, vector<16x8xbf16>
    %c0_28 = arith.constant 0 : index
    %c0_29 = arith.constant 0 : index
    %40 = vector.load %arg4[%c0_28, %c0_29] : memref<16x1xf32, #tpu.memory_space<vmem>>, vector<16x1xf32>
    %cst_30 = arith.constant dense<0.000000e+00> : vector<16x8xf32>
    %41 = tpu.matmul %39, %38, %cst_30 {dimension_numbers = #tpu.dot_dimension_numbers<[1], [0], [0], [1], [0, 0, 1, 1], [], []>} : vector<16x8xbf16>, vector<8x8xbf16>, vector<16x8xf32> -> vector<16x8xf32>
    %42 = vector.broadcast %40 : vector<16x1xf32> to vector<16x8xf32>
    %43 = arith.addf %41, %42 : vector<16x8xf32>
    %cst_31 = arith.constant 0.000000e+00 : f32
    %44 = vector.broadcast %cst_31 : f32 to vector<16x8xf32>
    %45 = arith.maximumf %43, %44 : vector<16x8xf32>
    %46 = arith.truncf %45 : vector<16x8xf32> to vector<16x8xbf16>
    %c0_32 = arith.constant 0 : index
    %c0_33 = arith.constant 0 : index
    %47 = vector.load %arg5[%c0_32, %c0_33] : memref<32x16xbf16, #tpu.memory_space<vmem>>, vector<32x16xbf16>
    %c0_34 = arith.constant 0 : index
    %c0_35 = arith.constant 0 : index
    %48 = vector.load %arg6[%c0_34, %c0_35] : memref<32x1xf32, #tpu.memory_space<vmem>>, vector<32x1xf32>
    %cst_36 = arith.constant dense<0.000000e+00> : vector<32x8xf32>
    %49 = tpu.matmul %47, %46, %cst_36 {dimension_numbers = #tpu.dot_dimension_numbers<[1], [0], [0], [1], [0, 0, 1, 1], [], []>} : vector<32x16xbf16>, vector<16x8xbf16>, vector<32x8xf32> -> vector<32x8xf32>
    %50 = vector.broadcast %48 : vector<32x1xf32> to vector<32x8xf32>
    %51 = arith.addf %49, %50 : vector<32x8xf32>
    %cst_37 = arith.constant 0.000000e+00 : f32
    %52 = vector.broadcast %cst_37 : f32 to vector<32x8xf32>
    %53 = arith.maximumf %51, %52 : vector<32x8xf32>
    %54 = arith.maximumf %36, %53 : vector<32x8xf32>
    %55 = vector.extract_strided_slice %1 {offsets = [0, 3, 0], sizes = [8, 1, 8], strides = [1, 1, 1]} : vector<8x8x8xbf16> to vector<8x1x8xbf16>
    %56 = vector.shape_cast %55 : vector<8x1x8xbf16> to vector<8x8xbf16>
    %c0_38 = arith.constant 0 : index
    %c0_39 = arith.constant 0 : index
    %57 = vector.load %arg3[%c0_38, %c0_39] : memref<16x8xbf16, #tpu.memory_space<vmem>>, vector<16x8xbf16>
    %c0_40 = arith.constant 0 : index
    %c0_41 = arith.constant 0 : index
    %58 = vector.load %arg4[%c0_40, %c0_41] : memref<16x1xf32, #tpu.memory_space<vmem>>, vector<16x1xf32>
    %cst_42 = arith.constant dense<0.000000e+00> : vector<16x8xf32>
    %59 = tpu.matmul %57, %56, %cst_42 {dimension_numbers = #tpu.dot_dimension_numbers<[1], [0], [0], [1], [0, 0, 1, 1], [], []>} : vector<16x8xbf16>, vector<8x8xbf16>, vector<16x8xf32> -> vector<16x8xf32>
    %60 = vector.broadcast %58 : vector<16x1xf32> to vector<16x8xf32>
    %61 = arith.addf %59, %60 : vector<16x8xf32>
    %cst_43 = arith.constant 0.000000e+00 : f32
    %62 = vector.broadcast %cst_43 : f32 to vector<16x8xf32>
    %63 = arith.maximumf %61, %62 : vector<16x8xf32>
    %64 = arith.truncf %63 : vector<16x8xf32> to vector<16x8xbf16>
    %c0_44 = arith.constant 0 : index
    %c0_45 = arith.constant 0 : index
    %65 = vector.load %arg5[%c0_44, %c0_45] : memref<32x16xbf16, #tpu.memory_space<vmem>>, vector<32x16xbf16>
    %c0_46 = arith.constant 0 : index
    %c0_47 = arith.constant 0 : index
    %66 = vector.load %arg6[%c0_46, %c0_47] : memref<32x1xf32, #tpu.memory_space<vmem>>, vector<32x1xf32>
    %cst_48 = arith.constant dense<0.000000e+00> : vector<32x8xf32>
    %67 = tpu.matmul %65, %64, %cst_48 {dimension_numbers = #tpu.dot_dimension_numbers<[1], [0], [0], [1], [0, 0, 1, 1], [], []>} : vector<32x16xbf16>, vector<16x8xbf16>, vector<32x8xf32> -> vector<32x8xf32>
    %68 = vector.broadcast %66 : vector<32x1xf32> to vector<32x8xf32>
    %69 = arith.addf %67, %68 : vector<32x8xf32>
    %cst_49 = arith.constant 0.000000e+00 : f32
    %70 = vector.broadcast %cst_49 : f32 to vector<32x8xf32>
    %71 = arith.maximumf %69, %70 : vector<32x8xf32>
    %72 = arith.maximumf %54, %71 : vector<32x8xf32>
    %73 = vector.extract_strided_slice %1 {offsets = [0, 4, 0], sizes = [8, 1, 8], strides = [1, 1, 1]} : vector<8x8x8xbf16> to vector<8x1x8xbf16>
    %74 = vector.shape_cast %73 : vector<8x1x8xbf16> to vector<8x8xbf16>
    %c0_50 = arith.constant 0 : index
    %c0_51 = arith.constant 0 : index
    %75 = vector.load %arg3[%c0_50, %c0_51] : memref<16x8xbf16, #tpu.memory_space<vmem>>, vector<16x8xbf16>
    %c0_52 = arith.constant 0 : index
    %c0_53 = arith.constant 0 : index
    %76 = vector.load %arg4[%c0_52, %c0_53] : memref<16x1xf32, #tpu.memory_space<vmem>>, vector<16x1xf32>
    %cst_54 = arith.constant dense<0.000000e+00> : vector<16x8xf32>
    %77 = tpu.matmul %75, %74, %cst_54 {dimension_numbers = #tpu.dot_dimension_numbers<[1], [0], [0], [1], [0, 0, 1, 1], [], []>} : vector<16x8xbf16>, vector<8x8xbf16>, vector<16x8xf32> -> vector<16x8xf32>
    %78 = vector.broadcast %76 : vector<16x1xf32> to vector<16x8xf32>
    %79 = arith.addf %77, %78 : vector<16x8xf32>
    %cst_55 = arith.constant 0.000000e+00 : f32
    %80 = vector.broadcast %cst_55 : f32 to vector<16x8xf32>
    %81 = arith.maximumf %79, %80 : vector<16x8xf32>
    %82 = arith.truncf %81 : vector<16x8xf32> to vector<16x8xbf16>
    %c0_56 = arith.constant 0 : index
    %c0_57 = arith.constant 0 : index
    %83 = vector.load %arg5[%c0_56, %c0_57] : memref<32x16xbf16, #tpu.memory_space<vmem>>, vector<32x16xbf16>
    %c0_58 = arith.constant 0 : index
    %c0_59 = arith.constant 0 : index
    %84 = vector.load %arg6[%c0_58, %c0_59] : memref<32x1xf32, #tpu.memory_space<vmem>>, vector<32x1xf32>
    %cst_60 = arith.constant dense<0.000000e+00> : vector<32x8xf32>
    %85 = tpu.matmul %83, %82, %cst_60 {dimension_numbers = #tpu.dot_dimension_numbers<[1], [0], [0], [1], [0, 0, 1, 1], [], []>} : vector<32x16xbf16>, vector<16x8xbf16>, vector<32x8xf32> -> vector<32x8xf32>
    %86 = vector.broadcast %84 : vector<32x1xf32> to vector<32x8xf32>
    %87 = arith.addf %85, %86 : vector<32x8xf32>
    %cst_61 = arith.constant 0.000000e+00 : f32
    %88 = vector.broadcast %cst_61 : f32 to vector<32x8xf32>
    %89 = arith.maximumf %87, %88 : vector<32x8xf32>
    %90 = arith.maximumf %72, %89 : vector<32x8xf32>
    %91 = vector.extract_strided_slice %1 {offsets = [0, 5, 0], sizes = [8, 1, 8], strides = [1, 1, 1]} : vector<8x8x8xbf16> to vector<8x1x8xbf16>
    %92 = vector.shape_cast %91 : vector<8x1x8xbf16> to vector<8x8xbf16>
    %c0_62 = arith.constant 0 : index
    %c0_63 = arith.constant 0 : index
    %93 = vector.load %arg3[%c0_62, %c0_63] : memref<16x8xbf16, #tpu.memory_space<vmem>>, vector<16x8xbf16>
    %c0_64 = arith.constant 0 : index
    %c0_65 = arith.constant 0 : index
    %94 = vector.load %arg4[%c0_64, %c0_65] : memref<16x1xf32, #tpu.memory_space<vmem>>, vector<16x1xf32>
    %cst_66 = arith.constant dense<0.000000e+00> : vector<16x8xf32>
    %95 = tpu.matmul %93, %92, %cst_66 {dimension_numbers = #tpu.dot_dimension_numbers<[1], [0], [0], [1], [0, 0, 1, 1], [], []>} : vector<16x8xbf16>, vector<8x8xbf16>, vector<16x8xf32> -> vector<16x8xf32>
    %96 = vector.broadcast %94 : vector<16x1xf32> to vector<16x8xf32>
    %97 = arith.addf %95, %96 : vector<16x8xf32>
    %cst_67 = arith.constant 0.000000e+00 : f32
    %98 = vector.broadcast %cst_67 : f32 to vector<16x8xf32>
    %99 = arith.maximumf %97, %98 : vector<16x8xf32>
    %100 = arith.truncf %99 : vector<16x8xf32> to vector<16x8xbf16>
    %c0_68 = arith.constant 0 : index
    %c0_69 = arith.constant 0 : index
    %101 = vector.load %arg5[%c0_68, %c0_69] : memref<32x16xbf16, #tpu.memory_space<vmem>>, vector<32x16xbf16>
    %c0_70 = arith.constant 0 : index
    %c0_71 = arith.constant 0 : index
    %102 = vector.load %arg6[%c0_70, %c0_71] : memref<32x1xf32, #tpu.memory_space<vmem>>, vector<32x1xf32>
    %cst_72 = arith.constant dense<0.000000e+00> : vector<32x8xf32>
    %103 = tpu.matmul %101, %100, %cst_72 {dimension_numbers = #tpu.dot_dimension_numbers<[1], [0], [0], [1], [0, 0, 1, 1], [], []>} : vector<32x16xbf16>, vector<16x8xbf16>, vector<32x8xf32> -> vector<32x8xf32>
    %104 = vector.broadcast %102 : vector<32x1xf32> to vector<32x8xf32>
    %105 = arith.addf %103, %104 : vector<32x8xf32>
    %cst_73 = arith.constant 0.000000e+00 : f32
    %106 = vector.broadcast %cst_73 : f32 to vector<32x8xf32>
    %107 = arith.maximumf %105, %106 : vector<32x8xf32>
    %108 = arith.maximumf %90, %107 : vector<32x8xf32>
    %109 = vector.extract_strided_slice %1 {offsets = [0, 6, 0], sizes = [8, 1, 8], strides = [1, 1, 1]} : vector<8x8x8xbf16> to vector<8x1x8xbf16>
    %110 = vector.shape_cast %109 : vector<8x1x8xbf16> to vector<8x8xbf16>
    %c0_74 = arith.constant 0 : index
    %c0_75 = arith.constant 0 : index
    %111 = vector.load %arg3[%c0_74, %c0_75] : memref<16x8xbf16, #tpu.memory_space<vmem>>, vector<16x8xbf16>
    %c0_76 = arith.constant 0 : index
    %c0_77 = arith.constant 0 : index
    %112 = vector.load %arg4[%c0_76, %c0_77] : memref<16x1xf32, #tpu.memory_space<vmem>>, vector<16x1xf32>
    %cst_78 = arith.constant dense<0.000000e+00> : vector<16x8xf32>
    %113 = tpu.matmul %111, %110, %cst_78 {dimension_numbers = #tpu.dot_dimension_numbers<[1], [0], [0], [1], [0, 0, 1, 1], [], []>} : vector<16x8xbf16>, vector<8x8xbf16>, vector<16x8xf32> -> vector<16x8xf32>
    %114 = vector.broadcast %112 : vector<16x1xf32> to vector<16x8xf32>
    %115 = arith.addf %113, %114 : vector<16x8xf32>
    %cst_79 = arith.constant 0.000000e+00 : f32
    %116 = vector.broadcast %cst_79 : f32 to vector<16x8xf32>
    %117 = arith.maximumf %115, %116 : vector<16x8xf32>
    %118 = arith.truncf %117 : vector<16x8xf32> to vector<16x8xbf16>
    %c0_80 = arith.constant 0 : index
    %c0_81 = arith.constant 0 : index
    %119 = vector.load %arg5[%c0_80, %c0_81] : memref<32x16xbf16, #tpu.memory_space<vmem>>, vector<32x16xbf16>
    %c0_82 = arith.constant 0 : index
    %c0_83 = arith.constant 0 : index
    %120 = vector.load %arg6[%c0_82, %c0_83] : memref<32x1xf32, #tpu.memory_space<vmem>>, vector<32x1xf32>
    %cst_84 = arith.constant dense<0.000000e+00> : vector<32x8xf32>
    %121 = tpu.matmul %119, %118, %cst_84 {dimension_numbers = #tpu.dot_dimension_numbers<[1], [0], [0], [1], [0, 0, 1, 1], [], []>} : vector<32x16xbf16>, vector<16x8xbf16>, vector<32x8xf32> -> vector<32x8xf32>
    %122 = vector.broadcast %120 : vector<32x1xf32> to vector<32x8xf32>
    %123 = arith.addf %121, %122 : vector<32x8xf32>
    %cst_85 = arith.constant 0.000000e+00 : f32
    %124 = vector.broadcast %cst_85 : f32 to vector<32x8xf32>
    %125 = arith.maximumf %123, %124 : vector<32x8xf32>
    %126 = arith.maximumf %108, %125 : vector<32x8xf32>
    %127 = vector.extract_strided_slice %1 {offsets = [0, 7, 0], sizes = [8, 1, 8], strides = [1, 1, 1]} : vector<8x8x8xbf16> to vector<8x1x8xbf16>
    %128 = vector.shape_cast %127 : vector<8x1x8xbf16> to vector<8x8xbf16>
    %c0_86 = arith.constant 0 : index
    %c0_87 = arith.constant 0 : index
    %129 = vector.load %arg3[%c0_86, %c0_87] : memref<16x8xbf16, #tpu.memory_space<vmem>>, vector<16x8xbf16>
    %c0_88 = arith.constant 0 : index
    %c0_89 = arith.constant 0 : index
    %130 = vector.load %arg4[%c0_88, %c0_89] : memref<16x1xf32, #tpu.memory_space<vmem>>, vector<16x1xf32>
    %cst_90 = arith.constant dense<0.000000e+00> : vector<16x8xf32>
    %131 = tpu.matmul %129, %128, %cst_90 {dimension_numbers = #tpu.dot_dimension_numbers<[1], [0], [0], [1], [0, 0, 1, 1], [], []>} : vector<16x8xbf16>, vector<8x8xbf16>, vector<16x8xf32> -> vector<16x8xf32>
    %132 = vector.broadcast %130 : vector<16x1xf32> to vector<16x8xf32>
    %133 = arith.addf %131, %132 : vector<16x8xf32>
    %cst_91 = arith.constant 0.000000e+00 : f32
    %134 = vector.broadcast %cst_91 : f32 to vector<16x8xf32>
    %135 = arith.maximumf %133, %134 : vector<16x8xf32>
    %136 = arith.truncf %135 : vector<16x8xf32> to vector<16x8xbf16>
    %c0_92 = arith.constant 0 : index
    %c0_93 = arith.constant 0 : index
    %137 = vector.load %arg5[%c0_92, %c0_93] : memref<32x16xbf16, #tpu.memory_space<vmem>>, vector<32x16xbf16>
    %c0_94 = arith.constant 0 : index
    %c0_95 = arith.constant 0 : index
    %138 = vector.load %arg6[%c0_94, %c0_95] : memref<32x1xf32, #tpu.memory_space<vmem>>, vector<32x1xf32>
    %cst_96 = arith.constant dense<0.000000e+00> : vector<32x8xf32>
    %139 = tpu.matmul %137, %136, %cst_96 {dimension_numbers = #tpu.dot_dimension_numbers<[1], [0], [0], [1], [0, 0, 1, 1], [], []>} : vector<32x16xbf16>, vector<16x8xbf16>, vector<32x8xf32> -> vector<32x8xf32>
    %140 = vector.broadcast %138 : vector<32x1xf32> to vector<32x8xf32>
    %141 = arith.addf %139, %140 : vector<32x8xf32>
    %cst_97 = arith.constant 0.000000e+00 : f32
    %142 = vector.broadcast %cst_97 : f32 to vector<32x8xf32>
    %143 = arith.maximumf %141, %142 : vector<32x8xf32>
    %144 = arith.maximumf %126, %143 : vector<32x8xf32>
    %c0_98 = arith.constant 0 : index
    %c0_99 = arith.constant 0 : index
    %c0_100 = arith.constant 0 : index
    %145 = vector.load %arg7[%c0_98, %c0_99, %c0_100] : memref<1x32x8xf32, #tpu.memory_space<vmem>>, vector<1x32x8xf32>
    %146 = vector.shape_cast %145 : vector<1x32x8xf32> to vector<32x8xf32>
    %147 = vector.shape_cast %144 : vector<32x8xf32> to vector<1x32x8xf32>
    tpu.vector_store %arg7[%c0_98, %c0_99, %c0_100], %147 {strides = array<i32>} : memref<1x32x8xf32, #tpu.memory_space<vmem>>, vector<1x32x8xf32>,
    return
  }
  func.func @transform_0(%arg0: i32, %arg1: i32) -> (i32, i32, i32, i32) {
    %c0_i32 = arith.constant 0 : i32
    %c0_i32_0 = arith.constant 0 : i32
    %c0_i32_1 = arith.constant 0 : i32
    return %arg0, %c0_i32, %c0_i32_0, %arg1 : i32, i32, i32, i32
  }
  func.func @transform_1(%arg0: i32, %arg1: i32) -> (i32, i32) {
    %c0_i32 = arith.constant 0 : i32
    %c0_i32_0 = arith.constant 0 : i32
    %c0_i32_1 = arith.constant 0 : i32
    return %c0_i32, %c0_i32_0 : i32, i32
  }
  func.func @transform_2(%arg0: i32, %arg1: i32) -> (i32, i32) {
    %c0_i32 = arith.constant 0 : i32
    %c0_i32_0 = arith.constant 0 : i32
    %c0_i32_1 = arith.constant 0 : i32
    return %c0_i32, %c0_i32_0 : i32, i32
  }
  func.func @transform_3(%arg0: i32, %arg1: i32) -> (i32, i32) {
    %c0_i32 = arith.constant 0 : i32
    %c0_i32_0 = arith.constant 0 : i32
    %c0_i32_1 = arith.constant 0 : i32
    return %c0_i32, %c0_i32_0 : i32, i32
  }
  func.func @transform_4(%arg0: i32, %arg1: i32) -> (i32, i32) {
    %c0_i32 = arith.constant 0 : i32
    %c0_i32_0 = arith.constant 0 : i32
    %c0_i32_1 = arith.constant 0 : i32
    return %c0_i32, %c0_i32_0 : i32, i32
  }
  func.func @transform_5(%arg0: i32, %arg1: i32) -> (i32, i32, i32) {
    %c0_i32 = arith.constant 0 : i32
    %c0_i32_0 = arith.constant 0 : i32
    return %arg0, %c0_i32, %arg1 : i32, i32, i32
  }
}

</mosaic_0001>

<bundles_post_ra>
// kernel: _lambda_.4
= control target key start
LH: loop header
LB: loop body
LE: loop exit
PB: predicated region body
PF: predicated region fallthrough
CT: control target
= control target key end

     0   :  { %s325_s6 = smov 0   ;;  %s360_s0 = inlined_call_operand.vmem [shape: f32[2,3,16], index: 0, kind: input, shape index: {}]   ;;  %s361_s1 = inlined_call_operand.vmem [shape: s32[2,1,8], index: 1, kind: output, shape index: {}]  }
   0x1 LB: > { %s227_s7 = sadd.s32 4294967295, %s297_s6   ;;  %p231_p0 = scmp.ge.s32.totalorder %s297_s6, 1  ;;  %s297_s6 = sphi %s325_s6, %s11_s6  }
   0x2   : > { %p86_p1 = scmp.lt.s32.totalorder %s297_s6, 3 }
   0x4   : > { %p87_p2 = pnand %p231_p0, %p86_p1 }
   0x5   : > { %p103_p3 = scmp.lt.s32.totalorder (!%p87_p2), %s227_s7, 1  ;;  %s343_s15 = smov (!%p87_p2), 0  }
   0x6   : > { %90 = sbr.rel (%p87_p2) target bundleno = 602 (0x25a), region = 24 }
   0xb   : > { %v111_v0 = vlaneseq  ;;  %s363_s7 = smov (!%p103_p3, %s227_s7), 1  ;;  %v299_v3 = vmov 0   ;;  %v303_v4 = vmov 1e+10   ;;  %v307_v5 = vmov 0  }
   0xc   : > { %s232_s8 = sshll.u32 %s363_s7, 2  ;;  %s109_s11 = scalar_lea.vmem %s361_s1, %s363_s7 }
   0xd   : > { %v112_v1 = vand.u32 127, %v111_v0  ;;  %s106_s14 = scalar_lea.vmem %s360_s0, %s232_s8 }
   0xe   : > { %v110_v2 = vld [vmem:[%s106_s14] sm:$0x7] }
   0xf LB: >> { %vm129_vm0 = vcmask 124928   ;;  %v122_v6 = vstv %s313_s15  ;;  %vm125_vm1 = vcmp.eq.s32.totalorder %v112_v1, %v309_v5  ;;  %vm143_vm3 = vcmask 130048   ;;  %s118_s15 = sadd.s32 1, %s313_s15   ;;  %s313_s15 = sphi %s343_s15, %s118_s15   ;;  %v309_v5 = vphi %v307_v5, %v163_v5   ;;  %v305_v4 = vphi %v303_v4, %v142_v4   ;;  %v301_v3 = vphi %v299_v3, %v300_v3  }
  0x10   : >> { %vm123_vm2 = vcmp.eq.s32.totalorder %v112_v1, %v122_v6  ;;  %v128_v7 = vsel %vm125_vm1, %v110_v2, 0.0  ;;  %p115_p4 = scmp.ge.s32.totalorder %s118_s15, 8  }
  0x11   : >> { %v130_v8 = vsel %vm129_vm0, %v128_v7, 0.0  ;;  %v124_v9 = vsel %vm123_vm2, %v309_v5, %v301_v3   ;;  %vm164_vm6 = vcmask (%p115_p4), 57344  }
  0x12   : >> { %131 = vadd.xlane.f32.xlu0 %v130_v8  ;;  %v300_v3 = vmov %v124_v9   ;;  %165 = vst.msk [vmem:[%s109_s11] sm:$0x1] (%p115_p4), %vm164_vm6, %v124_v9 }
  0x9b   : >> { %v132_v10 = vpop.xlane.xlu0 %131 }
  0x9c   : >> { %v133_v11 = vsub.f32 %v110_v2, %v132_v10 }
  0x9e   : >> { %v134_v12 = vmul.f32 %v133_v11, %v133_v11 }
  0xa0   : >> { %v135_v13 = vsel %vm129_vm0, %v134_v12, 0.0 }
  0xa1   : >> { %v136_v14 = vrot.slane %v135_v13, 4 }
  0xa3   : >> { %v137_v15 = vadd.f32 %v136_v14, %v135_v13 }
  0xa5   : >> { %v138_v16 = vrot.slane %v137_v15, 2 }
  0xa7   : >> { %v139_v17 = vadd.f32 %v138_v16, %v137_v15 }
  0xa9   : >> { %v140_v18 = vrot.slane %v139_v17, 1 }
  0xab   : >> { %v141_v19 = vadd.f32 %v140_v18, %v139_v17 }
  0xad   : >> { %v142_v4 = vmin.f32 %v305_v4, %v141_v19  }
  0xaf   : >> { %v144_v20 = vsel %vm143_vm3, %v142_v4, -inf }
  0xb0   : >> { %145 = vmax.xlane.f32.xlu0 %v144_v20 }
 0x139   : >> { %v146_v21 = vpop.xlane.xlu0 %145 }
 0x13a   : >> { %vm147_vm4 = vcmp.eq.f32.partialorder %v142_v4, %v146_v21 }
 0x13b   : >> { %v148_v22 = vsel %vm147_vm4, %v112_v1, 16 }
 0x13c   : >> { %v149_v23 = vsel %vm143_vm3, %v148_v22, 2147483647 }
 0x13d   : >> { %v151_v24 = vshra.s32 %v149_v23, 16  ;;  %v150_v26 = vand.u32 65535, %v149_v23 }
 0x13f   : >> { %v153_v25 = vcvt.s32.f32 %v151_v24  ;;  %v152_v28 = vcvt.s32.f32 %v150_v26 }
 0x141   : >> { %154 = vmin.xlane.f32.xlu1 %v153_v25 }
 0x1ca   : >> { %v155_v27 = vpop.xlane.xlu1 %154 }
 0x1cb   : >> { %vm156_vm5 = vcmp.eq.f32.partialorder %v153_v25, %v155_v27  ;;  %v161_v30 = vcvt.f32.s32 %v155_v27 }
 0x1cc   : >> { %v157_v29 = vsel %vm156_vm5, %v152_v28, inf }
 0x1cd   : >> { %158 = vmin.xlane.f32.xlu1 %v157_v29  ;;  %v162_v32 = vshll.u32 %v161_v30, 16 }
 0x255   : > { %117 = sbr.rel (!%p115_p4) target bundleno = 15 (0xf), region = 61 }
 0x256   : >> { %v159_v31 = vpop.xlane.xlu1 %158 }
 0x257   : >> { %v160_v33 = vcvt.f32.s32 %v159_v31 }
 0x259   : >> { %v163_v5 = vadd.s32 %v162_v32, %v160_v33  }
 0x25a PF: > { %s11_s6 = sadd.s32 1, %s297_s6  }
 0x25b   : > { %p8_p5 = scmp.ge.s32.totalorder %s11_s6, 4  }
 0x25d   :  { %10 = sbr.rel (!%p8_p5) target bundleno = 1 (0x1), region = 72 }

// kernel: _lambda_.5
= control target key start
LH: loop header
LB: loop body
LE: loop exit
PB: predicated region body
PF: predicated region fallthrough
CT: control target
= control target key end

     0   :  { %s1114_s12 = smov 0   ;;  %s1116_s13 = smov 0   ;;  %s1712_s0 = inlined_call_operand.vmem [shape: f32[2,16,5], index: 0, kind: input, shape index: {}]   ;;  %s1713_s1 = inlined_call_operand.vmem [shape: f32[2,5,8], index: 1, kind: input, shape index: {}]   ;;  %s1714_s2 = inlined_call_operand.vmem [shape: s32[2,8,8], index: 2, kind: output, shape index: {0}]   ;;  %s1715_s3 = inlined_call_operand.vmem [shape: s32[2,16,8], index: 3, kind: output, shape index: {1}]  }
   0x1   :  { %s1118_s14 = smov 0  }
   0x2 LB: > { %s26_s15 = sadd.s32 1, %s1087_s13  ;;  %p1022_p0 = scmp.ge.s32.totalorder %s1091_s14, 1  ;;  %s1091_s14 = sphi %s1118_s14, %s14_s14   ;;  %s1087_s13 = sphi %s1116_s13, %s1804_s13   ;;  %s1083_s12 = sphi %s1114_s12, %s1803_s12  }
   0x3   : > { %p28_p1 = scmp.ge.s32.totalorder %s26_s15, 2  ;;  %p170_p2 = scmp.lt.s32.totalorder %s1091_s14, 3 }
   0x5   : > { %s1806_s15 = smov (%p28_p1, %s26_s15), 0  ;;  %p171_p3 = pnand %p1022_p0, %p170_p2 }
   0x6   : > { %p211_p4 = scmp.lt.s32.totalorder (!%p171_p3), %s1083_s12, 1 }
   0x7   : > { %174 = sbr.rel (%p171_p3) target bundleno = 357 (0x165), region = 28 }
   0xc   : > { %s1808_s12 = smov (!%p211_p4, %s1083_s12), 1  ;;  %vm241_vm0 = vcmask 39936   ;;  %vm1716_vm1 = vcmask 1044480   ;;  %v1093_v9 = vmov 0   ;;  %vm1719_vm6 = vcmask 1040384  }
   0xd   : > { %s1034_s16 = sshll.u32 %s1808_s12, 4  ;;  %s1025_s17 = sshll.u32 %s1808_s12, 3  ;;  %vm1718_vm7 = vcmask 1041408   ;;  %v329_v32 = vlaneseq  ;;  %vm1717_vm8 = vcmask 1043456   ;;  %vm364_vm12 = vcmask 64512  }
   0xe   : > { %s215_s20 = scalar_lea.vmem %s1712_s0, %s1034_s16  ;;  %s222_s23 = scalar_lea.vmem %s1713_s1, %s1025_s17 }
   0xf   : > { %v238_v0 = vld [vmem:[%s215_s20] sm:$0xff]  ;;  %v239_v1 = vld [vmem:[%s215_s20 + $0x8] sm:$0xff]  ;;  %v1180_v45 = vshrl.u32 %v329_v32, 7  ;;  %s229_s26 = scalar_lea.vmem %s1714_s2, %s1025_s17  ;;  %s237_s29 = scalar_lea.vmem %s1715_s3, %s1034_s16 }
  0x10   : > { %v240_v2 = vld [vmem:[%s222_s23] sm:$0x1f]  ;;  %1041 = vmatprep.mubr.msk.f32.mxu0 %vm241_vm0, %v238_v0 }
  0x11   : > { %1039 = vmatprep.subr.msk.mxu0 %vm1716_vm1, %v240_v2  ;;  %v1189_v53 = vadd.s32 8, %v1180_v45  ;;  %v524_v56 = vsub.s32 0, %v1180_v45 }
  0x12   : > { %1040 = vmatpush3.msk.msra.mxu0 %vm1716_vm1, %v240_v2 }
  0x13   : > { %1042 = vmatmul.mubr.msk.f32.vlgmr.msra.gmra.mxu0 %vm241_vm0, %v239_v1 }
  0xd3   : > { %v1043_v3 = vpop.f32.mrf.mxu0 }
  0xd4   : > { %v328_v4 = vmax.f32 %v1043_v3, 0.0 }
  0xd5   : > { %v318_v5 = vpop.f32.mrf.mxu0 }
  0xd6   : > { %v327_v6 = vmax.f32 %v318_v5, 0.0  ;;  %vm1148_vm2 = vcmp.lt.f32.partialorder %v328_v4, 0.64  ;;  %vm1152_vm3 = vcmp.lt.f32.partialorder %v328_v4, 2.56 }
  0xd7   : > { %v335_v10 = vsel %vm1148_vm2, 1, %v1093_v9  ;;  %v533_v11 = vsel %vm1152_vm3, 1, %v1093_v9 }
  0xd8   : > { %vm1160_vm4 = vcmp.lt.f32.partialorder %v327_v6, 0.64  ;;  %vm1164_vm5 = vcmp.lt.f32.partialorder %v327_v6, 2.56  ;;  %v338_v17 = vrot.slane %v335_v10, 7  ;;  %v535_v19 = vrot.slane %v533_v11, 7 }
  0xd9   : > { %v334_v14 = vsel %vm1160_vm4, 1, %v1093_v9  ;;  %v532_v15 = vsel %vm1164_vm5, 1, %v1093_v9 }
  0xda   : > { %v337_v16 = vrot.slane %v334_v14, 7  ;;  %v534_v18 = vrot.slane %v532_v15, 7 }
  0xdc   : > { %v339_v20 = vsel %vm1719_vm6, %v337_v16, %v338_v17  ;;  %v340_v21 = vsel %vm1719_vm6, 0, %v337_v16  ;;  %v536_v22 = vsel %vm1719_vm6, %v534_v18, %v535_v19  ;;  %v537_v23 = vsel %vm1719_vm6, 0, %v534_v18 }
  0xdd   : > { %v341_v24 = vadd.s32 %v340_v21, %v334_v14  ;;  %v342_v25 = vadd.s32 %v339_v20, %v335_v10  ;;  %v538_v26 = vadd.s32 %v537_v23, %v532_v15  ;;  %v539_v27 = vadd.s32 %v536_v22, %v533_v11 }
  0xdf   : > { %v344_v28 = vrot.slane %v341_v24, 6  ;;  %v345_v29 = vrot.slane %v342_v25, 6  ;;  %v540_v30 = vrot.slane %v538_v26, 6  ;;  %v541_v31 = vrot.slane %v539_v27, 6 }
  0xe1   : > { %v346_v33 = vsel %vm1718_vm7, %v344_v28, %v345_v29  ;;  %v347_v34 = vsel %vm1718_vm7, 0, %v344_v28  ;;  %v542_v35 = vsel %vm1718_vm7, %v540_v30, %v541_v31  ;;  %v543_v36 = vsel %vm1718_vm7, 0, %v540_v30 }
  0xe2   : > { %v348_v37 = vadd.s32 %v347_v34, %v341_v24  ;;  %v349_v38 = vadd.s32 %v346_v33, %v342_v25  ;;  %v544_v39 = vadd.s32 %v543_v36, %v538_v26  ;;  %v545_v40 = vadd.s32 %v542_v35, %v539_v27 }
  0xe4   : > { %v351_v41 = vrot.slane %v348_v37, 4  ;;  %v352_v42 = vrot.slane %v349_v38, 4  ;;  %v546_v43 = vrot.slane %v544_v39, 4  ;;  %v547_v44 = vrot.slane %v545_v40, 4 }
  0xe6   : > { %v353_v46 = vsel %vm1717_vm8, %v351_v41, %v352_v42  ;;  %v354_v47 = vsel %vm1717_vm8, 0, %v351_v41  ;;  %v548_v48 = vsel %vm1717_vm8, %v546_v43, %v547_v44  ;;  %v549_v51 = vsel %vm1717_vm8, 0, %v546_v43 }
  0xe7   : > { %v1185_v49 = vadd.s32 %v354_v47, %v348_v37  ;;  %v356_v50 = vadd.s32 %v353_v46, %v349_v38  ;;  %v551_v52 = vadd.s32 %v548_v48, %v545_v40  ;;  %v1204_v57 = vadd.s32 %v549_v51, %v544_v39 }
  0xe9   : > { %v1192_v54 = vadd.s32 %v356_v50, %v1185_v49  ;;  %vm358_vm9 = vcmp.eq.s32.totalorder %v1185_v49, 1  ;;  %vm378_vm10 = vcmp.eq.s32.totalorder %v1185_v49, 2  ;;  %vm397_vm13 = vcmp.eq.s32.totalorder %v1185_v49, 3 }
  0xea   : > { %vm1198_vm11 = vmand %vm1160_vm4, %vm358_vm9  ;;  %vm435_vm7 = vcmp.eq.s32.totalorder %v1185_v49, 5  ;;  %vm454_vm6 = vcmp.eq.s32.totalorder %v1185_v49, 6  ;;  %v1241_v3 = vadd.s32 %v551_v52, %v1204_v57 }
  0xeb   : > { %vm359_vm14 = vcmp.eq.s32.totalorder %v1192_v54, 1  ;;  %v362_v58 = vsel %vm1198_vm11, %v1180_v45, 16  ;;  %vm379_vm15 = vcmp.eq.s32.totalorder %v1192_v54, 2  ;;  %vm380_vm0 = vmand %vm1160_vm4, %vm378_vm10  ;;  %vm398_vm8 = vcmp.eq.s32.totalorder %v1192_v54, 3 }
  0xec   : > { %vm361_vm1 = vmand %vm1148_vm2, %vm359_vm14  ;;  %v382_v59 = vsel %vm380_vm0, %v1180_v45, 16  ;;  %v365_v61 = vsel %vm364_vm12, %v362_v58, 2147483647  ;;  %vm417_vm11 = vcmp.eq.s32.totalorder %v1192_v54, 4  ;;  %vm436_vm9 = vcmp.eq.s32.totalorder %v1192_v54, 5 }
  0xed   : > { %v363_v60 = vsel %vm361_vm1, %v1189_v53, 16  ;;  %vm381_vm10 = vmand %vm1148_vm2, %vm379_vm15  ;;  %v384_v0 = vsel %vm364_vm12, %v382_v59, 2147483647 }
  0xee   : > { %v366_v62 = vsel %vm364_vm12, %v363_v60, 2147483647  ;;  %v383_v63 = vsel %vm381_vm10, %v1189_v53, 16  ;;  %vm399_vm1 = vmand %vm1160_vm4, %vm397_vm13  ;;  %vm1731_vm13 = vcmp.eq.s32.totalorder %v1185_v49, 4 }
  0xef   : > { %vm367_vm0 = vcmp.lt.s32.totalorder %v365_v61, %v366_v62  ;;  %v385_v1 = vsel %vm364_vm12, %v383_v63, 2147483647  ;;  %vm400_vm15 = vmand %vm1148_vm2, %vm398_vm8  ;;  %v401_v2 = vsel %vm399_vm1, %v1180_v45, 16  ;;  %vm473_vm1 = vcmp.eq.s32.totalorder %v1185_v49, 7 }
  0xf0   : > { %v368_v4 = vsel %vm367_vm0, %v365_v61, %v366_v62  ;;  %vm386_vm10 = vcmp.lt.s32.totalorder %v384_v0, %v385_v1  ;;  %v402_v5 = vsel %vm400_vm15, %v1189_v53, 16  ;;  %v403_v6 = vsel %vm364_vm12, %v401_v2, 2147483647  ;;  %vm418_vm14 = vmand %vm1160_vm4, %vm1731_vm13 }
  0xf1   : > { %v369_v9 = vrot.slane %v368_v4, 4  ;;  %v387_v10 = vsel %vm386_vm10, %v384_v0, %v385_v1  ;;  %v404_v11 = vsel %vm364_vm12, %v402_v5, 2147483647  ;;  %vm419_vm8 = vmand %vm1148_vm2, %vm417_vm11  ;;  %v420_v14 = vsel %vm418_vm14, %v1180_v45, 16 }
  0xf2   : > { %v388_v15 = vrot.slane %v387_v10, 4  ;;  %vm405_vm0 = vcmp.lt.s32.totalorder %v403_v6, %v404_v11  ;;  %v421_v16 = vsel %vm419_vm8, %v1189_v53, 16  ;;  %v422_v17 = vsel %vm364_vm12, %v420_v14, 2147483647  ;;  %vm1262_vm15 = vmand %vm1160_vm4, %vm435_vm7 }
  0xf3   : > { %vm474_vm11 = vcmp.eq.s32.totalorder %v1192_v54, 7  ;;  %vm370_vm10 = vcmp.lt.s32.totalorder %v368_v4, %v369_v9  ;;  %v406_v19 = vsel %vm405_vm0, %v403_v6, %v404_v11  ;;  %v423_v20 = vsel %vm364_vm12, %v421_v16, 2147483647  ;;  %vm1272_vm14 = vmand %vm1148_vm2, %vm436_vm9 }
  0xf4   : > { %v439_v22 = vsel %vm1262_vm15, %v1180_v45, 16  ;;  %v371_v23 = vsel %vm370_vm10, %v368_v4, %v369_v9  ;;  %vm389_vm13 = vcmp.lt.s32.totalorder %v387_v10, %v388_v15  ;;  %v407_v24 = vrot.slane %v406_v19, 4  ;;  %vm1284_vm0 = vmand %vm1160_vm4, %vm454_vm6 }
  0xf5   : > { %vm424_vm8 = vcmp.lt.s32.totalorder %v422_v17, %v423_v20  ;;  %v372_v26 = vrot.slane %v371_v23, 2  ;;  %v390_v27 = vsel %vm389_vm13, %v387_v10, %v388_v15  ;;  %v440_v29 = vsel %vm1272_vm14, %v1189_v53, 16 }
  0xf6   : > { %v425_v28 = vsel %vm424_vm8, %v422_v17, %v423_v20  ;;  %v391_v30 = vrot.slane %v390_v27, 2  ;;  %vm408_vm15 = vcmp.lt.s32.totalorder %v406_v19, %v407_v24  ;;  %v441_v32 = vsel %vm364_vm12, %v439_v22, 2147483647 }
  0xf7   : > { %v426_v31 = vrot.slane %v425_v28, 4  ;;  %vm373_vm10 = vcmp.lt.s32.totalorder %v371_v23, %v372_v26  ;;  %v409_v33 = vsel %vm408_vm15, %v406_v19, %v407_v24  ;;  %v442_v34 = vsel %vm364_vm12, %v440_v29, 2147483647 }
  0xf8   : > { %v458_v35 = vsel %vm1284_vm0, %v1180_v45, 16  ;;  %v374_v36 = vsel %vm373_vm10, %v371_v23, %v372_v26  ;;  %vm392_vm6 = vcmp.lt.s32.totalorder %v390_v27, %v391_v30  ;;  %v410_v37 = vrot.slane %v409_v33, 2 }
  0xf9   : > { %vm427_vm13 = vcmp.lt.s32.totalorder %v425_v28, %v426_v31  ;;  %vm1738_vm8 = vcmp.eq.s32.totalorder %v1192_v54, 6  ;;  %v375_v39 = vrot.slane %v374_v36, 1  ;;  %v393_v40 = vsel %vm392_vm6, %v390_v27, %v391_v30  ;;  %vm1312_vm6 = vmand %vm1160_vm4, %vm473_vm1 }
  0xfa   : > { %vm1301_vm14 = vmand %vm1148_vm2, %vm1738_vm8  ;;  %v428_v41 = vsel %vm427_vm13, %v425_v28, %v426_v31  ;;  %vm443_vm15 = vcmp.lt.s32.totalorder %v441_v32, %v442_v34  ;;  %v394_v42 = vrot.slane %v393_v40, 1  ;;  %vm411_vm9 = vcmp.lt.s32.totalorder %v409_v33, %v410_v37 }
  0xfb   : > { %v429_v43 = vrot.slane %v428_v41, 2  ;;  %v444_v44 = vsel %vm443_vm15, %v441_v32, %v442_v34  ;;  %vm376_vm0 = vcmp.lt.s32.totalorder %v374_v36, %v375_v39  ;;  %v412_v46 = vsel %vm411_vm9, %v409_v33, %v410_v37  ;;  %vm1321_vm13 = vmand %vm1148_vm2, %vm474_vm11 }
  0xfc   : > { %v445_v47 = vrot.slane %v444_v44, 4  ;;  %v459_v48 = vsel %vm1301_vm14, %v1189_v53, 16  ;;  %vm513_vm10 = vcmask 1042432   ;;  %v377_v50 = vsel %vm376_vm0, %v374_v36, %v375_v39 }
  0xfd   : > { %vm395_vm8 = vcmp.lt.s32.totalorder %v393_v40, %v394_v42  ;;  %v413_v51 = vrot.slane %v412_v46, 1  ;;  %vm430_vm7 = vcmp.lt.s32.totalorder %v428_v41, %v429_v43  ;;  %v460_v59 = vsel %vm364_vm12, %v458_v35, 2147483647 }
  0xfe   : > { %v396_v55 = vsel %vm395_vm8, %v393_v40, %v394_v42  ;;  %v431_v58 = vsel %vm430_vm7, %v428_v41, %v429_v43  ;;  %vm446_vm9 = vcmp.lt.s32.totalorder %v444_v44, %v445_v47  ;;  %v461_v63 = vsel %vm364_vm12, %v459_v48, 2147483647 }
  0xff   : > { %vm414_vm14 = vcmp.lt.s32.totalorder %v412_v46, %v413_v51  ;;  %v432_v61 = vrot.slane %v431_v58, 1  ;;  %v447_v62 = vsel %vm446_vm9, %v444_v44, %v445_v47  ;;  %vm1745_vm1 = vcmp.eq.s32.totalorder %v1185_v49, 8 }
 0x100   : > { %vm1330_vm7 = vmand %vm1160_vm4, %vm1745_vm1  ;;  %v415_v1 = vsel %vm414_vm14, %v412_v46, %v413_v51  ;;  %v448_v2 = vrot.slane %v447_v62, 2  ;;  %vm462_vm15 = vcmp.lt.s32.totalorder %v460_v59, %v461_v63  ;;  %v477_v4 = vsel %vm1312_vm6, %v1180_v45, 16 }
 0x101   : > { %vm1748_vm11 = vcmp.eq.s32.totalorder %v1192_v54, 8  ;;  %vm433_vm8 = vcmp.lt.s32.totalorder %v431_v58, %v432_v61  ;;  %v463_v12 = vsel %vm462_vm15, %v460_v59, %v461_v63  ;;  %v478_v49 = vsel %vm1321_vm13, %v1189_v53, 16 }
 0x102   : > { %vm1341_vm0 = vmand %vm1148_vm2, %vm1748_vm11  ;;  %v479_v6 = vsel %vm364_vm12, %v477_v4, 2147483647  ;;  %v434_v9 = vsel %vm433_vm8, %v431_v58, %v432_v61  ;;  %vm449_vm4 = vcmp.lt.s32.totalorder %v447_v62, %v448_v2  ;;  %v464_v10 = vrot.slane %v463_v12, 4 }
 0x103   : > { %v480_v11 = vsel %vm364_vm12, %v478_v49, 2147483647  ;;  %v450_v54 = vsel %vm449_vm4, %v447_v62, %v448_v2  ;;  %v496_v7 = vsel %vm1330_vm7, %v1180_v45, 16  ;;  %v497_v14 = vsel %vm1341_vm0, %v1189_v53, 16 }
 0x104   : > { %vm481_vm6 = vcmp.lt.s32.totalorder %v479_v6, %v480_v11  ;;  %v451_v15 = vrot.slane %v450_v54, 1  ;;  %vm465_vm2 = vcmp.lt.s32.totalorder %v463_v12, %v464_v10  ;;  %v498_v17 = vsel %vm364_vm12, %v496_v7, 2147483647 }
 0x105   : > { %v482_v16 = vsel %vm481_vm6, %v479_v6, %v480_v11  ;;  %v466_v18 = vsel %vm465_vm2, %v463_v12, %v464_v10  ;;  %v499_v20 = vsel %vm364_vm12, %v497_v14, 2147483647  ;;  %vm1751_vm9 = vcmask 1040384  }
 0x106   : > { %v483_v19 = vrot.slane %v482_v16, 4  ;;  %v511_v21 = vsel %vm1751_vm9, %v377_v50, %v396_v55  ;;  %vm452_vm13 = vcmp.lt.s32.totalorder %v450_v54, %v451_v15  ;;  %v467_v22 = vrot.slane %v466_v18, 2 }
 0x107   : > { %vm500_vm14 = vcmp.lt.s32.totalorder %v498_v17, %v499_v20  ;;  %vm1752_vm1 = vcmask 1041408   ;;  %vm517_vm7 = vcmask 1045504   ;;  %v453_v24 = vsel %vm452_vm13, %v450_v54, %v451_v15 }
 0x108   : > { %v512_v23 = vsel %vm1752_vm1, %v511_v21, %v415_v1  ;;  %vm484_vm15 = vcmp.lt.s32.totalorder %v482_v16, %v483_v19  ;;  %v501_v25 = vsel %vm500_vm14, %v498_v17, %v499_v20  ;;  %vm468_vm11 = vcmp.lt.s32.totalorder %v466_v18, %v467_v22 }
 0x109   : > { %v514_v26 = vsel %vm513_vm10, %v512_v23, %v434_v9  ;;  %v485_v27 = vsel %vm484_vm15, %v482_v16, %v483_v19  ;;  %v502_v28 = vrot.slane %v501_v25, 4  ;;  %vm1753_vm0 = vcmask 1043456  }
 0x10a   : > { %v515_v29 = vsel %vm1753_vm0, %v514_v26, %v453_v24  ;;  %v469_v30 = vsel %vm468_vm11, %v466_v18, %v467_v22  ;;  %v486_v31 = vrot.slane %v485_v27, 2  ;;  %vm1720_vm8 = vcmask 1046528  }
 0x10b   : > { %vm553_vm4 = vcmp.eq.s32.totalorder %v1204_v57, 1  ;;  %vm554_vm6 = vcmp.eq.s32.totalorder %v1241_v3, 1  ;;  %v470_v32 = vrot.slane %v469_v30, 1  ;;  %vm503_vm2 = vcmp.lt.s32.totalorder %v501_v25, %v502_v28 }
 0x10c   : > { %vm1366_vm9 = vmand %vm1164_vm5, %vm553_vm4  ;;  %vm572_vm13 = vcmp.eq.s32.totalorder %v1204_v57, 2  ;;  %vm573_vm14 = vcmp.eq.s32.totalorder %v1241_v3, 2  ;;  %vm487_vm1 = vcmp.lt.s32.totalorder %v485_v27, %v486_v31  ;;  %v504_v34 = vsel %vm503_vm2, %v501_v25, %v502_v28 }
 0x10d   : > { %vm556_vm15 = vmand %vm1152_vm3, %vm554_vm6  ;;  %v557_v35 = vsel %vm1366_vm9, %v1180_v45, 16  ;;  %vm591_vm11 = vcmp.eq.s32.totalorder %v1204_v57, 3  ;;  %vm471_vm0 = vcmp.lt.s32.totalorder %v469_v30, %v470_v32  ;;  %v488_v36 = vsel %vm487_vm1, %v485_v27, %v486_v31 }
 0x10e   : > { %v505_v37 = vrot.slane %v504_v34, 2  ;;  %v558_v38 = vsel %vm556_vm15, %v1189_v53, 16  ;;  %vm1381_vm4 = vmand %vm1164_vm5, %vm572_vm13  ;;  %v472_v40 = vsel %vm471_vm0, %v469_v30, %v470_v32  ;;  %v489_v41 = vrot.slane %v488_v36, 1 }
 0x10f   : > { %v559_v42 = vsel %vm364_vm12, %v557_v35, 2147483647  ;;  %v560_v43 = vsel %vm364_vm12, %v558_v38, 2147483647  ;;  %vm1391_vm6 = vmand %vm1152_vm3, %vm573_vm14  ;;  %vm1760_vm9 = vcmask 1044480   ;;  %v576_v47 = vsel %vm1381_vm4, %v1180_v45, 16 }
 0x110   : > { %vm506_vm2 = vcmp.lt.s32.totalorder %v504_v34, %v505_v37  ;;  %v516_v46 = vsel %vm1760_vm9, %v515_v29, %v472_v40  ;;  %vm561_vm13 = vcmp.lt.s32.totalorder %v559_v42, %v560_v43  ;;  %vm1403_vm1 = vmand %vm1164_vm5, %vm591_vm11  ;;  %vm490_vm14 = vcmp.lt.s32.totalorder %v488_v36, %v489_v41 }
 0x111   : > { %v507_v50 = vsel %vm506_vm2, %v504_v34, %v505_v37  ;;  %v562_v51 = vsel %vm561_vm13, %v559_v42, %v560_v43  ;;  %v577_v52 = vsel %vm1391_vm6, %v1189_v53, 16  ;;  %v491_v55 = vsel %vm490_vm14, %v488_v36, %v489_v41 }
 0x112   : > { %v508_v58 = vrot.slane %v507_v50, 1  ;;  %v563_v59 = vrot.slane %v562_v51, 4  ;;  %v578_v60 = vsel %vm364_vm12, %v576_v47, 2147483647  ;;  %v518_v61 = vsel %vm517_vm7, %v516_v46, %v491_v55 }
 0x113   : > { %v579_v62 = vsel %vm364_vm12, %v577_v52, 2147483647  ;;  %vm592_vm15 = vcmp.eq.s32.totalorder %v1241_v3, 3  ;;  %v595_v63 = vsel %vm1403_vm1, %v1180_v45, 16  ;;  %vm610_vm13 = vcmp.eq.s32.totalorder %v1204_v57, 4 }
 0x114   : > { %vm509_vm11 = vcmp.lt.s32.totalorder %v507_v50, %v508_v58  ;;  %vm564_vm0 = vcmp.lt.s32.totalorder %v562_v51, %v563_v59  ;;  %vm580_vm4 = vcmp.lt.s32.totalorder %v578_v60, %v579_v62  ;;  %vm594_vm6 = vmand %vm1152_vm3, %vm592_vm15  ;;  %v597_v0 = vsel %vm364_vm12, %v595_v63, 2147483647 }
 0x115   : > { %v510_v1 = vsel %vm509_vm11, %v507_v50, %v508_v58  ;;  %v565_v2 = vsel %vm564_vm0, %v562_v51, %v563_v59  ;;  %v581_v4 = vsel %vm580_vm4, %v578_v60, %v579_v62  ;;  %v596_v5 = vsel %vm594_vm6, %v1189_v53, 16  ;;  %vm1429_vm11 = vmand %vm1164_vm5, %vm610_vm13 }
 0x116   : > { %v520_v12 = vsel %vm1720_vm8, %v518_v61, %v510_v1  ;;  %v566_v49 = vrot.slane %v565_v2, 2  ;;  %v582_v6 = vrot.slane %v581_v4, 4  ;;  %v598_v9 = vsel %vm364_vm12, %v596_v5, 2147483647 }
 0x117   : > { %vm521_vm2 = vcmp.eq.s32.totalorder %v520_v12, 16  ;;  %v525_v10 = vrot.slane %v520_v12, %v524_v56  ;;  %vm599_vm9 = vcmp.lt.s32.totalorder %v597_v0, %v598_v9  ;;  %vm611_vm15 = vcmp.eq.s32.totalorder %v1241_v3, 4 }
 0x118   : > { %vm567_vm1 = vcmp.lt.s32.totalorder %v565_v2, %v566_v49  ;;  %vm583_vm14 = vcmp.lt.s32.totalorder %v581_v4, %v582_v6  ;;  %v600_v11 = vsel %vm599_vm9, %v597_v0, %v598_v9  ;;  %vm613_vm0 = vmand %vm1152_vm3, %vm611_vm15  ;;  %v614_v19 = vsel %vm1429_vm11, %v1180_v45, 16 }
 0x119   : > { %v526_v7 = vsel %vm521_vm2, %v525_v10, %v520_v12  ;;  %v568_v14 = vsel %vm567_vm1, %v565_v2, %v566_v49  ;;  %v584_v15 = vsel %vm583_vm14, %v581_v4, %v582_v6  ;;  %v601_v16 = vrot.slane %v600_v11, 4 }
 0x11a   : > { %vm527_vm4 = vcmp.eq.s32.totalorder %v526_v7, 16  ;;  %v569_v17 = vrot.slane %v568_v14, 1  ;;  %v585_v18 = vrot.slane %v584_v15, 2  ;;  %v615_v21 = vsel %vm613_vm0, %v1189_v53, 16 }
 0x11b   : > { %v528_v20 = vsel %vm527_vm4, 0, %v526_v7  ;;  %vm602_vm6 = vcmp.lt.s32.totalorder %v600_v11, %v601_v16  ;;  %v616_v23 = vsel %vm364_vm12, %v614_v19, 2147483647  ;;  %v617_v24 = vsel %vm364_vm12, %v615_v21, 2147483647 }
 0x11c   : > { %529 = vst.msk [vmem:[%s229_s26] sm:$0xff] %vm364_vm12, %v528_v20  ;;  %vm586_vm2 = vcmp.lt.s32.totalorder %v584_v15, %v585_v18  ;;  %v603_v22 = vsel %vm602_vm6, %v600_v11, %v601_v16  ;;  %vm1447_vm9 = vcmp.lt.s32.totalorder %v568_v14, %v569_v17  ;;  %vm618_vm13 = vcmp.lt.s32.totalorder %v616_v23, %v617_v24 }
 0x11d   : > { %v587_v26 = vsel %vm586_vm2, %v584_v15, %v585_v18  ;;  %v604_v27 = vrot.slane %v603_v22, 2  ;;  %v619_v29 = vsel %vm618_vm13, %v616_v23, %v617_v24  ;;  %vm629_vm1 = vcmp.eq.s32.totalorder %v1204_v57, 5 }
 0x11e   : > { %v588_v28 = vrot.slane %v587_v26, 1  ;;  %vm630_vm14 = vcmp.eq.s32.totalorder %v1241_v3, 5  ;;  %v620_v30 = vrot.slane %v619_v29, 4  ;;  %vm631_vm11 = vmand %vm1164_vm5, %vm629_vm1  ;;  %vm648_vm0 = vcmp.eq.s32.totalorder %v1204_v57, 6 }
 0x11f   : > { %vm605_vm15 = vcmp.lt.s32.totalorder %v603_v22, %v604_v27  ;;  %vm649_vm4 = vcmp.eq.s32.totalorder %v1241_v3, 6  ;;  %vm632_vm2 = vmand %vm1152_vm3, %vm630_vm14  ;;  %v633_v32 = vsel %vm631_vm11, %v1180_v45, 16  ;;  %vm667_vm13 = vcmp.eq.s32.totalorder %v1204_v57, 7 }
 0x120   : > { %vm589_vm6 = vcmp.lt.s32.totalorder %v587_v26, %v588_v28  ;;  %v606_v31 = vsel %vm605_vm15, %v603_v22, %v604_v27  ;;  %v1463_v33 = vsel %vm1447_vm9, %v568_v14, %v569_v17  ;;  %vm621_vm8 = vcmp.lt.s32.totalorder %v619_v29, %v620_v30  ;;  %vm650_vm1 = vmand %vm1164_vm5, %vm648_vm0 }
 0x121   : > { %v607_v34 = vrot.slane %v606_v31, 1  ;;  %v634_v35 = vsel %vm632_vm2, %v1189_v53, 16  ;;  %v622_v36 = vsel %vm621_vm8, %v619_v29, %v620_v30  ;;  %v635_v37 = vsel %vm364_vm12, %v633_v32, 2147483647  ;;  %vm651_vm14 = vmand %vm1152_vm3, %vm649_vm4 }
 0x122   : > { %v636_v38 = vsel %vm364_vm12, %v634_v35, 2147483647  ;;  %v652_v39 = vsel %vm650_vm1, %v1180_v45, 16  ;;  %v1473_v40 = vsel %vm589_vm6, %v587_v26, %v588_v28  ;;  %v623_v41 = vrot.slane %v622_v36, 2  ;;  %vm1480_vm8 = vmand %vm1164_vm5, %vm667_vm13 }
 0x123   : > { %vm637_vm9 = vcmp.lt.s32.totalorder %v635_v37, %v636_v38  ;;  %v653_v42 = vsel %vm651_vm14, %v1189_v53, 16  ;;  %vm1484_vm15 = vcmp.lt.s32.totalorder %v606_v31, %v607_v34  ;;  %v654_v47 = vsel %vm364_vm12, %v652_v39, 2147483647 }
 0x124   : > { %v638_v46 = vsel %vm637_vm9, %v635_v37, %v636_v38  ;;  %v655_v48 = vsel %vm364_vm12, %v653_v42, 2147483647  ;;  %vm624_vm11 = vcmp.lt.s32.totalorder %v622_v36, %v623_v41  ;;  %vm668_vm4 = vcmp.eq.s32.totalorder %v1241_v3, 7 }
 0x125   : > { %v639_v50 = vrot.slane %v638_v46, 4  ;;  %vm656_vm0 = vcmp.lt.s32.totalorder %v654_v47, %v655_v48  ;;  %v625_v51 = vsel %vm624_vm11, %v622_v36, %v623_v41  ;;  %vm670_vm6 = vmand %vm1152_vm3, %vm668_vm4  ;;  %v671_v55 = vsel %vm1480_vm8, %v1180_v45, 16 }
 0x126   : > { %v657_v52 = vsel %vm656_vm0, %v654_v47, %v655_v48  ;;  %vm686_vm2 = vcmp.eq.s32.totalorder %v1204_v57, 8  ;;  %v626_v58 = vrot.slane %v625_v51, 1  ;;  %v672_v60 = vsel %vm670_vm6, %v1189_v53, 16 }
 0x127   : > { %vm640_vm13 = vcmp.lt.s32.totalorder %v638_v46, %v639_v50  ;;  %v658_v59 = vrot.slane %v657_v52, 4  ;;  %vm1500_vm1 = vmand %vm1164_vm5, %vm686_vm2  ;;  %v673_v63 = vsel %vm364_vm12, %v671_v55, 2147483647  ;;  %v674_v0 = vsel %vm364_vm12, %v672_v60, 2147483647 }
 0x128   : > { %v641_v62 = vsel %vm640_vm13, %v638_v46, %v639_v50  ;;  %vm687_vm14 = vcmp.eq.s32.totalorder %v1241_v3, 8  ;;  %v1509_v1 = vsel %vm1484_vm15, %v606_v31, %v607_v34  ;;  %vm675_vm8 = vcmp.lt.s32.totalorder %v673_v63, %v674_v0 }
 0x129   : > { %v642_v2 = vrot.slane %v641_v62, 2  ;;  %vm659_vm9 = vcmp.lt.s32.totalorder %v657_v52, %v658_v59  ;;  %vm689_vm11 = vmand %vm1152_vm3, %vm687_vm14  ;;  %vm1513_vm0 = vcmp.lt.s32.totalorder %v625_v51, %v626_v58  ;;  %v676_v12 = vsel %vm675_vm8, %v673_v63, %v674_v0 }
 0x12a   : > { %v660_v5 = vsel %vm659_vm9, %v657_v52, %v658_v59  ;;  %v690_v49 = vsel %vm1500_vm1, %v1180_v45, 16  ;;  %v677_v9 = vrot.slane %v676_v12, 4  ;;  %v691_v10 = vsel %vm689_vm11, %v1189_v53, 16 }
 0x12b   : > { %vm643_vm4 = vcmp.lt.s32.totalorder %v641_v62, %v642_v2  ;;  %v661_v6 = vrot.slane %v660_v5, 2  ;;  %v692_v54 = vsel %vm364_vm12, %v690_v49, 2147483647  ;;  %v693_v7 = vsel %vm364_vm12, %v691_v10, 2147483647 }
 0x12c   : > { %v644_v11 = vsel %vm643_vm4, %v641_v62, %v642_v2  ;;  %vm705_vm15 = vcmp.eq.s32.totalorder %v1204_v57, 9  ;;  %vm678_vm2 = vcmp.lt.s32.totalorder %v676_v12, %v677_v9  ;;  %vm694_vm13 = vcmp.lt.s32.totalorder %v692_v54, %v693_v7 }
 0x12d   : > { %v645_v14 = vrot.slane %v644_v11, 1  ;;  %vm662_vm6 = vcmp.lt.s32.totalorder %v660_v5, %v661_v6  ;;  %vm1526_vm14 = vmand %vm1164_vm5, %vm705_vm15  ;;  %v679_v17 = vsel %vm678_vm2, %v676_v12, %v677_v9  ;;  %v695_v18 = vsel %vm694_vm13, %v692_v54, %v693_v7 }
 0x12e   : > { %v663_v16 = vsel %vm662_vm6, %v660_v5, %v661_v6  ;;  %vm706_vm1 = vcmp.eq.s32.totalorder %v1241_v3, 9  ;;  %v680_v20 = vrot.slane %v679_v17, 2  ;;  %v696_v21 = vrot.slane %v695_v18, 4 }
 0x12f   : > { %vm646_vm9 = vcmp.lt.s32.totalorder %v644_v11, %v645_v14  ;;  %v664_v19 = vrot.slane %v663_v16, 1  ;;  %vm708_vm8 = vmand %vm1152_vm3, %vm706_vm1  ;;  %v1535_v22 = vsel %vm1513_vm0, %v625_v51, %v626_v58  ;;  %v709_v23 = vsel %vm1526_vm14, %v1180_v45, 16 }
 0x130   : > { %v710_v24 = vsel %vm708_vm8, %v1189_v53, 16  ;;  %vm724_vm11 = vcmp.eq.s32.totalorder %v1204_v57, 10  ;;  %v1542_v25 = vsel %vm646_vm9, %v644_v11, %v645_v14  ;;  %vm681_vm15 = vcmp.lt.s32.totalorder %v679_v17, %v680_v20 }
 0x131   : > { %vm1544_vm4 = vcmp.lt.s32.totalorder %v663_v16, %v664_v19  ;;  %vm697_vm6 = vcmp.lt.s32.totalorder %v695_v18, %v696_v21  ;;  %vm1550_vm0 = vmand %vm1164_vm5, %vm724_vm11  ;;  %v682_v28 = vsel %vm681_vm15, %v679_v17, %v680_v20  ;;  %v711_v30 = vsel %vm364_vm12, %v709_v23, 2147483647 }
 0x132   : > { %v698_v29 = vsel %vm697_vm6, %v695_v18, %v696_v21  ;;  %v712_v31 = vsel %vm364_vm12, %v710_v24, 2147483647  ;;  %v683_v32 = vrot.slane %v682_v28, 1  ;;  %vm725_vm13 = vcmp.eq.s32.totalorder %v1241_v3, 10 }
 0x133   : > { %v699_v34 = vrot.slane %v698_v29, 2  ;;  %vm713_vm2 = vcmp.lt.s32.totalorder %v711_v30, %v712_v31  ;;  %vm727_vm14 = vmand %vm1152_vm3, %vm725_vm13  ;;  %v728_v36 = vsel %vm1550_vm0, %v1180_v45, 16  ;;  %vm743_vm1 = vcmp.eq.s32.totalorder %v1204_v57, 11 }
 0x134   : > { %v714_v35 = vsel %vm713_vm2, %v711_v30, %v712_v31  ;;  %vm744_vm9 = vcmp.eq.s32.totalorder %v1241_v3, 11  ;;  %vm684_vm8 = vcmp.lt.s32.totalorder %v682_v28, %v683_v32  ;;  %v729_v38 = vsel %vm727_vm14, %v1189_v53, 16  ;;  %vm1567_vm15 = vmand %vm1164_vm5, %vm743_vm1 }
 0x135   : > { %vm700_vm11 = vcmp.lt.s32.totalorder %v698_v29, %v699_v34  ;;  %v715_v37 = vrot.slane %v714_v35, 4  ;;  %v1573_v41 = vsel %vm1544_vm4, %v663_v16, %v664_v19  ;;  %v730_v43 = vsel %vm364_vm12, %v728_v36, 2147483647  ;;  %vm746_vm6 = vmand %vm1152_vm3, %vm744_vm9 }
 0x136   : > { %v701_v42 = vsel %vm700_vm11, %v698_v29, %v699_v34  ;;  %v731_v44 = vsel %vm364_vm12, %v729_v38, 2147483647  ;;  %v747_v47 = vsel %vm1567_vm15, %v1180_v45, 16  ;;  %v1582_v48 = vsel %vm684_vm8, %v682_v28, %v683_v32 }
 0x137   : > { %v702_v46 = vrot.slane %v701_v42, 1  ;;  %vm716_vm0 = vcmp.lt.s32.totalorder %v714_v35, %v715_v37  ;;  %vm732_vm2 = vcmp.lt.s32.totalorder %v730_v43, %v731_v44  ;;  %v748_v52 = vsel %vm746_vm6, %v1189_v53, 16 }
 0x138   : > { %v717_v50 = vsel %vm716_vm0, %v714_v35, %v715_v37  ;;  %v733_v51 = vsel %vm732_vm2, %v730_v43, %v731_v44  ;;  %v749_v59 = vsel %vm364_vm12, %v747_v47, 2147483647  ;;  %v750_v60 = vsel %vm364_vm12, %v748_v52, 2147483647 }
 0x139   : > { %v718_v55 = vrot.slane %v717_v50, 2  ;;  %v734_v58 = vrot.slane %v733_v51, 4  ;;  %vm1587_vm4 = vcmp.lt.s32.totalorder %v701_v42, %v702_v46  ;;  %vm751_vm13 = vcmp.lt.s32.totalorder %v749_v59, %v750_v60 }
 0x13a   : > { %vm762_vm14 = vcmp.eq.s32.totalorder %v1204_v57, 12  ;;  %vm763_vm1 = vcmp.eq.s32.totalorder %v1241_v3, 12  ;;  %v752_v62 = vsel %vm751_vm13, %v749_v59, %v750_v60  ;;  %vm781_vm15 = vcmp.eq.s32.totalorder %v1204_v57, 13 }
 0x13b   : > { %vm719_vm9 = vcmp.lt.s32.totalorder %v717_v50, %v718_v55  ;;  %vm735_vm8 = vcmp.lt.s32.totalorder %v733_v51, %v734_v58  ;;  %vm764_vm11 = vmand %vm1164_vm5, %vm762_vm14  ;;  %v753_v2 = vrot.slane %v752_v62, 4  ;;  %vm782_vm13 = vcmp.eq.s32.totalorder %v1241_v3, 13 }
 0x13c   : > { %v720_v63 = vsel %vm719_vm9, %v717_v50, %v718_v55  ;;  %v736_v0 = vsel %vm735_vm8, %v733_v51, %v734_v58  ;;  %vm765_vm6 = vmand %vm1152_vm3, %vm763_vm1  ;;  %v766_v4 = vsel %vm764_vm11, %v1180_v45, 16  ;;  %v1614_v54 = vsel %vm1587_vm4, %v701_v42, %v702_v46 }
 0x13d   : > { %v721_v5 = vrot.slane %v720_v63, 1  ;;  %v737_v12 = vrot.slane %v736_v0, 2  ;;  %v767_v49 = vsel %vm765_vm6, %v1189_v53, 16  ;;  %v768_v6 = vsel %vm364_vm12, %v766_v4, 2147483647  ;;  %vm1603_vm0 = vmand %vm1164_vm5, %vm781_vm15 }
 0x13e   : > { %vm754_vm2 = vcmp.lt.s32.totalorder %v752_v62, %v753_v2  ;;  %v769_v10 = vsel %vm364_vm12, %v767_v49, 2147483647  ;;  %v785_v11 = vsel %vm1603_vm0, %v1180_v45, 16  ;;  %vm784_vm9 = vmand %vm1152_vm3, %vm782_vm13  ;;  %vm800_vm11 = vcmp.eq.s32.totalorder %v1204_v57, 14 }
 0x13f   : > { %vm738_vm14 = vcmp.lt.s32.totalorder %v736_v0, %v737_v12  ;;  %v755_v7 = vsel %vm754_vm2, %v752_v62, %v753_v2  ;;  %vm770_vm1 = vcmp.lt.s32.totalorder %v768_v6, %v769_v10  ;;  %vm1618_vm8 = vcmp.lt.s32.totalorder %v720_v63, %v721_v5  ;;  %vm802_vm13 = vmand %vm1164_vm5, %vm800_vm11 }
 0x140   : > { %v739_v15 = vsel %vm738_vm14, %v736_v0, %v737_v12  ;;  %v756_v16 = vrot.slane %v755_v7, 2  ;;  %v771_v17 = vsel %vm770_vm1, %v768_v6, %v769_v10  ;;  %v786_v20 = vsel %vm784_vm9, %v1189_v53, 16 }
 0x141   : > { %v740_v18 = vrot.slane %v739_v15, 1  ;;  %v772_v19 = vrot.slane %v771_v17, 4  ;;  %v787_v21 = vsel %vm364_vm12, %v785_v11, 2147483647  ;;  %v788_v23 = vsel %vm364_vm12, %v786_v20, 2147483647 }
 0x142   : > { %vm757_vm4 = vcmp.lt.s32.totalorder %v755_v7, %v756_v16  ;;  %vm801_vm15 = vcmp.eq.s32.totalorder %v1241_v3, 14  ;;  %vm789_vm2 = vcmp.lt.s32.totalorder %v787_v21, %v788_v23  ;;  %v1631_v26 = vsel %vm1618_vm8, %v720_v63, %v721_v5 }
 0x143   : > { %vm741_vm6 = vcmp.lt.s32.totalorder %v739_v15, %v740_v18  ;;  %v758_v24 = vsel %vm757_vm4, %v755_v7, %v756_v16  ;;  %vm773_vm0 = vcmp.lt.s32.totalorder %v771_v17, %v772_v19  ;;  %v790_v29 = vsel %vm789_vm2, %v787_v21, %v788_v23  ;;  %vm803_vm14 = vmand %vm1152_vm3, %vm801_vm15 }
 0x144   : > { %v759_v27 = vrot.slane %v758_v24, 1  ;;  %v774_v28 = vsel %vm773_vm0, %v771_v17, %v772_v19  ;;  %v791_v31 = vrot.slane %v790_v29, 4  ;;  %v804_v32 = vsel %vm802_vm13, %v1180_v45, 16 }
 0x145   : > { %v775_v30 = vrot.slane %v774_v28, 2  ;;  %v805_v34 = vsel %vm803_vm14, %v1189_v53, 16  ;;  %v742_v35 = vsel %vm741_vm6, %v739_v15, %v740_v18  ;;  %v806_v36 = vsel %vm364_vm12, %v804_v32, 2147483647 }
 0x146   : > { %v807_v37 = vsel %vm364_vm12, %v805_v34, 2147483647  ;;  %vm819_vm1 = vcmp.eq.s32.totalorder %v1204_v57, 15  ;;  %vm1640_vm9 = vcmp.lt.s32.totalorder %v758_v24, %v759_v27  ;;  %vm792_vm4 = vcmp.lt.s32.totalorder %v790_v29, %v791_v31 }
 0x147   : > { %vm776_vm8 = vcmp.lt.s32.totalorder %v774_v28, %v775_v30  ;;  %vm808_vm11 = vcmp.lt.s32.totalorder %v806_v36, %v807_v37  ;;  %vm821_vm15 = vmand %vm1164_vm5, %vm819_vm1  ;;  %v793_v42 = vsel %vm792_vm4, %v790_v29, %v791_v31  ;;  %vm820_vm6 = vcmp.eq.s32.totalorder %v1241_v3, 15 }
 0x148   : > { %v777_v39 = vsel %vm776_vm8, %v774_v28, %v775_v30  ;;  %v809_v43 = vsel %vm808_vm11, %v806_v36, %v807_v37  ;;  %v794_v46 = vrot.slane %v793_v42, 2  ;;  %vm822_vm0 = vmand %vm1152_vm3, %vm820_vm6  ;;  %v823_v50 = vsel %vm821_vm15, %v1180_v45, 16 }
 0x149   : > { %v778_v44 = vrot.slane %v777_v39, 1  ;;  %v810_v47 = vrot.slane %v809_v43, 4  ;;  %v824_v51 = vsel %vm822_vm0, %v1189_v53, 16  ;;  %v825_v52 = vsel %vm364_vm12, %v823_v50, 2147483647 }
 0x14a   : > { %vm838_vm2 = vcmp.eq.s32.totalorder %v1204_v57, 16  ;;  %vm839_vm13 = vcmp.eq.s32.totalorder %v1241_v3, 16  ;;  %vm795_vm1 = vcmp.lt.s32.totalorder %v793_v42, %v794_v46  ;;  %v826_v55 = vsel %vm364_vm12, %v824_v51, 2147483647 }
 0x14b   : > { %vm779_vm14 = vcmp.lt.s32.totalorder %v777_v39, %v778_v44  ;;  %vm811_vm8 = vcmp.lt.s32.totalorder %v809_v43, %v810_v47  ;;  %vm1657_vm4 = vmand %vm1164_vm5, %vm838_vm2  ;;  %v761_v59 = vsel %vm1640_vm9, %v758_v24, %v759_v27  ;;  %v796_v60 = vsel %vm795_vm1, %v793_v42, %v794_v46 }
 0x14c   : > { %v812_v61 = vsel %vm811_vm8, %v809_v43, %v810_v47  ;;  %vm827_vm11 = vcmp.lt.s32.totalorder %v825_v52, %v826_v55  ;;  %vm841_vm15 = vmand %vm1152_vm3, %vm839_vm13  ;;  %v797_v57 = vrot.slane %v796_v60, 1  ;;  %v842_v13 = vsel %vm1657_vm4, %v1180_v45, 16 }
 0x14d   : > { %v813_v3 = vrot.slane %v812_v61, 2  ;;  %v828_v62 = vsel %vm827_vm11, %v825_v52, %v826_v55  ;;  %v780_v63 = vsel %vm779_vm14, %v777_v39, %v778_v44  ;;  %v843_v2 = vsel %vm841_vm15, %v1189_v53, 16 }
 0x14e   : > { %v829_v0 = vrot.slane %v828_v62, 4  ;;  %vm1793_vm5 = vcmask 1040384   ;;  %v844_v5 = vsel %vm364_vm12, %v842_v13, 2147483647  ;;  %v845_v8 = vsel %vm364_vm12, %v843_v2, 2147483647 }
 0x14f   : > { %v857_v4 = vsel %vm1793_vm5, %v1463_v33, %v1473_v40  ;;  %vm814_vm9 = vcmp.lt.s32.totalorder %v812_v61, %v813_v3  ;;  %vm1794_vm3 = vcmask 1041408   ;;  %vm798_vm6 = vcmp.lt.s32.totalorder %v796_v60, %v797_v57  ;;  %vm1796_vm14 = vmmov %vm1793_vm5 }
 0x150   : > { %v858_v12 = vsel %vm1794_vm3, %v857_v4, %v1509_v1  ;;  %v815_v49 = vsel %vm814_vm9, %v812_v61, %v813_v3  ;;  %vm830_vm0 = vcmp.lt.s32.totalorder %v828_v62, %v829_v0  ;;  %vm846_vm2 = vcmp.lt.s32.totalorder %v844_v5, %v845_v8  ;;  %vm1798_vm4 = vmmov %vm1794_vm3 }
 0x151   : > { %v816_v6 = vrot.slane %v815_v49, 1  ;;  %v831_v9 = vsel %vm830_vm0, %v828_v62, %v829_v0  ;;  %v847_v10 = vsel %vm846_vm2, %v844_v5, %v845_v8  ;;  %v859_v53 = vsel %vm513_vm10, %v858_v12, %v1535_v22 }
 0x152   : > { %v832_v11 = vrot.slane %v831_v9, 2  ;;  %v848_v33 = vrot.slane %v847_v10, 4  ;;  %vm1795_vm13 = vcmask 1043456   ;;  %v864_v7 = vsel %vm1796_vm14, %v1631_v26, %v742_v35 }
 0x153   : > { %v860_v40 = vsel %vm1795_vm13, %v859_v53, %v1542_v25  ;;  %v799_v14 = vsel %vm798_vm6, %v796_v60, %v797_v57  ;;  %vm817_vm1 = vcmp.lt.s32.totalorder %v815_v49, %v816_v6  ;;  %vm1797_vm8 = vcmask 1044480   ;;  %vm1800_vm9 = vmmov %vm1795_vm13 }
 0x154   : > { %v861_v1 = vsel %vm1797_vm8, %v860_v40, %v1573_v41  ;;  %v865_v15 = vsel %vm1798_vm4, %v864_v7, %v761_v59  ;;  %v818_v16 = vsel %vm817_vm1, %v815_v49, %v816_v6  ;;  %vm833_vm11 = vcmp.lt.s32.totalorder %v831_v9, %v832_v11  ;;  %vm1801_vm6 = vmmov %vm1797_vm8 }
 0x155   : > { %vm849_vm15 = vcmp.lt.s32.totalorder %v847_v10, %v848_v33  ;;  %v862_v22 = vsel %vm517_vm7, %v861_v1, %v1582_v48  ;;  %v834_v17 = vsel %vm833_vm11, %v831_v9, %v832_v11  ;;  %vm1799_vm5 = vcmask 1046528  }
 0x156   : > { %v850_v18 = vsel %vm849_vm15, %v847_v10, %v848_v33  ;;  %v863_v25 = vsel %vm1799_vm5, %v862_v22, %v1614_v54  ;;  %v866_v19 = vsel %vm513_vm10, %v865_v15, %v780_v63  ;;  %v835_v20 = vrot.slane %v834_v17, 1  ;;  %vm1802_vm14 = vmmov %vm1799_vm5 }
 0x157   : > { %v851_v21 = vrot.slane %v850_v18, 2  ;;  %v867_v41 = vsel %vm1800_vm9, %v866_v19, %v799_v14  ;;  %vm871_vm3 = vcmp.eq.s32.totalorder %v863_v25, 16  ;;  %v876_v24 = vrot.slane %v863_v25, %v524_v56 }
 0x158   : > { %v868_v23 = vsel %vm1801_vm6, %v867_v41, %v818_v16  ;;  %vm836_vm0 = vcmp.lt.s32.totalorder %v834_v17, %v835_v20 }
 0x159   : > { %vm852_vm2 = vcmp.lt.s32.totalorder %v850_v18, %v851_v21  ;;  %v837_v48 = vsel %vm836_vm0, %v834_v17, %v835_v20  ;;  %v877_v26 = vsel %vm871_vm3, %v876_v24, %v863_v25 }
 0x15a   : > { %v853_v54 = vsel %vm852_vm2, %v850_v18, %v851_v21  ;;  %v869_v28 = vsel %vm517_vm7, %v868_v23, %v837_v48  ;;  %vm879_vm10 = vcmp.eq.s32.totalorder %v877_v26, 16 }
 0x15b   : > { %v854_v27 = vrot.slane %v853_v54, 1  ;;  %v881_v29 = vsel %vm879_vm10, 0, %v877_v26 }
 0x15c   : > { %883 = vst.msk [vmem:[%s237_s29] sm:$0xff] %vm364_vm12, %v881_v29 }
 0x15d   : > { %vm855_vm13 = vcmp.lt.s32.totalorder %v853_v54, %v854_v27 }
 0x15e   : > { %v856_v45 = vsel %vm855_vm13, %v853_v54, %v854_v27 }
 0x15f   : > { %v870_v56 = vsel %vm1802_vm14, %v869_v28, %v856_v45 }
 0x160   : > { %vm872_vm1 = vcmp.eq.s32.totalorder %v870_v56, 16 }
 0x161   : > { %v878_v30 = vsel %vm872_vm1, %v876_v24, %v870_v56 }
 0x162   : > { %vm880_vm8 = vcmp.eq.s32.totalorder %v878_v30, 16 }
 0x163   : > { %v882_v31 = vsel %vm880_vm8, 0, %v878_v30 }
 0x164   : > { %884 = vst.msk [vmem:[%s237_s29 + $0x8] sm:$0xff] %vm364_vm12, %v882_v31 }
 0x165 PF: > { %s14_s14 = sadd.s32 1, %s1091_s14   ;;  %s1803_s12 = smov %s1087_s13 }
 0x166   : > { %p11_p5 = scmp.ge.s32.totalorder %s14_s14, 4   ;;  %s1804_s13 = smov %s1806_s15 }
 0x168   :  { %13 = sbr.rel (!%p11_p5) target bundleno = 2 (0x2), region = 73 }

// kernel: _lambda_.7
= control target key start
LH: loop header
LB: loop body
LE: loop exit
PB: predicated region body
PF: predicated region fallthrough
CT: control target
= control target key end

     0   :  { %s3422_s18 = smov 0   ;;  %s3424_s19 = smov 0   ;;  %s4422_s0 = inlined_call_operand.vmem [shape: bf16[2,8,16,8], index: 0, kind: input, shape index: {}]   ;;  %s4423_s1 = inlined_call_operand.vmem [shape: bf16[16,8], index: 1, kind: input, shape index: {}]   ;;  %s4424_s2 = inlined_call_operand.vmem [shape: f32[16,1], index: 2, kind: input, shape index: {}]   ;;  %s4425_s3 = inlined_call_operand.vmem [shape: bf16[64,16], index: 3, kind: input, shape index: {}]   ;;  %s4426_s4 = inlined_call_operand.vmem [shape: f32[64,1], index: 4, kind: input, shape index: {}]   ;;  %s4427_s5 = inlined_call_operand.vmem [shape: f32[2,64,8], index: 5, kind: output, shape index: {}]  }
   0x1   :  { %s3426_s20 = smov 0  }
   0x2 LB: > { %s27_s21 = sadd.s32 1, %s3383_s19  ;;  %p2832_p0 = scmp.ge.s32.totalorder %s3387_s20, 1  ;;  %s3387_s20 = sphi %s3426_s20, %s15_s20   ;;  %s3383_s19 = sphi %s3424_s19, %s4429_s19   ;;  %s3379_s18 = sphi %s3422_s18, %s4428_s18  }
   0x3   : > { %p29_p1 = scmp.ge.s32.totalorder %s27_s21, 2  ;;  %p206_p2 = scmp.lt.s32.totalorder %s3387_s20, 3 }
   0x5   : > { %s4431_s21 = smov (%p29_p1, %s27_s21), 0  ;;  %p207_p3 = pnand %p2832_p0, %p206_p2 }
   0x6   : > { %p240_p4 = scmp.lt.s32.totalorder (!%p207_p3), %s3379_s18, 1 }
   0x7   : > { %210 = sbr.rel (%p207_p3) target bundleno = 2017 (0x7e1), region = 40 }
   0xc   : > { %v3389_v0 = vmov 0.0   ;;  %s4433_s18 = smov (!%p240_p4, %s3379_s18), 1  ;;  %vm3390_vm0 = vmmov 0   ;;  %v275_v1 = vld [vmem:[%s4424_s2] sm:$0xff]  ;;  %vm325_vm1 = vcmask 1041409   ;;  %v3391_v2 = vmov 0  }
   0xd   : > { %3054 = vmatprep.subr.bf16.mxu1 %v3389_v0  ;;  %3070 = vmatprep.subr.bf16.mxu0 %v3389_v0  ;;  %s2940_s24 = sshll.u32 %s4433_s18, 6  ;;  %v276_v3 = vld [vmem:[%s4424_s2 + $0x8] sm:$0xff]  ;;  %vm328_vm2 = vcmask 1042434   ;;  %vm331_vm3 = vcmask 1043459   ;;  %vm334_vm4 = vcmask 1044484   ;;  %vm337_vm5 = vcmask 1045509  }
   0xe   : > { %3056 = vmatprep.mubr.msk.bf16.mxu1 %vm3390_vm0, %v3389_v0  ;;  %3072 = vmatprep.mubr.msk.bf16.mxu0 %vm3390_vm0, %v3389_v0  ;;  %s3460_s29 = scalar_lea.vmem %s4422_s0, %s2940_s24  ;;  %v408_v5 = vld [vmem:[%s4426_s4 + $0x10] sm:$0xff]  ;;  %vm340_vm6 = vcmask 1046534   ;;  %vm343_vm7 = vcmask 1047559   ;;  %v410_v27 = vld [vmem:[%s4426_s4 + $0x20] sm:$0xff]  ;;  %vm350_vm8 = vcmask 1043456   ;;  %vm346_vm9 = vcmask 64512   ;;  %s4377_s28 = scalar_lea.vmem %s4427_s5, %s2940_s24 }
   0xf   : > { %3337 = vset.pattern.permute.xlu0 %v3391_v2  ;;  %3338 = vset.pattern.permute.xlu1 %v3391_v2  ;;  %v3339_v4 = vld [vmem:[%s3460_s29] ss:$0 sps:$4 sm:$0xff]   ;;  %v3340_v6 = vld [vmem:[%s3460_s29 + $0x8] ss:$0 sps:$4 sm:$0xff]   ;;  %v3341_v7 = vld [vmem:[%s3460_s29 + $0x10] ss:$0 sps:$4 sm:$0xff]  }
  0x10   : > { %279 = vperm.xlu0 %3337, %v275_v1   ;;  %v3342_v8 = vld [vmem:[%s3460_s29 + $0x18] ss:$0 sps:$4 sm:$0xff]   ;;  %v3343_v9 = vld [vmem:[%s3460_s29 + $0x20] ss:$0 sps:$4 sm:$0xff]   ;;  %v3344_v10 = vld [vmem:[%s3460_s29 + $0x28] ss:$0 sps:$4 sm:$0xff]   ;;  %v3472_v12 = vunpack.c.l.b16 %v3339_v4  ;;  %v3475_v14 = vunpack.c.l.b16 %v3340_v6  ;;  %v3477_v15 = vunpack.c.l.b16 %v3341_v7 }
  0x11   : > { %v3345_v11 = vld [vmem:[%s3460_s29 + $0x30] ss:$0 sps:$4 sm:$0xff]   ;;  %v3346_v13 = vld [vmem:[%s3460_s29 + $0x38] ss:$0 sps:$4 sm:$0xff]   ;;  %v3479_v16 = vunpack.c.l.b16 %v3342_v8  ;;  %v3481_v17 = vunpack.c.l.b16 %v3343_v9  ;;  %v3483_v18 = vunpack.c.l.b16 %v3344_v10  ;;  %v3529_v54 = vld [vmem:[%s4423_s1] sm:$0xff]   ;;  %vm474_vm10 = vcmask 130048  }
  0x12   : > { %v3485_v19 = vunpack.c.l.b16 %v3345_v11  ;;  %v560_v20 = vrot.slane %v3472_v12, 1  ;;  %v3488_v21 = vunpack.c.l.b16 %v3346_v13  ;;  %v324_v22 = vrot.slane %v3475_v14, 7  ;;  %v412_v43 = vld [vmem:[%s4426_s4 + $0x30] sm:$0xff]  ;;  %v3539_v56 = vld [vmem:[%s4425_s3] sm:$0xff]   ;;  %v407_v58 = vld [vmem:[%s4426_s4 + $0x8] sm:$0xff] }
  0x13   : > { %v327_v23 = vrot.slane %v3477_v15, 6  ;;  %v330_v24 = vrot.slane %v3479_v16, 5  ;;  %v333_v25 = vrot.slane %v3481_v17, 4  ;;  %v336_v29 = vrot.slane %v3483_v18, 3  ;;  %v406_v57 = vld [vmem:[%s4426_s4] sm:$0xff]  ;;  %v409_v59 = vld [vmem:[%s4426_s4 + $0x18] sm:$0xff] }
  0x14   : > { %284 = vperm.xlu0 %3337, %v276_v3   ;;  %v561_v26 = vsel %vm325_vm1, %v3475_v14, %v560_v20  ;;  %v326_v28 = vsel %vm325_vm1, %v324_v22, %v3472_v12  ;;  %v562_v30 = vrot.slane %v3477_v15, 7  ;;  %v564_v31 = vrot.slane %v3479_v16, 6  ;;  %416 = vperm.xlu1 %3338, %v406_v57   ;;  %v411_v60 = vld [vmem:[%s4426_s4 + $0x28] sm:$0xff]  ;;  %v413_v61 = vld [vmem:[%s4426_s4 + $0x38] sm:$0xff] }
  0x15   : > { %v329_v32 = vsel %vm328_vm2, %v327_v23, %v326_v28  ;;  %v339_v33 = vrot.slane %v3485_v19, 2  ;;  %v566_v34 = vrot.slane %v3481_v17, 5  ;;  %v568_v35 = vrot.slane %v3483_v18, 4 }
  0x16   : > { %v332_v36 = vsel %vm331_vm3, %v330_v24, %v329_v32  ;;  %v342_v37 = vrot.slane %v3488_v21, 1  ;;  %v563_v38 = vsel %vm328_vm2, %v562_v30, %v561_v26  ;;  %v570_v39 = vrot.slane %v3485_v19, 3 }
  0x17   : > { %v335_v40 = vsel %vm334_vm4, %v333_v25, %v332_v36  ;;  %v565_v41 = vsel %vm331_vm3, %v564_v31, %v563_v38  ;;  %v572_v42 = vrot.slane %v3488_v21, 2  ;;  %v703_v62 = vrot.slane %v3472_v12, 2 }
  0x18   : > { %426 = vperm.xlu0 %3337, %v408_v5   ;;  %v338_v44 = vsel %vm337_vm5, %v336_v29, %v335_v40  ;;  %v567_v45 = vsel %vm334_vm4, %v566_v34, %v565_v41  ;;  %421 = vperm.xlu1 %3338, %v407_v58   ;;  %v704_v63 = vrot.slane %v3475_v14, 1  ;;  %v846_v1 = vrot.slane %v3472_v12, 3  ;;  %v3601_v58 = vld [vmem:[%s4425_s3 + $0x8] sm:$0xff]  }
  0x19   : > { %v341_v46 = vsel %vm340_vm6, %v339_v33, %v338_v44  ;;  %v569_v47 = vsel %vm337_vm5, %v568_v35, %v567_v45  ;;  %v847_v2 = vrot.slane %v3475_v14, 2  ;;  %v849_v4 = vrot.slane %v3477_v15, 1 }
  0x1a   : > { %v344_v48 = vsel %vm343_vm7, %v342_v37, %v341_v46  ;;  %v571_v49 = vsel %vm340_vm6, %v570_v39, %v569_v47  ;;  %v705_v3 = vsel %vm325_vm1, %v704_v63, %v703_v62  ;;  %v707_v5 = vrot.slane %v3479_v16, 7  ;;  %v3623_v63 = vld [vmem:[%s4425_s3 + $0x18] sm:$0xff]  }
  0x1b   : > { %v345_v50 = vpack.c.b16 %v344_v48, %v344_v48  ;;  %v573_v51 = vsel %vm343_vm7, %v572_v42, %v571_v49  ;;  %v848_v6 = vsel %vm325_vm1, %v847_v2, %v846_v1  ;;  %v706_v7 = vsel %vm328_vm2, %v3477_v15, %v705_v3 }
  0x1c   : > { %436 = vperm.xlu0 %3337, %v410_v27   ;;  %v574_v52 = vpack.c.b16 %v573_v51, %v573_v51  ;;  %431 = vperm.xlu1 %3338, %v409_v59   ;;  %v709_v8 = vrot.slane %v3481_v17, 6  ;;  %v850_v9 = vsel %vm328_vm2, %v849_v4, %v848_v6  ;;  %v708_v10 = vsel %vm331_vm3, %v707_v5, %v706_v7 }
  0x1d   : > { %v352_v53 = vsel %vm350_vm8, %v345_v50, 0  ;;  %v852_v11 = vrot.slane %v3481_v17, 7  ;;  %v711_v13 = vrot.slane %v3483_v18, 5  ;;  %v851_v20 = vsel %vm331_vm3, %v3479_v16, %v850_v9 }
  0x1e   : > { %3055 = vmatpush3.bf16.msra.mxu1 %v352_v53  ;;  %v576_v55 = vsel %vm350_vm8, %v574_v52, 0  ;;  %v710_v22 = vsel %vm334_vm4, %v709_v8, %v708_v10  ;;  %v854_v24 = vrot.slane %v3483_v18, 6  ;;  %v713_v25 = vrot.slane %v3485_v19, 4 }
  0x1f   : > { %3071 = vmatpush3.bf16.msra.mxu0 %v576_v55  ;;  %v853_v26 = vsel %vm334_vm4, %v852_v11, %v851_v20  ;;  %v712_v28 = vsel %vm337_vm5, %v711_v13, %v710_v22  ;;  %v856_v30 = vrot.slane %v3485_v19, 5  ;;  %v715_v32 = vrot.slane %v3488_v21, 3 }
  0x20   : > { %446 = vperm.xlu0 %3337, %v412_v43   ;;  %441 = vperm.xlu1 %3338, %v411_v60   ;;  %v855_v33 = vsel %vm337_vm5, %v854_v24, %v853_v26  ;;  %v714_v36 = vsel %vm340_vm6, %v713_v25, %v712_v28  ;;  %v858_v40 = vrot.slane %v3488_v21, 4  ;;  %v989_v6 = vrot.slane %v3472_v12, 4 }
  0x21   : > { %3057 = vmatmul.mubr.msk.bf16.vlgmr.msra.gmra.mxu1 %vm346_vm9, %v3529_v54  ;;  %v857_v43 = vsel %vm340_vm6, %v856_v30, %v855_v33  ;;  %v716_v46 = vsel %vm343_vm7, %v715_v32, %v714_v36  ;;  %v990_v7 = vrot.slane %v3475_v14, 3  ;;  %v1132_v20 = vrot.slane %v3472_v12, 5 }
  0x22   : > { %3073 = vmatmul.mubr.msk.bf16.vlgmr.msra.gmra.mxu0 %vm346_vm9, %v3529_v54  ;;  %3062 = vmatprep.mubr.msk.bf16.mxu1 %vm474_vm10, %v3539_v56  ;;  %v859_v52 = vsel %vm343_vm7, %v858_v40, %v857_v43  ;;  %v717_v55 = vpack.c.b16 %v716_v46, %v716_v46  ;;  %v1133_v22 = vrot.slane %v3475_v14, 4  ;;  %v994_v36 = vrot.slane %v3479_v16, 1 }
  0x23   : > { %3078 = vmatprep.mubr.msk.bf16.mxu0 %vm474_vm10, %v3539_v56  ;;  %v860_v59 = vpack.c.b16 %v859_v52, %v859_v52  ;;  %v991_v32 = vsel %vm325_vm1, %v990_v7, %v989_v6 }
  0x24   : > { %451 = vperm.xlu1 %3338, %v413_v61   ;;  %v719_v60 = vsel %vm350_vm8, %v717_v55, 0  ;;  %v3608_v61 = vld [vmem:[%s4425_s3 + $0x10] sm:$0xff]   ;;  %v1134_v43 = vsel %vm325_vm1, %v1133_v22, %v1132_v20  ;;  %v997_v22 = vrot.slane %v3483_v18, 7 }
  0x25   : > { %v862_v62 = vsel %vm350_vm8, %v860_v59, 0 }
  0x8b   : > { %v3578_v23 = vpop.permute.xlu0 %279 }
  0x8f   : > { %v3589_v37 = vpop.permute.xlu0 %284  ;;  %v3641_v1 = vpop.permute.xlu1 %416 }
  0x93   : > { %v3643_v2 = vpop.permute.xlu1 %421  ;;  %v3645_v3 = vpop.permute.xlu0 %426 }
  0x97   : > { %v3647_v4 = vpop.permute.xlu1 %431  ;;  %v3652_v10 = vpop.permute.xlu0 %436 }
  0xe1   : > { %v388_v27 = vpop.f32.mrf.mxu1 }
  0xe2   : > { %v612_v29 = vpop.f32.mrf.mxu0  ;;  %v389_v34 = vadd.f32 %v388_v27, %v3578_v23  ;;  %v992_v27 = vrot.slane %v3477_v15, 2 }
  0xe3   : > { %v3058_v31 = vpop.f32.mrf.mxu1  ;;  %v613_v38 = vadd.f32 %v612_v29, %v3578_v23 }
  0xe4   : > { %v3074_v35 = vpop.f32.mrf.mxu0  ;;  %v395_v47 = vmax.f32 %v389_v34, 0.0  ;;  %v3660_v31 = vpop.permute.xlu1 %441 }
  0xe5   : > { %v391_v39 = vpop.f32.mrf.mxu1  ;;  %v619_v50 = vmax.f32 %v613_v38, 0.0  ;;  %v1135_v38 = vrot.slane %v3477_v15, 3 }
  0xe6   : > { %v392_v41 = vadd.f32 %v391_v39, %v3589_v37  ;;  %v615_v42 = vpop.f32.mrf.mxu0 }
  0xe7   : > { %v616_v44 = vadd.f32 %v615_v42, %v3589_v37  ;;  %v3059_v45 = vpop.f32.mrf.mxu1 }
  0xe8   : > { %v396_v48 = vmax.f32 %v392_v41, 0.0  ;;  %v3075_v49 = vpop.f32.mrf.mxu0 }
  0xe9   : > { %v620_v51 = vmax.f32 %v616_v44, 0.0 }
  0xea   : > { %v397_v53 = vpack.c.bf16 %v396_v48, %v395_v47  ;;  %v993_v47 = vsel %vm328_vm2, %v992_v27, %v991_v32  ;;  %v3672_v48 = vpop.permute.xlu0 %446 }
  0xeb   : > { %v621_v57 = vpack.c.bf16 %v620_v51, %v619_v50 }
  0xec   : > { %3060 = vmatprep.subr.bf16.mxu1 %v397_v53 }
  0xed   : > { %3076 = vmatprep.subr.bf16.mxu0 %v621_v57  ;;  %3061 = vmatpush3.bf16.msra.mxu1 %v397_v53  ;;  %v1137_v53 = vrot.slane %v3479_v16, 2 }
  0xee   : > { %3077 = vmatpush3.bf16.msra.mxu0 %v621_v57  ;;  %3086 = vmatprep.subr.bf16.mxu1 %v3389_v0 }
  0xef   : > { %3102 = vmatprep.subr.bf16.mxu0 %v3389_v0 }
  0xf0   : > { %3063 = vmatmul.mubr.msk.bf16.vlgmr.msra.gmra.mxu1 %vm474_vm10, %v3601_v58 }
  0xf1   : > { %3079 = vmatmul.mubr.msk.bf16.vlgmr.msra.gmra.mxu0 %vm474_vm10, %v3601_v58  ;;  %3087 = vmatpush3.bf16.msra.mxu1 %v719_v60  ;;  %v1136_v60 = vsel %vm328_vm2, %v1135_v38, %v1134_v43 }
  0xf2   : > { %3066 = vmatprep.mubr.msk.bf16.mxu1 %vm474_vm10, %v3608_v61  ;;  %3082 = vmatprep.mubr.msk.bf16.mxu0 %vm474_vm10, %v3608_v61 }
  0xf3   : > { %3103 = vmatpush3.bf16.msra.mxu0 %v862_v62 }
  0xf8   : > { %3067 = vmatmul.mubr.msk.bf16.gmra.mxu1 %vm474_vm10, %v3623_v63 }
  0xf9   : > { %3083 = vmatmul.mubr.msk.bf16.gmra.mxu0 %vm474_vm10, %v3623_v63  ;;  %3088 = vmatprep.mubr.msk.bf16.mxu1 %vm3390_vm0, %v3389_v0 }
  0xfa   : > { %3104 = vmatprep.mubr.msk.bf16.mxu0 %vm3390_vm0, %v3389_v0 }
 0x100   : > { %3089 = vmatmul.mubr.msk.bf16.vlgmr.msra.gmra.mxu1 %vm346_vm9, %v3529_v54 }
 0x101   : > { %3105 = vmatmul.mubr.msk.bf16.vlgmr.msra.gmra.mxu0 %vm346_vm9, %v3529_v54  ;;  %3094 = vmatprep.mubr.msk.bf16.mxu1 %vm474_vm10, %v3539_v56 }
 0x102   : > { %3110 = vmatprep.mubr.msk.bf16.mxu0 %vm474_vm10, %v3539_v56 }
 0x1b0   : > { %v3064_v5 = vpop.f32.mrf.mxu1 }
 0x1b1   : > { %v530_v8 = vadd.f32 %v3064_v5, %v3645_v3  ;;  %v3080_v9 = vpop.f32.mrf.mxu0 }
 0x1b2   : > { %v665_v11 = vadd.f32 %v3080_v9, %v3645_v3  ;;  %v521_v13 = vpop.f32.mrf.mxu1  ;;  %v995_v9 = vsel %vm331_vm3, %v994_v36, %v993_v47 }
 0x1b3   : > { %v554_v24 = vmax.f32 %v530_v8, 0.0  ;;  %v522_v25 = vadd.f32 %v521_v13, %v3641_v1  ;;  %v656_v26 = vpop.f32.mrf.mxu0  ;;  %v3683_v8 = vpop.permute.xlu1 %451 }
 0x1b4   : > { %v689_v28 = vmax.f32 %v665_v11, 0.0  ;;  %v657_v29 = vadd.f32 %v656_v26, %v3641_v1  ;;  %v3065_v30 = vpop.f32.mrf.mxu1 }
 0x1b5   : > { %v552_v33 = vmax.f32 %v522_v25, 0.0  ;;  %v533_v34 = vadd.f32 %v3065_v30, %v3647_v4  ;;  %v3081_v35 = vpop.f32.mrf.mxu0 }
 0x1b6   : > { %v3666_v39 = vmax.f32 %v554_v24, %v689_v28  ;;  %v687_v40 = vmax.f32 %v657_v29, 0.0  ;;  %v668_v41 = vadd.f32 %v3081_v35, %v3647_v4  ;;  %v524_v42 = vpop.f32.mrf.mxu1  ;;  %v1139_v24 = vrot.slane %v3481_v17, 1 }
 0x1b7   : > { %v555_v44 = vmax.f32 %v533_v34, 0.0  ;;  %v525_v45 = vadd.f32 %v524_v42, %v3643_v2  ;;  %v659_v46 = vpop.f32.mrf.mxu0  ;;  %v1138_v29 = vsel %vm331_vm3, %v1137_v53, %v1136_v60  ;;  %v996_v34 = vsel %vm334_vm4, %v3481_v17, %v995_v9 }
 0x1b8   : > { %v3674_v49 = vmax.f32 %v552_v33, %v687_v40  ;;  %v690_v50 = vmax.f32 %v668_v41, 0.0  ;;  %v660_v51 = vadd.f32 %v659_v46, %v3643_v2  ;;  %v3068_v52 = vpop.f32.mrf.mxu1 }
 0x1b9   : > { %v553_v55 = vmax.f32 %v525_v45, 0.0  ;;  %v546_v57 = vadd.f32 %v3068_v52, %v3672_v48  ;;  %v3084_v59 = vpop.f32.mrf.mxu0  ;;  %v1140_v45 = vsel %vm334_vm4, %v1139_v24, %v1138_v29  ;;  %v998_v52 = vsel %vm337_vm5, %v997_v22, %v996_v34 }
 0x1ba   : > { %v3680_v62 = vmax.f32 %v555_v44, %v690_v50  ;;  %v688_v5 = vmax.f32 %v660_v51, 0.0  ;;  %v681_v6 = vadd.f32 %v3084_v59, %v3672_v48  ;;  %v537_v7 = vpop.f32.mrf.mxu1  ;;  %v999_v44 = vrot.slane %v3485_v19, 6 }
 0x1bb   : > { %v558_v11 = vmax.f32 %v546_v57, 0.0  ;;  %v538_v13 = vadd.f32 %v537_v7, %v3652_v10  ;;  %v672_v20 = vpop.f32.mrf.mxu0  ;;  %v1142_v57 = vrot.slane %v3485_v19, 7  ;;  %v1141_v7 = vsel %vm337_vm5, %v3483_v18, %v1140_v45 }
 0x1bc   : > { %v3689_v25 = vmax.f32 %v553_v55, %v688_v5  ;;  %v693_v26 = vmax.f32 %v681_v6, 0.0  ;;  %v673_v27 = vadd.f32 %v672_v20, %v3652_v10  ;;  %v3069_v28 = vpop.f32.mrf.mxu1  ;;  %v1001_v6 = vrot.slane %v3488_v21, 5 }
 0x1bd   : > { %v556_v30 = vmax.f32 %v538_v13, 0.0  ;;  %v549_v32 = vadd.f32 %v3069_v28, %v3683_v8  ;;  %v3085_v33 = vpop.f32.mrf.mxu0  ;;  %v1000_v13 = vsel %vm340_vm6, %v999_v44, %v998_v52  ;;  %v1143_v29 = vsel %vm340_vm6, %v1142_v57, %v1141_v7 }
 0x1be   : > { %v3696_v35 = vmax.f32 %v558_v11, %v693_v26  ;;  %v691_v36 = vmax.f32 %v673_v27, 0.0  ;;  %v684_v38 = vadd.f32 %v3085_v33, %v3683_v8  ;;  %v540_v40 = vpop.f32.mrf.mxu1  ;;  %v1144_v26 = vrot.slane %v3488_v21, 6 }
 0x1bf   : > { %v559_v41 = vmax.f32 %v549_v32, 0.0  ;;  %v541_v42 = vadd.f32 %v540_v40, %v3660_v31  ;;  %v675_v43 = vpop.f32.mrf.mxu0  ;;  %v1002_v33 = vsel %vm343_vm7, %v1001_v6, %v1000_v13  ;;  %v1275_v52 = vrot.slane %v3472_v12, 6 }
 0x1c0   : > { %v3702_v46 = vmax.f32 %v556_v30, %v691_v36  ;;  %v694_v47 = vmax.f32 %v684_v38, 0.0  ;;  %v676_v50 = vadd.f32 %v675_v43, %v3660_v31  ;;  %v755_v51 = vpop.f32.mrf.mxu1  ;;  %v1003_v44 = vpack.c.b16 %v1002_v33, %v1002_v33 }
 0x1c1   : > { %v557_v53 = vmax.f32 %v541_v42, 0.0  ;;  %v898_v55 = vpop.f32.mrf.mxu0  ;;  %v756_v9 = vadd.f32 %v755_v51, %v3578_v23  ;;  %v1145_v42 = vsel %vm343_vm7, %v1144_v26, %v1143_v29  ;;  %v1418_v57 = vrot.slane %v3472_v12, 7 }
 0x1c2   : > { %v3707_v59 = vmax.f32 %v559_v41, %v694_v47  ;;  %v692_v60 = vmax.f32 %v676_v50, 0.0  ;;  %v3090_v5 = vpop.f32.mrf.mxu1  ;;  %v899_v22 = vadd.f32 %v898_v55, %v3578_v23  ;;  %v1146_v47 = vpack.c.b16 %v1145_v42, %v1145_v42 }
 0x1c3   : > { %v3106_v11 = vpop.f32.mrf.mxu0  ;;  %v762_v34 = vmax.f32 %v756_v9, 0.0  ;;  %v1005_v50 = vsel %vm350_vm8, %v1003_v44, 0  ;;  %v1278_v55 = vrot.slane %v3477_v15, 4  ;;  %v1423_v33 = vrot.slane %v3479_v16, 4 }
 0x1c4   : > { %v3714_v20 = vmax.f32 %v557_v53, %v692_v60  ;;  %v758_v24 = vpop.f32.mrf.mxu1  ;;  %v905_v40 = vmax.f32 %v899_v22, 0.0  ;;  %v1148_v51 = vsel %vm350_vm8, %v1146_v47, 0  ;;  %v1276_v53 = vrot.slane %v3475_v14, 5 }
 0x1c5   : > { %v759_v27 = vadd.f32 %v758_v24, %v3589_v37  ;;  %v901_v28 = vpop.f32.mrf.mxu0  ;;  %v1419_v60 = vrot.slane %v3475_v14, 6  ;;  %v1280_v22 = vrot.slane %v3479_v16, 3  ;;  %v1421_v24 = vrot.slane %v3477_v15, 5 }
 0x1c6   : > { %v902_v30 = vadd.f32 %v901_v28, %v3589_v37  ;;  %v3091_v32 = vpop.f32.mrf.mxu1  ;;  %v1277_v6 = vsel %vm325_vm1, %v1276_v53, %v1275_v52 }
 0x1c7   : > { %v763_v36 = vmax.f32 %v759_v27, 0.0  ;;  %v3107_v38 = vpop.f32.mrf.mxu0  ;;  %v1279_v12 = vsel %vm328_vm2, %v1278_v55, %v1277_v6  ;;  %v1420_v14 = vsel %vm325_vm1, %v1419_v60, %v1418_v57  ;;  %v1282_v32 = vrot.slane %v3481_v17, 2 }
 0x1c8   : > { %v906_v41 = vmax.f32 %v902_v30, 0.0  ;;  %v1281_v44 = vsel %vm331_vm3, %v1280_v22, %v1279_v12  ;;  %v1284_v57 = vrot.slane %v3483_v18, 1  ;;  %v1425_v60 = vrot.slane %v3481_v17, 3 }
 0x1c9   : > { %v764_v43 = vpack.c.bf16 %v763_v36, %v762_v34 }
 0x1ca   : > { %v907_v45 = vpack.c.bf16 %v906_v41, %v905_v40 }
 0x1cb   : > { %3092 = vmatprep.subr.bf16.mxu1 %v764_v43 }
 0x1cc   : > { %3108 = vmatprep.subr.bf16.mxu0 %v907_v45  ;;  %3093 = vmatpush3.bf16.msra.mxu1 %v764_v43 }
 0x1cd   : > { %3109 = vmatpush3.bf16.msra.mxu0 %v907_v45  ;;  %3118 = vmatprep.subr.bf16.mxu1 %v3389_v0  ;;  %v1422_v45 = vsel %vm328_vm2, %v1421_v24, %v1420_v14  ;;  %v1283_v24 = vsel %vm334_vm4, %v1282_v32, %v1281_v44 }
 0x1ce   : > { %3134 = vmatprep.subr.bf16.mxu0 %v3389_v0 }
 0x1cf   : > { %3095 = vmatmul.mubr.msk.bf16.vlgmr.msra.gmra.mxu1 %vm474_vm10, %v3601_v58 }
 0x1d0   : > { %3111 = vmatmul.mubr.msk.bf16.vlgmr.msra.gmra.mxu0 %vm474_vm10, %v3601_v58  ;;  %3119 = vmatpush3.bf16.msra.mxu1 %v1005_v50 }
 0x1d1   : > { %3098 = vmatprep.mubr.msk.bf16.mxu1 %vm474_vm10, %v3608_v61  ;;  %3114 = vmatprep.mubr.msk.bf16.mxu0 %vm474_vm10, %v3608_v61 }
 0x1d2   : > { %3135 = vmatpush3.bf16.msra.mxu0 %v1148_v51 }
 0x1d7   : > { %3099 = vmatmul.mubr.msk.bf16.gmra.mxu1 %vm474_vm10, %v3623_v63 }
 0x1d8   : > { %3115 = vmatmul.mubr.msk.bf16.gmra.mxu0 %vm474_vm10, %v3623_v63  ;;  %3120 = vmatprep.mubr.msk.bf16.mxu1 %vm3390_vm0, %v3389_v0 }
 0x1d9   : > { %3136 = vmatprep.mubr.msk.bf16.mxu0 %vm3390_vm0, %v3389_v0 }
 0x1df   : > { %3121 = vmatmul.mubr.msk.bf16.vlgmr.msra.gmra.mxu1 %vm346_vm9, %v3529_v54 }
 0x1e0   : > { %3137 = vmatmul.mubr.msk.bf16.vlgmr.msra.gmra.mxu0 %vm346_vm9, %v3529_v54  ;;  %3126 = vmatprep.mubr.msk.bf16.mxu1 %vm474_vm10, %v3539_v56 }
 0x1e1   : > { %3142 = vmatprep.mubr.msk.bf16.mxu0 %vm474_vm10, %v3539_v56 }
 0x28f   : > { %v3096_v5 = vpop.f32.mrf.mxu1 }
 0x290   : > { %v808_v7 = vadd.f32 %v3096_v5, %v3645_v3  ;;  %v3112_v9 = vpop.f32.mrf.mxu0 }
 0x291   : > { %v951_v11 = vadd.f32 %v3112_v9, %v3645_v3  ;;  %v799_v13 = vpop.f32.mrf.mxu1 }
 0x292   : > { %v832_v26 = vmax.f32 %v808_v7, 0.0  ;;  %v800_v27 = vadd.f32 %v799_v13, %v3641_v1  ;;  %v942_v28 = vpop.f32.mrf.mxu0 }
 0x293   : > { %v943_v29 = vadd.f32 %v942_v28, %v3641_v1  ;;  %v3097_v30 = vpop.f32.mrf.mxu1  ;;  %v975_v36 = vmax.f32 %v951_v11, 0.0 }
 0x294   : > { %v840_v34 = vmax.f32 %v3666_v39, %v832_v26  ;;  %v830_v38 = vmax.f32 %v800_v27, 0.0  ;;  %v811_v15 = vadd.f32 %v3097_v30, %v3647_v4  ;;  %v3113_v40 = vpop.f32.mrf.mxu0  ;;  %v1424_v26 = vsel %vm331_vm3, %v1423_v33, %v1422_v45 }
 0x295   : > { %v973_v41 = vmax.f32 %v943_v29, 0.0  ;;  %v954_v42 = vadd.f32 %v3113_v40, %v3647_v4  ;;  %v802_v43 = vpop.f32.mrf.mxu1 }
 0x296   : > { %v3772_v47 = vmax.f32 %v840_v34, %v975_v36  ;;  %v838_v50 = vmax.f32 %v3674_v49, %v830_v38  ;;  %v833_v16 = vmax.f32 %v811_v15, 0.0  ;;  %v803_v39 = vadd.f32 %v802_v43, %v3643_v2  ;;  %v945_v51 = vpop.f32.mrf.mxu0 }
 0x297   : > { %v976_v52 = vmax.f32 %v954_v42, 0.0  ;;  %v946_v53 = vadd.f32 %v945_v51, %v3643_v2  ;;  %v3100_v55 = vpop.f32.mrf.mxu1  ;;  %v1427_v34 = vrot.slane %v3483_v18, 2  ;;  %v1285_v42 = vsel %vm337_vm5, %v1284_v57, %v1283_v24 }
 0x298   : > { %v3779_v5 = vmax.f32 %v838_v50, %v973_v41  ;;  %v841_v6 = vmax.f32 %v3680_v62, %v833_v16  ;;  %v831_v7 = vmax.f32 %v803_v39, 0.0  ;;  %v824_v9 = vadd.f32 %v3100_v55, %v3672_v48  ;;  %v3116_v49 = vpop.f32.mrf.mxu0 }
 0x299   : > { %v974_v11 = vmax.f32 %v946_v53, 0.0  ;;  %v967_v13 = vadd.f32 %v3116_v49, %v3672_v48  ;;  %v815_v22 = vpop.f32.mrf.mxu1  ;;  %v1426_v43 = vsel %vm334_vm4, %v1425_v60, %v1424_v26  ;;  %v1429_v51 = vrot.slane %v3485_v19, 1 }
 0x29a   : > { %v3786_v27 = vmax.f32 %v841_v6, %v976_v52  ;;  %v839_v17 = vmax.f32 %v3689_v25, %v831_v7  ;;  %v836_v28 = vmax.f32 %v824_v9, 0.0  ;;  %v816_v12 = vadd.f32 %v815_v22, %v3652_v10  ;;  %v958_v62 = vpop.f32.mrf.mxu0 }
 0x29b   : > { %v979_v14 = vmax.f32 %v967_v13, 0.0  ;;  %v959_v29 = vadd.f32 %v958_v62, %v3652_v10  ;;  %v3101_v30 = vpop.f32.mrf.mxu1  ;;  %v1287_v7 = vrot.slane %v3488_v21, 7  ;;  %v1428_v9 = vsel %vm337_vm5, %v1427_v34, %v1426_v43  ;;  %v3353_v43 = vld [vmem:[%s3460_s29 + $0xc] ss:$0 sps:$4 sm:$0xff]  }
 0x29c   : > { %v3792_v36 = vmax.f32 %v839_v17, %v974_v11  ;;  %v844_v32 = vmax.f32 %v3696_v35, %v836_v28  ;;  %v834_v38 = vmax.f32 %v816_v12, 0.0  ;;  %v827_v33 = vadd.f32 %v3101_v30, %v3683_v8  ;;  %v3117_v15 = vpop.f32.mrf.mxu0 }
 0x29d   : > { %v977_v40 = vmax.f32 %v959_v29, 0.0  ;;  %v970_v25 = vadd.f32 %v3117_v15, %v3683_v8  ;;  %v818_v41 = vpop.f32.mrf.mxu1  ;;  %v1430_v12 = vsel %vm340_vm6, %v1429_v51, %v1428_v9 }
 0x29e   : > { %v3799_v44 = vmax.f32 %v844_v32, %v979_v14  ;;  %v842_v18 = vmax.f32 %v3702_v46, %v834_v38  ;;  %v837_v45 = vmax.f32 %v827_v33, 0.0  ;;  %v819_v50 = vadd.f32 %v818_v41, %v3660_v31  ;;  %v961_v35 = vpop.f32.mrf.mxu0 }
 0x29f   : > { %v962_v16 = vadd.f32 %v961_v35, %v3660_v31  ;;  %v1041_v39 = vpop.f32.mrf.mxu1  ;;  %v980_v55 = vmax.f32 %v970_v25, 0.0  ;;  %v1286_v46 = vsel %vm340_vm6, %v3485_v19, %v1285_v42  ;;  %v1431_v33 = vsel %vm343_vm7, %v3488_v21, %v1430_v12  ;;  %v3355_v35 = vld [vmem:[%s3460_s29 + $0x1c] ss:$0 sps:$4 sm:$0xff]  }
 0x2a0   : > { %v3805_v52 = vmax.f32 %v842_v18, %v977_v40  ;;  %v845_v53 = vmax.f32 %v3707_v59, %v837_v45  ;;  %v835_v57 = vmax.f32 %v819_v50, 0.0  ;;  %v1184_v60 = vpop.f32.mrf.mxu0  ;;  %v1042_v22 = vadd.f32 %v1041_v39, %v3578_v23  ;;  %v3354_v18 = vld [vmem:[%s3460_s29 + $0x14] ss:$0 sps:$4 sm:$0xff]   ;;  %v3352_v50 = vld [vmem:[%s3460_s29 + $0x4] ss:$0 sps:$4 sm:$0xff]  }
 0x2a1   : > { %v3122_v6 = vpop.f32.mrf.mxu1  ;;  %v978_v13 = vmax.f32 %v962_v16, 0.0  ;;  %v1185_v59 = vadd.f32 %v1184_v60, %v3578_v23  ;;  %v1288_v29 = vsel %vm343_vm7, %v1287_v7, %v1286_v46  ;;  %v1432_v41 = vpack.c.b16 %v1431_v33, %v1431_v33  ;;  %v3357_v60 = vld [vmem:[%s3460_s29 + $0x2c] ss:$0 sps:$4 sm:$0xff]   ;;  %v3358_v46 = vld [vmem:[%s3460_s29 + $0x34] ss:$0 sps:$4 sm:$0xff]  }
 0x2a2   : > { %v3812_v49 = vmax.f32 %v845_v53, %v980_v55  ;;  %v843_v11 = vmax.f32 %v3714_v20, %v835_v57  ;;  %v3138_v24 = vpop.f32.mrf.mxu0  ;;  %v1048_v20 = vmax.f32 %v1042_v22, 0.0  ;;  %v1289_v40 = vpack.c.b16 %v1288_v29, %v1288_v29  ;;  %v3356_v53 = vld [vmem:[%s3460_s29 + $0x24] ss:$0 sps:$4 sm:$0xff]  }
 0x2a3   : > { %v1044_v26 = vpop.f32.mrf.mxu1  ;;  %v1191_v32 = vmax.f32 %v1185_v59, 0.0  ;;  %v1434_v21 = vsel %vm350_vm8, %v1432_v41, 0  ;;  %v3855_v45 = vunpack.c.l.b16 %v3353_v43  ;;  %v3859_v16 = vunpack.c.l.b16 %v3354_v18 }
 0x2a4   : > { %v3817_v17 = vmax.f32 %v843_v11, %v978_v13  ;;  %v1045_v28 = vadd.f32 %v1044_v26, %v3589_v37  ;;  %v1187_v19 = vpop.f32.mrf.mxu0  ;;  %v1291_v42 = vsel %vm350_vm8, %v1289_v40, 0  ;;  %v3862_v51 = vunpack.c.l.b16 %v3352_v50  ;;  %v3359_v11 = vld [vmem:[%s3460_s29 + $0x3c] ss:$0 sps:$4 sm:$0xff]  }
 0x2a5   : > { %v1188_v62 = vadd.f32 %v1187_v19, %v3589_v37  ;;  %v3123_v14 = vpop.f32.mrf.mxu1  ;;  %v1593_v39 = vrot.slane %v3855_v45, 7  ;;  %v3865_v55 = vunpack.c.l.b16 %v3355_v35  ;;  %v1595_v57 = vrot.slane %v3859_v16, 6 }
 0x2a6   : > { %v1049_v30 = vmax.f32 %v1045_v28, 0.0  ;;  %v3139_v34 = vpop.f32.mrf.mxu0  ;;  %v1736_v7 = vrot.slane %v3862_v51, 1  ;;  %v3874_v13 = vunpack.c.l.b16 %v3356_v53  ;;  %v3880_v12 = vunpack.c.l.b16 %v3357_v60 }
 0x2a7   : > { %v1192_v38 = vmax.f32 %v1188_v62, 0.0  ;;  %v1594_v6 = vsel %vm325_vm1, %v1593_v39, %v3862_v51  ;;  %v1597_v22 = vrot.slane %v3865_v55, 5  ;;  %v1738_v62 = vrot.slane %v3859_v16, 7 }
 0x2a8   : > { %v1050_v15 = vpack.c.bf16 %v1049_v30, %v1048_v20  ;;  %v1596_v26 = vsel %vm328_vm2, %v1595_v57, %v1594_v6  ;;  %v3884_v30 = vunpack.c.l.b16 %v3358_v46  ;;  %v1737_v34 = vsel %vm325_vm1, %v3855_v45, %v1736_v7 }
 0x2a9   : > { %v1193_v25 = vpack.c.bf16 %v1192_v38, %v1191_v32  ;;  %v3889_v33 = vunpack.c.l.b16 %v3359_v11  ;;  %v1599_v40 = vrot.slane %v3874_v13, 4  ;;  %v1739_v39 = vsel %vm328_vm2, %v1738_v62, %v1737_v34 }
 0x2aa   : > { %3124 = vmatprep.subr.bf16.mxu1 %v1050_v15  ;;  %v1740_v53 = vrot.slane %v3865_v55, 6  ;;  %v1742_v34 = vrot.slane %v3874_v13, 5 }
 0x2ab   : > { %3140 = vmatprep.subr.bf16.mxu0 %v1193_v25  ;;  %3125 = vmatpush3.bf16.msra.mxu1 %v1050_v15  ;;  %v1598_v15 = vsel %vm331_vm3, %v1597_v22, %v1596_v26 }
 0x2ac   : > { %3141 = vmatpush3.bf16.msra.mxu0 %v1193_v25  ;;  %3150 = vmatprep.subr.bf16.mxu1 %v3389_v0  ;;  %v1600_v22 = vsel %vm334_vm4, %v1599_v40, %v1598_v15 }
 0x2ad   : > { %3166 = vmatprep.subr.bf16.mxu0 %v3389_v0 }
 0x2ae   : > { %3127 = vmatmul.mubr.msk.bf16.vlgmr.msra.gmra.mxu1 %vm474_vm10, %v3601_v58 }
 0x2af   : > { %3143 = vmatmul.mubr.msk.bf16.vlgmr.msra.gmra.mxu0 %vm474_vm10, %v3601_v58  ;;  %3151 = vmatpush3.bf16.msra.mxu1 %v1291_v42 }
 0x2b0   : > { %3130 = vmatprep.mubr.msk.bf16.mxu1 %vm474_vm10, %v3608_v61  ;;  %3146 = vmatprep.mubr.msk.bf16.mxu0 %vm474_vm10, %v3608_v61 }
 0x2b1   : > { %3167 = vmatpush3.bf16.msra.mxu0 %v1434_v21 }
 0x2b6   : > { %3131 = vmatmul.mubr.msk.bf16.gmra.mxu1 %vm474_vm10, %v3623_v63 }
 0x2b7   : > { %3147 = vmatmul.mubr.msk.bf16.gmra.mxu0 %vm474_vm10, %v3623_v63  ;;  %3152 = vmatprep.mubr.msk.bf16.mxu1 %vm3390_vm0, %v3389_v0 }
 0x2b8   : > { %3168 = vmatprep.mubr.msk.bf16.mxu0 %vm3390_vm0, %v3389_v0 }
 0x2be   : > { %3153 = vmatmul.mubr.msk.bf16.vlgmr.msra.gmra.mxu1 %vm346_vm9, %v3529_v54 }
 0x2bf   : > { %3169 = vmatmul.mubr.msk.bf16.vlgmr.msra.gmra.mxu0 %vm346_vm9, %v3529_v54  ;;  %3158 = vmatprep.mubr.msk.bf16.mxu1 %vm474_vm10, %v3539_v56 }
 0x2c0   : > { %3174 = vmatprep.mubr.msk.bf16.mxu0 %vm474_vm10, %v3539_v56 }
 0x36e   : > { %v3128_v9 = vpop.f32.mrf.mxu1 }
 0x36f   : > { %v1094_v24 = vadd.f32 %v3128_v9, %v3645_v3  ;;  %v3144_v59 = vpop.f32.mrf.mxu0 }
 0x370   : > { %v1237_v28 = vadd.f32 %v3144_v59, %v3645_v3  ;;  %v1085_v19 = vpop.f32.mrf.mxu1 }
 0x371   : > { %v1118_v14 = vmax.f32 %v1094_v24, 0.0  ;;  %v1086_v29 = vadd.f32 %v1085_v19, %v3641_v1  ;;  %v1228_v20 = vpop.f32.mrf.mxu0  ;;  %v1601_v24 = vrot.slane %v3880_v12, 3 }
 0x372   : > { %v1229_v32 = vadd.f32 %v1228_v20, %v3641_v1  ;;  %v3129_v38 = vpop.f32.mrf.mxu1  ;;  %v1261_v41 = vmax.f32 %v1237_v28, 0.0  ;;  %v1741_v20 = vsel %vm331_vm3, %v1740_v53, %v1739_v39 }
 0x373   : > { %v1126_v25 = vmax.f32 %v3772_v47, %v1118_v14  ;;  %v1116_v42 = vmax.f32 %v1086_v29, 0.0  ;;  %v1097_v21 = vadd.f32 %v3129_v38, %v3647_v4  ;;  %v3145_v43 = vpop.f32.mrf.mxu0 }
 0x374   : > { %v1259_v18 = vmax.f32 %v1229_v32, 0.0  ;;  %v1240_v50 = vadd.f32 %v3145_v43, %v3647_v4  ;;  %v1088_v35 = vpop.f32.mrf.mxu1  ;;  %v1744_v43 = vrot.slane %v3880_v12, 4 }
 0x375   : > { %v3898_v57 = vmax.f32 %v1126_v25, %v1261_v41  ;;  %v1124_v60 = vmax.f32 %v3779_v5, %v1116_v42  ;;  %v1119_v6 = vmax.f32 %v1097_v21, 0.0  ;;  %v1089_v47 = vadd.f32 %v1088_v35, %v3643_v2  ;;  %v1231_v46 = vpop.f32.mrf.mxu0 }
 0x376   : > { %v1262_v7 = vmax.f32 %v1240_v50, 0.0  ;;  %v1232_v9 = vadd.f32 %v1231_v46, %v3643_v2  ;;  %v3132_v11 = vpop.f32.mrf.mxu1  ;;  %v1603_v21 = vrot.slane %v3884_v30, 2  ;;  %v1743_v46 = vsel %vm334_vm4, %v1742_v34, %v1741_v20 }
 0x377   : > { %v3905_v59 = vmax.f32 %v1124_v60, %v1259_v18  ;;  %v1127_v26 = vmax.f32 %v3786_v27, %v1119_v6  ;;  %v1117_v28 = vmax.f32 %v1089_v47, 0.0  ;;  %v1110_v19 = vadd.f32 %v3132_v11, %v3672_v48  ;;  %v3148_v5 = vpop.f32.mrf.mxu0 }
 0x378   : > { %v1260_v62 = vmax.f32 %v1232_v9, 0.0  ;;  %v1253_v14 = vadd.f32 %v3148_v5, %v3672_v48  ;;  %v1101_v29 = vpop.f32.mrf.mxu1  ;;  %v1602_v47 = vsel %vm337_vm5, %v1601_v24, %v1600_v22  ;;  %v1746_v5 = vrot.slane %v3884_v30, 3 }
 0x379   : > { %v3912_v32 = vmax.f32 %v1127_v26, %v1262_v7  ;;  %v1125_v38 = vmax.f32 %v3792_v36, %v1117_v28  ;;  %v1122_v15 = vmax.f32 %v1110_v19, 0.0  ;;  %v1102_v40 = vadd.f32 %v1101_v29, %v3652_v10  ;;  %v1244_v27 = vpop.f32.mrf.mxu0 }
 0x37a   : > { %v1265_v25 = vmax.f32 %v1253_v14, 0.0  ;;  %v1245_v41 = vadd.f32 %v1244_v27, %v3652_v10  ;;  %v3133_v42 = vpop.f32.mrf.mxu1  ;;  %v1604_v34 = vsel %vm340_vm6, %v1603_v21, %v1602_v47 }
 0x37b   : > { %v3919_v18 = vmax.f32 %v1125_v38, %v1260_v62  ;;  %v1130_v50 = vmax.f32 %v3799_v44, %v1122_v15  ;;  %v1120_v35 = vmax.f32 %v1102_v40, 0.0  ;;  %v1113_v39 = vadd.f32 %v3133_v42, %v3683_v8  ;;  %v3149_v36 = vpop.f32.mrf.mxu0 }
 0x37c   : > { %v1263_v53 = vmax.f32 %v1245_v41, 0.0  ;;  %v1256_v60 = vadd.f32 %v3149_v36, %v3683_v8  ;;  %v1104_v6 = vpop.f32.mrf.mxu1  ;;  %v1745_v38 = vsel %vm337_vm5, %v1744_v43, %v1743_v46 }
 0x37d   : > { %v3926_v7 = vmax.f32 %v1130_v50, %v1265_v25  ;;  %v1128_v9 = vmax.f32 %v3805_v52, %v1120_v35  ;;  %v1123_v11 = vmax.f32 %v1113_v39, 0.0  ;;  %v1105_v26 = vadd.f32 %v1104_v6, %v3660_v31  ;;  %v1247_v44 = vpop.f32.mrf.mxu0 }
 0x37e   : > { %v1248_v28 = vadd.f32 %v1247_v44, %v3660_v31  ;;  %v1327_v19 = vpop.f32.mrf.mxu1  ;;  %v1266_v22 = vmax.f32 %v1256_v60, 0.0  ;;  %v1605_v52 = vrot.slane %v3889_v33, 1  ;;  %v1748_v50 = vrot.slane %v3889_v33, 2 }
 0x37f   : > { %v3932_v62 = vmax.f32 %v1128_v9, %v1263_v53  ;;  %v1131_v14 = vmax.f32 %v3812_v49, %v1123_v11  ;;  %v1121_v24 = vmax.f32 %v1105_v26, 0.0  ;;  %v1470_v29 = vpop.f32.mrf.mxu0  ;;  %v1328_v25 = vadd.f32 %v1327_v19, %v3578_v23 }
 0x380   : > { %v3154_v20 = vpop.f32.mrf.mxu1  ;;  %v1264_v27 = vmax.f32 %v1248_v28, 0.0  ;;  %v1471_v49 = vadd.f32 %v1470_v29, %v3578_v23  ;;  %v1747_v43 = vsel %vm340_vm6, %v1746_v5, %v1745_v38  ;;  %v1883_v38 = vrot.slane %v3865_v55, 7 }
 0x381   : > { %v3938_v15 = vmax.f32 %v1131_v14, %v1266_v22  ;;  %v1129_v40 = vmax.f32 %v3817_v17, %v1121_v24  ;;  %v3170_v41 = vpop.f32.mrf.mxu0  ;;  %v1606_v17 = vsel %vm343_vm7, %v1605_v52, %v1604_v34  ;;  %v1334_v60 = vmax.f32 %v1328_v25, 0.0 }
 0x382   : > { %v1330_v42 = vpop.f32.mrf.mxu1  ;;  %v1477_v46 = vmax.f32 %v1471_v49, 0.0  ;;  %v1749_v11 = vsel %vm343_vm7, %v1748_v50, %v1747_v43  ;;  %v1607_v44 = vpack.c.b16 %v1606_v17, %v1606_v17  ;;  %v2023_v22 = vrot.slane %v3855_v45, 2 }
 0x383   : > { %v3944_v35 = vmax.f32 %v1129_v40, %v1264_v27  ;;  %v1331_v21 = vadd.f32 %v1330_v42, %v3589_v37  ;;  %v1473_v39 = vpop.f32.mrf.mxu0  ;;  %v1750_v19 = vpack.c.b16 %v1749_v11, %v1749_v11 }
 0x384   : > { %v1474_v36 = vadd.f32 %v1473_v39, %v3589_v37  ;;  %v3155_v53 = vpop.f32.mrf.mxu1  ;;  %v1609_v5 = vsel %vm350_vm8, %v1607_v44, 0 }
 0x385   : > { %v1335_v6 = vmax.f32 %v1331_v21, 0.0  ;;  %v3171_v47 = vpop.f32.mrf.mxu0  ;;  %v1752_v14 = vsel %vm350_vm8, %v1750_v19, 0  ;;  %v1885_v21 = vrot.slane %v3874_v13, 6 }
 0x386   : > { %v1478_v9 = vmax.f32 %v1474_v36, 0.0 }
 0x387   : > { %v1336_v26 = vpack.c.bf16 %v1335_v6, %v1334_v60 }
 0x388   : > { %v1479_v28 = vpack.c.bf16 %v1478_v9, %v1477_v46 }
 0x389   : > { %3156 = vmatprep.subr.bf16.mxu1 %v1336_v26 }
 0x38a   : > { %3172 = vmatprep.subr.bf16.mxu0 %v1479_v28  ;;  %3157 = vmatpush3.bf16.msra.mxu1 %v1336_v26 }
 0x38b   : > { %3173 = vmatpush3.bf16.msra.mxu0 %v1479_v28  ;;  %3182 = vmatprep.subr.bf16.mxu1 %v3389_v0 }
 0x38c   : > { %3198 = vmatprep.subr.bf16.mxu0 %v3389_v0 }
 0x38d   : > { %3159 = vmatmul.mubr.msk.bf16.vlgmr.msra.gmra.mxu1 %vm474_vm10, %v3601_v58 }
 0x38e   : > { %3175 = vmatmul.mubr.msk.bf16.vlgmr.msra.gmra.mxu0 %vm474_vm10, %v3601_v58  ;;  %3183 = vmatpush3.bf16.msra.mxu1 %v1609_v5  ;;  %v1879_v58 = vrot.slane %v3862_v51, 2 }
 0x38f   : > { %3162 = vmatprep.mubr.msk.bf16.mxu1 %vm474_vm10, %v3608_v61  ;;  %3178 = vmatprep.mubr.msk.bf16.mxu0 %vm474_vm10, %v3608_v61  ;;  %v1880_v61 = vrot.slane %v3855_v45, 1 }
 0x390   : > { %3199 = vmatpush3.bf16.msra.mxu0 %v1752_v14 }
 0x391   : > { %v1881_v29 = vsel %vm325_vm1, %v1880_v61, %v1879_v58  ;;  %v1887_v58 = vrot.slane %v3880_v12, 5  ;;  %v2028_v61 = vrot.slane %v3874_v13, 7 }
 0x392   : > { %v1882_v41 = vsel %vm328_vm2, %v3859_v16, %v1881_v29 }
 0x393   : > { %v1884_v46 = vsel %vm331_vm3, %v1883_v38, %v1882_v41 }
 0x395   : > { %3163 = vmatmul.mubr.msk.bf16.gmra.mxu1 %vm474_vm10, %v3623_v63 }
 0x396   : > { %3179 = vmatmul.mubr.msk.bf16.gmra.mxu0 %vm474_vm10, %v3623_v63  ;;  %3184 = vmatprep.mubr.msk.bf16.mxu1 %vm3390_vm0, %v3389_v0  ;;  %v2022_v63 = vrot.slane %v3862_v51, 3 }
 0x397   : > { %3200 = vmatprep.mubr.msk.bf16.mxu0 %vm3390_vm0, %v3389_v0 }
 0x398   : > { %v2024_v49 = vsel %vm325_vm1, %v2023_v22, %v2022_v63 }
 0x39d   : > { %3185 = vmatmul.mubr.msk.bf16.vlgmr.msra.gmra.mxu1 %vm346_vm9, %v3529_v54 }
 0x39e   : > { %3201 = vmatmul.mubr.msk.bf16.vlgmr.msra.gmra.mxu0 %vm346_vm9, %v3529_v54  ;;  %3190 = vmatprep.mubr.msk.bf16.mxu1 %vm474_vm10, %v3539_v56 }
 0x39f   : > { %3206 = vmatprep.mubr.msk.bf16.mxu0 %vm474_vm10, %v3539_v56  ;;  %v2025_v56 = vrot.slane %v3859_v16, 1 }
 0x3a1   : > { %v2026_v9 = vsel %vm328_vm2, %v2025_v56, %v2024_v49 }
 0x3a2   : > { %v2027_v38 = vsel %vm331_vm3, %v3865_v55, %v2026_v9 }
 0x44d   : > { %v3160_v24 = vpop.f32.mrf.mxu1 }
 0x44e   : > { %v1380_v20 = vadd.f32 %v3160_v24, %v3645_v3  ;;  %v3176_v54 = vpop.f32.mrf.mxu0 }
 0x44f   : > { %v1523_v34 = vadd.f32 %v3176_v54, %v3645_v3  ;;  %v1371_v52 = vpop.f32.mrf.mxu1 }
 0x450   : > { %v1404_v40 = vmax.f32 %v1380_v20, 0.0  ;;  %v1372_v27 = vadd.f32 %v1371_v52, %v3641_v1  ;;  %v1514_v25 = vpop.f32.mrf.mxu0  ;;  %v1886_v52 = vsel %vm334_vm4, %v1885_v21, %v1884_v46  ;;  %v2029_v46 = vsel %vm334_vm4, %v2028_v61, %v2027_v38 }
 0x451   : > { %v1515_v42 = vadd.f32 %v1514_v25, %v3641_v1  ;;  %v3161_v50 = vpop.f32.mrf.mxu1  ;;  %v1547_v43 = vmax.f32 %v1523_v34, 0.0 }
 0x452   : > { %v1412_v39 = vmax.f32 %v3898_v57, %v1404_v40  ;;  %v1402_v36 = vmax.f32 %v1372_v27, 0.0  ;;  %v1383_v53 = vadd.f32 %v3161_v50, %v3647_v4  ;;  %v3177_v17 = vpop.f32.mrf.mxu0  ;;  %v1889_v50 = vrot.slane %v3884_v30, 4 }
 0x453   : > { %v1545_v60 = vmax.f32 %v1515_v42, 0.0  ;;  %v1526_v6 = vadd.f32 %v3177_v17, %v3647_v4  ;;  %v1374_v47 = vpop.f32.mrf.mxu1 }
 0x454   : > { %v3999_v11 = vmax.f32 %v1412_v39, %v1547_v43  ;;  %v1410_v26 = vmax.f32 %v3905_v59, %v1402_v36  ;;  %v1405_v44 = vmax.f32 %v1383_v53, 0.0  ;;  %v1375_v57 = vadd.f32 %v1374_v47, %v3643_v2  ;;  %v1517_v28 = vpop.f32.mrf.mxu0 }
 0x455   : > { %v1548_v19 = vmax.f32 %v1526_v6, 0.0  ;;  %v1518_v5 = vadd.f32 %v1517_v28, %v3643_v2  ;;  %v3164_v14 = vpop.f32.mrf.mxu1  ;;  %v2030_v39 = vrot.slane %v3880_v12, 6  ;;  %v1888_v47 = vsel %vm337_vm5, %v1887_v58, %v1886_v52 }
 0x456   : > { %v4006_v63 = vmax.f32 %v1410_v26, %v1545_v60  ;;  %v1413_v22 = vmax.f32 %v3912_v32, %v1405_v44  ;;  %v1403_v24 = vmax.f32 %v1375_v57, 0.0  ;;  %v1396_v29 = vadd.f32 %v3164_v14, %v3672_v48  ;;  %v3180_v59 = vpop.f32.mrf.mxu0 }
 0x457   : > { %v1546_v20 = vmax.f32 %v1518_v5, 0.0  ;;  %v1539_v54 = vadd.f32 %v3180_v59, %v3672_v48  ;;  %v1387_v34 = vpop.f32.mrf.mxu1  ;;  %v2032_v5 = vrot.slane %v3884_v30, 5  ;;  %v1890_v59 = vsel %vm340_vm6, %v1889_v50, %v1888_v47 }
 0x458   : > { %v4014_v56 = vmax.f32 %v1413_v22, %v1548_v19  ;;  %v1411_v40 = vmax.f32 %v3919_v18, %v1403_v24  ;;  %v1408_v27 = vmax.f32 %v1396_v29, 0.0  ;;  %v1388_v32 = vadd.f32 %v1387_v34, %v3652_v10  ;;  %v1530_v25 = vpop.f32.mrf.mxu0 }
 0x459   : > { %v1551_v41 = vmax.f32 %v1539_v54, 0.0  ;;  %v1531_v49 = vadd.f32 %v1530_v25, %v3652_v10  ;;  %v3165_v42 = vpop.f32.mrf.mxu1 }
 0x45a   : > { %v4021_v21 = vmax.f32 %v1411_v40, %v1546_v20  ;;  %v1416_v43 = vmax.f32 %v3926_v7, %v1408_v27  ;;  %v1406_v36 = vmax.f32 %v1388_v32, 0.0  ;;  %v1399_v53 = vadd.f32 %v3165_v42, %v3683_v8  ;;  %v3181_v18 = vpop.f32.mrf.mxu0 }
 0x45b   : > { %v1549_v17 = vmax.f32 %v1531_v49, 0.0  ;;  %v1542_v60 = vadd.f32 %v3181_v18, %v3683_v8  ;;  %v1390_v6 = vpop.f32.mrf.mxu1  ;;  %v2031_v20 = vsel %vm337_vm5, %v2030_v39, %v2029_v46  ;;  %v2034_v32 = vrot.slane %v3889_v33, 4 }
 0x45c   : > { %v4028_v9 = vmax.f32 %v1416_v43, %v1551_v41  ;;  %v1414_v26 = vmax.f32 %v3932_v62, %v1406_v36  ;;  %v1409_v44 = vmax.f32 %v1399_v53, 0.0  ;;  %v1391_v57 = vadd.f32 %v1390_v6, %v3660_v31  ;;  %v1533_v7 = vpop.f32.mrf.mxu0 }
 0x45d   : > { %v1534_v28 = vadd.f32 %v1533_v7, %v3660_v31  ;;  %v1645_v19 = vpop.f32.mrf.mxu1  ;;  %v1552_v58 = vmax.f32 %v1542_v60, 0.0  ;;  %v1891_v62 = vrot.slane %v3889_v33, 3  ;;  %v2033_v42 = vsel %vm340_vm6, %v2032_v5, %v2031_v20  ;;  %v4091_v5 = vld [vmem:[%s4423_s1] sm:$0xff]  }
 0x45e   : > { %v4034_v14 = vmax.f32 %v1414_v26, %v1549_v17  ;;  %v1417_v22 = vmax.f32 %v3938_v15, %v1409_v44  ;;  %v1407_v24 = vmax.f32 %v1391_v57, 0.0  ;;  %v1788_v61 = vpop.f32.mrf.mxu0  ;;  %v1646_v38 = vadd.f32 %v1645_v19, %v3578_v23  ;;  %v4059_v57 = vld [vmem:[%s4425_s3 + $0x8] sm:$0xff]   ;;  %v4078_v19 = vld [vmem:[%s4425_s3 + $0x18] sm:$0xff]  }
 0x45f   : > { %v3186_v29 = vpop.f32.mrf.mxu1  ;;  %v1550_v52 = vmax.f32 %v1534_v28, 0.0  ;;  %v1789_v15 = vadd.f32 %v1788_v61, %v3578_v23  ;;  %v2035_v60 = vsel %vm343_vm7, %v2034_v32, %v2033_v42  ;;  %v4069_v28 = vld [vmem:[%s4425_s3 + $0x10] sm:$0xff]   ;;  %v2168_v61 = vrot.slane %v3859_v16, 2 }
 0x460   : > { %v4040_v54 = vmax.f32 %v1417_v22, %v1552_v58  ;;  %v1415_v34 = vmax.f32 %v3944_v35, %v1407_v24  ;;  %v3202_v40 = vpop.f32.mrf.mxu0  ;;  %v1892_v35 = vsel %vm343_vm7, %v1891_v62, %v1890_v59  ;;  %v1652_v43 = vmax.f32 %v1646_v38, 0.0  ;;  %v4100_v22 = vld [vmem:[%s4425_s3] sm:$0xff]  }
 0x461   : > { %v1648_v27 = vpop.f32.mrf.mxu1  ;;  %v1795_v18 = vmax.f32 %v1789_v15, 0.0  ;;  %v1893_v47 = vpack.c.b16 %v1892_v35, %v1892_v35  ;;  %v2036_v26 = vpack.c.b16 %v2035_v60, %v2035_v60  ;;  %v2165_v58 = vrot.slane %v3862_v51, 4 }
 0x462   : > { %v4046_v25 = vmax.f32 %v1415_v34, %v1550_v52  ;;  %v1649_v41 = vadd.f32 %v1648_v27, %v3589_v37  ;;  %v1791_v49 = vpop.f32.mrf.mxu0  ;;  %v2166_v24 = vrot.slane %v3855_v45, 3  ;;  %v2308_v29 = vrot.slane %v3862_v51, 5 }
 0x463   : > { %v1792_v50 = vadd.f32 %v1791_v49, %v3589_v37  ;;  %v3187_v39 = vpop.f32.mrf.mxu1  ;;  %v1895_v44 = vsel %vm350_vm8, %v1893_v47, 0  ;;  %v2038_v7 = vsel %vm350_vm8, %v2036_v26, 0  ;;  %v2309_v59 = vrot.slane %v3855_v45, 4 }
 0x464   : > { %v1653_v36 = vmax.f32 %v1649_v41, 0.0  ;;  %v3203_v53 = vpop.f32.mrf.mxu0  ;;  %v2167_v20 = vsel %vm325_vm1, %v2166_v24, %v2165_v58  ;;  %v2170_v15 = vrot.slane %v3865_v55, 1  ;;  %v2311_v27 = vrot.slane %v3859_v16, 3 }
 0x465   : > { %v1796_v17 = vmax.f32 %v1792_v50, 0.0  ;;  %v2169_v42 = vsel %vm328_vm2, %v2168_v61, %v2167_v20  ;;  %v2310_v50 = vsel %vm325_vm1, %v2309_v59, %v2308_v29  ;;  %v2173_v20 = vrot.slane %v3880_v12, 7 }
 0x466   : > { %v1654_v6 = vpack.c.bf16 %v1653_v36, %v1652_v43  ;;  %v2313_v43 = vrot.slane %v3865_v55, 2  ;;  %v2171_v26 = vsel %vm331_vm3, %v2170_v15, %v2169_v42 }
 0x467   : > { %v1797_v46 = vpack.c.bf16 %v1796_v17, %v1795_v18 }
 0x468   : > { %3188 = vmatprep.subr.bf16.mxu1 %v1654_v6 }
 0x469   : > { %3204 = vmatprep.subr.bf16.mxu0 %v1797_v46  ;;  %3189 = vmatpush3.bf16.msra.mxu1 %v1654_v6 }
 0x46a   : > { %3205 = vmatpush3.bf16.msra.mxu0 %v1797_v46  ;;  %3214 = vmatprep.subr.bf16.mxu1 %v3389_v0 }
 0x46b   : > { %3230 = vmatprep.subr.bf16.mxu0 %v3389_v0 }
 0x46c   : > { %3191 = vmatmul.mubr.msk.bf16.vlgmr.msra.gmra.mxu1 %vm474_vm10, %v4059_v57 }
 0x46d   : > { %3207 = vmatmul.mubr.msk.bf16.vlgmr.msra.gmra.mxu0 %vm474_vm10, %v4059_v57  ;;  %3215 = vmatpush3.bf16.msra.mxu1 %v1895_v44  ;;  %v2312_v44 = vsel %vm328_vm2, %v2311_v27, %v2310_v50 }
 0x46e   : > { %3194 = vmatprep.mubr.msk.bf16.mxu1 %vm474_vm10, %v4069_v28  ;;  %3210 = vmatprep.mubr.msk.bf16.mxu0 %vm474_vm10, %v4069_v28  ;;  %v2314_v42 = vsel %vm331_vm3, %v2313_v43, %v2312_v44 }
 0x46f   : > { %3231 = vmatpush3.bf16.msra.mxu0 %v2038_v7 }
 0x474   : > { %3195 = vmatmul.mubr.msk.bf16.gmra.mxu1 %vm474_vm10, %v4078_v19 }
 0x475   : > { %3211 = vmatmul.mubr.msk.bf16.gmra.mxu0 %vm474_vm10, %v4078_v19  ;;  %3216 = vmatprep.mubr.msk.bf16.mxu1 %vm3390_vm0, %v3389_v0 }
 0x476   : > { %3232 = vmatprep.mubr.msk.bf16.mxu0 %vm3390_vm0, %v3389_v0 }
 0x47c   : > { %3217 = vmatmul.mubr.msk.bf16.vlgmr.msra.gmra.mxu1 %vm346_vm9, %v4091_v5 }
 0x47d   : > { %3233 = vmatmul.mubr.msk.bf16.vlgmr.msra.gmra.mxu0 %vm346_vm9, %v4091_v5  ;;  %3222 = vmatprep.mubr.msk.bf16.mxu1 %vm474_vm10, %v4100_v22 }
 0x47e   : > { %3238 = vmatprep.mubr.msk.bf16.mxu0 %vm474_vm10, %v4100_v22 }
 0x52c   : > { %v3192_v62 = vpop.f32.mrf.mxu1 }
 0x52d   : > { %v1698_v34 = vadd.f32 %v3192_v62, %v3645_v3  ;;  %v3208_v52 = vpop.f32.mrf.mxu0 }
 0x52e   : > { %v1841_v38 = vadd.f32 %v3208_v52, %v3645_v3  ;;  %v1689_v40 = vpop.f32.mrf.mxu1 }
 0x52f   : > { %v1722_v32 = vmax.f32 %v1698_v34, 0.0  ;;  %v1690_v41 = vadd.f32 %v1689_v40, %v3641_v1  ;;  %v1832_v49 = vpop.f32.mrf.mxu0  ;;  %v2315_v34 = vrot.slane %v3874_v13, 1 }
 0x530   : > { %v1833_v39 = vadd.f32 %v1832_v49, %v3641_v1  ;;  %v3193_v35 = vpop.f32.mrf.mxu1  ;;  %v1865_v53 = vmax.f32 %v1841_v38, 0.0  ;;  %v2172_v49 = vsel %vm334_vm4, %v3874_v13, %v2171_v26 }
 0x531   : > { %v1730_v36 = vmax.f32 %v3999_v11, %v1722_v32  ;;  %v1720_v18 = vmax.f32 %v1690_v41, 0.0  ;;  %v1701_v17 = vadd.f32 %v3193_v35, %v3647_v4  ;;  %v3209_v60 = vpop.f32.mrf.mxu0 }
 0x532   : > { %v1863_v6 = vmax.f32 %v1833_v39, 0.0  ;;  %v1844_v47 = vadd.f32 %v3209_v60, %v3647_v4  ;;  %v1692_v46 = vpop.f32.mrf.mxu1  ;;  %v2175_v60 = vrot.slane %v3884_v30, 6 }
 0x533   : > { %v4126_v7 = vmax.f32 %v1730_v36, %v1865_v53  ;;  %v1728_v58 = vmax.f32 %v4006_v63, %v1720_v18  ;;  %v1723_v24 = vmax.f32 %v1701_v17, 0.0  ;;  %v1693_v11 = vadd.f32 %v1692_v46, %v3643_v2  ;;  %v1835_v61 = vpop.f32.mrf.mxu0 }
 0x534   : > { %v1866_v29 = vmax.f32 %v1844_v47, 0.0  ;;  %v1836_v59 = vadd.f32 %v1835_v61, %v3643_v2  ;;  %v3196_v62 = vpop.f32.mrf.mxu1 }
 0x535   : > { %v4133_v52 = vmax.f32 %v1728_v58, %v1863_v6  ;;  %v1731_v38 = vmax.f32 %v4014_v56, %v1723_v24  ;;  %v1721_v40 = vmax.f32 %v1693_v11, 0.0  ;;  %v1714_v15 = vadd.f32 %v3196_v62, %v3672_v48  ;;  %v3212_v63 = vpop.f32.mrf.mxu0 }
 0x536   : > { %v1864_v27 = vmax.f32 %v1836_v59, 0.0  ;;  %v1857_v32 = vadd.f32 %v3212_v63, %v3672_v48  ;;  %v1705_v41 = vpop.f32.mrf.mxu1  ;;  %v2174_v24 = vsel %vm337_vm5, %v2173_v20, %v2172_v49  ;;  %v2316_v11 = vsel %vm334_vm4, %v2315_v34, %v2314_v42 }
 0x537   : > { %v4141_v50 = vmax.f32 %v1731_v38, %v1866_v29  ;;  %v1729_v39 = vmax.f32 %v4021_v21, %v1721_v40  ;;  %v1726_v35 = vmax.f32 %v1714_v15, 0.0  ;;  %v1706_v56 = vadd.f32 %v1705_v41, %v3652_v10  ;;  %v1848_v36 = vpop.f32.mrf.mxu0 }
 0x538   : > { %v1869_v53 = vmax.f32 %v1857_v32, 0.0  ;;  %v1849_v18 = vadd.f32 %v1848_v36, %v3652_v10  ;;  %v3197_v17 = vpop.f32.mrf.mxu1  ;;  %v2318_v15 = vrot.slane %v3884_v30, 7  ;;  %v2176_v49 = vsel %vm340_vm6, %v2175_v60, %v2174_v24 }
 0x539   : > { %v4147_v6 = vmax.f32 %v1729_v39, %v1864_v27  ;;  %v1734_v47 = vmax.f32 %v4028_v9, %v1726_v35  ;;  %v1724_v46 = vmax.f32 %v1706_v56, 0.0  ;;  %v1717_v43 = vadd.f32 %v3197_v17, %v3683_v8  ;;  %v3213_v26 = vpop.f32.mrf.mxu0 }
 0x53a   : > { %v1867_v44 = vmax.f32 %v1849_v18, 0.0  ;;  %v1860_v21 = vadd.f32 %v3213_v26, %v3683_v8  ;;  %v1708_v58 = vpop.f32.mrf.mxu1  ;;  %v2317_v42 = vsel %vm337_vm5, %v3880_v12, %v2316_v11  ;;  %v2320_v17 = vrot.slane %v3889_v33, 6 }
 0x53b   : > { %v4154_v61 = vmax.f32 %v1734_v47, %v1869_v53  ;;  %v1732_v29 = vmax.f32 %v4034_v14, %v1724_v46  ;;  %v1727_v59 = vmax.f32 %v1717_v43, 0.0  ;;  %v1709_v62 = vadd.f32 %v1708_v58, %v3660_v31  ;;  %v1851_v9 = vpop.f32.mrf.mxu0 }
 0x53c   : > { %v1852_v38 = vadd.f32 %v1851_v9, %v3660_v31  ;;  %v1931_v40 = vpop.f32.mrf.mxu1  ;;  %v1870_v20 = vmax.f32 %v1860_v21, 0.0  ;;  %v2177_v14 = vrot.slane %v3889_v33, 5  ;;  %v2319_v43 = vsel %vm340_vm6, %v2318_v15, %v2317_v42 }
 0x53d   : > { %v4160_v63 = vmax.f32 %v1732_v29, %v1867_v44  ;;  %v1735_v27 = vmax.f32 %v4040_v54, %v1727_v59  ;;  %v1725_v32 = vmax.f32 %v1709_v62, 0.0  ;;  %v2074_v34 = vpop.f32.mrf.mxu0  ;;  %v1932_v36 = vadd.f32 %v1931_v40, %v3578_v23 }
 0x53e   : > { %v3218_v41 = vpop.f32.mrf.mxu1  ;;  %v1868_v56 = vmax.f32 %v1852_v38, 0.0  ;;  %v2075_v54 = vadd.f32 %v2074_v34, %v3578_v23  ;;  %v2321_v59 = vsel %vm343_vm7, %v2320_v17, %v2319_v43  ;;  %v2454_v34 = vrot.slane %v3859_v16, 4 }
 0x53f   : > { %v4167_v39 = vmax.f32 %v1735_v27, %v1870_v20  ;;  %v1733_v35 = vmax.f32 %v4046_v25, %v1725_v32  ;;  %v3234_v53 = vpop.f32.mrf.mxu0  ;;  %v2178_v25 = vsel %vm343_vm7, %v2177_v14, %v2176_v49  ;;  %v1938_v21 = vmax.f32 %v1932_v36, 0.0 }
 0x540   : > { %v1934_v18 = vpop.f32.mrf.mxu1  ;;  %v2081_v11 = vmax.f32 %v2075_v54, 0.0  ;;  %v2179_v9 = vpack.c.b16 %v2178_v25, %v2178_v25  ;;  %v2322_v40 = vpack.c.b16 %v2321_v59, %v2321_v59  ;;  %v2451_v20 = vrot.slane %v3862_v51, 6 }
 0x541   : > { %v4173_v47 = vmax.f32 %v1733_v35, %v1868_v56  ;;  %v1935_v60 = vadd.f32 %v1934_v18, %v3589_v37  ;;  %v2077_v46 = vpop.f32.mrf.mxu0  ;;  %v2452_v32 = vrot.slane %v3855_v45, 5  ;;  %v2594_v41 = vrot.slane %v3862_v51, 7 }
 0x542   : > { %v2078_v26 = vadd.f32 %v2077_v46, %v3589_v37  ;;  %v3219_v44 = vpop.f32.mrf.mxu1  ;;  %v2181_v15 = vsel %vm350_vm8, %v2179_v9, 0  ;;  %v2324_v27 = vsel %vm350_vm8, %v2322_v40, 0  ;;  %v2595_v49 = vrot.slane %v3855_v45, 6 }
 0x543   : > { %v1939_v58 = vmax.f32 %v1935_v60, 0.0  ;;  %v3235_v24 = vpop.f32.mrf.mxu0  ;;  %v2453_v42 = vsel %vm325_vm1, %v2452_v32, %v2451_v20  ;;  %v2456_v54 = vrot.slane %v3865_v55, 3  ;;  %v2597_v18 = vrot.slane %v3859_v16, 5 }
 0x544   : > { %v2082_v29 = vmax.f32 %v2078_v26, 0.0  ;;  %v2455_v51 = vsel %vm328_vm2, %v2454_v34, %v2453_v42  ;;  %v2596_v45 = vsel %vm325_vm1, %v2595_v49, %v2594_v41  ;;  %v2458_v44 = vrot.slane %v3874_v13, 2 }
 0x545   : > { %v1940_v62 = vpack.c.bf16 %v1939_v58, %v1938_v21  ;;  %v2599_v25 = vrot.slane %v3865_v55, 4  ;;  %v2457_v9 = vsel %vm331_vm3, %v2456_v54, %v2455_v51  ;;  %v2460_v41 = vrot.slane %v3880_v12, 1 }
 0x546   : > { %v2083_v38 = vpack.c.bf16 %v2082_v29, %v2081_v11  ;;  %v2601_v49 = vrot.slane %v3874_v13, 3 }
 0x547   : > { %3220 = vmatprep.subr.bf16.mxu1 %v1940_v62 }
 0x548   : > { %3236 = vmatprep.subr.bf16.mxu0 %v2083_v38  ;;  %3221 = vmatpush3.bf16.msra.mxu1 %v1940_v62 }
 0x549   : > { %3237 = vmatpush3.bf16.msra.mxu0 %v2083_v38  ;;  %3246 = vmatprep.subr.bf16.mxu1 %v3389_v0  ;;  %v2598_v38 = vsel %vm328_vm2, %v2597_v18, %v2596_v45  ;;  %v2459_v18 = vsel %vm334_vm4, %v2458_v44, %v2457_v9 }
 0x54a   : > { %3262 = vmatprep.subr.bf16.mxu0 %v3389_v0 }
 0x54b   : > { %3223 = vmatmul.mubr.msk.bf16.vlgmr.msra.gmra.mxu1 %vm474_vm10, %v4059_v57 }
 0x54c   : > { %3239 = vmatmul.mubr.msk.bf16.vlgmr.msra.gmra.mxu0 %vm474_vm10, %v4059_v57  ;;  %3247 = vmatpush3.bf16.msra.mxu1 %v2181_v15 }
 0x54d   : > { %3226 = vmatprep.mubr.msk.bf16.mxu1 %vm474_vm10, %v4069_v28  ;;  %3242 = vmatprep.mubr.msk.bf16.mxu0 %vm474_vm10, %v4069_v28 }
 0x54e   : > { %3263 = vmatpush3.bf16.msra.mxu0 %v2324_v27 }
 0x553   : > { %3227 = vmatmul.mubr.msk.bf16.gmra.mxu1 %vm474_vm10, %v4078_v19 }
 0x554   : > { %3243 = vmatmul.mubr.msk.bf16.gmra.mxu0 %vm474_vm10, %v4078_v19  ;;  %3248 = vmatprep.mubr.msk.bf16.mxu1 %vm3390_vm0, %v3389_v0 }
 0x555   : > { %3264 = vmatprep.mubr.msk.bf16.mxu0 %vm3390_vm0, %v3389_v0 }
 0x55b   : > { %3249 = vmatmul.mubr.msk.bf16.vlgmr.msra.gmra.mxu1 %vm346_vm9, %v4091_v5 }
 0x55c   : > { %3265 = vmatmul.mubr.msk.bf16.vlgmr.msra.gmra.mxu0 %vm346_vm9, %v4091_v5  ;;  %3254 = vmatprep.mubr.msk.bf16.mxu1 %vm474_vm10, %v4100_v22 }
 0x55d   : > { %3270 = vmatprep.mubr.msk.bf16.mxu0 %vm474_vm10, %v4100_v22 }
 0x60b   : > { %v3224_v14 = vpop.f32.mrf.mxu1 }
 0x60c   : > { %v1984_v35 = vadd.f32 %v3224_v14, %v3645_v3  ;;  %v3240_v56 = vpop.f32.mrf.mxu0 }
 0x60d   : > { %v2127_v36 = vadd.f32 %v3240_v56, %v3645_v3  ;;  %v1975_v53 = vpop.f32.mrf.mxu1 }
 0x60e   : > { %v2008_v17 = vmax.f32 %v1984_v35, 0.0  ;;  %v1976_v60 = vadd.f32 %v1975_v53, %v3641_v1  ;;  %v2118_v46 = vpop.f32.mrf.mxu0 }
 0x60f   : > { %v2119_v43 = vadd.f32 %v2118_v46, %v3641_v1  ;;  %v3225_v26 = vpop.f32.mrf.mxu1  ;;  %v2151_v58 = vmax.f32 %v2127_v36, 0.0 }
 0x610   : > { %v2016_v21 = vmax.f32 %v4126_v7, %v2008_v17  ;;  %v2006_v24 = vmax.f32 %v1976_v60, 0.0  ;;  %v1987_v16 = vadd.f32 %v3225_v26, %v3647_v4  ;;  %v3241_v11 = vpop.f32.mrf.mxu0  ;;  %v2600_v17 = vsel %vm331_vm3, %v2599_v25, %v2598_v38 }
 0x611   : > { %v2149_v29 = vmax.f32 %v2119_v43, 0.0  ;;  %v2130_v59 = vadd.f32 %v3241_v11, %v3647_v4  ;;  %v1978_v62 = vpop.f32.mrf.mxu1 }
 0x612   : > { %v4229_v40 = vmax.f32 %v2016_v21, %v2151_v58  ;;  %v2014_v15 = vmax.f32 %v4133_v52, %v2006_v24  ;;  %v2009_v55 = vmax.f32 %v1987_v16, 0.0  ;;  %v1979_v7 = vadd.f32 %v1978_v62, %v3643_v2  ;;  %v2121_v27 = vpop.f32.mrf.mxu0 }
 0x613   : > { %v2152_v20 = vmax.f32 %v2130_v59, 0.0  ;;  %v2122_v32 = vadd.f32 %v2121_v27, %v3643_v2  ;;  %v3228_v34 = vpop.f32.mrf.mxu1  ;;  %v2603_v21 = vrot.slane %v3880_v12, 2  ;;  %v2461_v59 = vsel %vm337_vm5, %v2460_v41, %v2459_v18 }
 0x614   : > { %v4236_v14 = vmax.f32 %v2014_v15, %v2149_v29  ;;  %v2017_v42 = vmax.f32 %v4141_v50, %v2009_v55  ;;  %v2007_v35 = vmax.f32 %v1979_v7, 0.0  ;;  %v2000_v56 = vadd.f32 %v3228_v34, %v3672_v48  ;;  %v3244_v52 = vpop.f32.mrf.mxu0 }
 0x615   : > { %v2150_v36 = vmax.f32 %v2122_v32, 0.0  ;;  %v2143_v53 = vadd.f32 %v3244_v52, %v3672_v48  ;;  %v1991_v54 = vpop.f32.mrf.mxu1  ;;  %v2602_v62 = vsel %vm334_vm4, %v2601_v49, %v2600_v17  ;;  %v2605_v27 = vrot.slane %v3884_v30, 1 }
 0x616   : > { %v4243_v60 = vmax.f32 %v2017_v42, %v2152_v20  ;;  %v2015_v13 = vmax.f32 %v4147_v6, %v2007_v35  ;;  %v2012_v46 = vmax.f32 %v2000_v56, 0.0  ;;  %v1992_v51 = vadd.f32 %v1991_v54, %v3652_v10  ;;  %v2134_v50 = vpop.f32.mrf.mxu0 }
 0x617   : > { %v2155_v45 = vmax.f32 %v2143_v53, 0.0  ;;  %v2135_v43 = vadd.f32 %v2134_v50, %v3652_v10  ;;  %v3229_v26 = vpop.f32.mrf.mxu1  ;;  %v2463_v35 = vrot.slane %v3889_v33, 7  ;;  %v2604_v56 = vsel %vm337_vm5, %v2603_v21, %v2602_v62 }
 0x618   : > { %v4249_v58 = vmax.f32 %v2015_v13, %v2150_v36  ;;  %v2020_v44 = vmax.f32 %v4154_v61, %v2012_v46  ;;  %v2010_v24 = vmax.f32 %v1992_v51, 0.0  ;;  %v2003_v25 = vadd.f32 %v3229_v26, %v3683_v8  ;;  %v3245_v16 = vpop.f32.mrf.mxu0 }
 0x619   : > { %v2153_v11 = vmax.f32 %v2135_v43, 0.0  ;;  %v2146_v6 = vadd.f32 %v3245_v16, %v3683_v8  ;;  %v1994_v29 = vpop.f32.mrf.mxu1  ;;  %v2606_v51 = vsel %vm340_vm6, %v2605_v27, %v2604_v56 }
 0x61a   : > { %v4256_v9 = vmax.f32 %v2020_v44, %v2155_v45  ;;  %v2018_v12 = vmax.f32 %v4160_v63, %v2010_v24  ;;  %v2013_v38 = vmax.f32 %v2003_v25, 0.0  ;;  %v1995_v15 = vadd.f32 %v1994_v29, %v3660_v31  ;;  %v2137_v61 = vpop.f32.mrf.mxu0 }
 0x61b   : > { %v2138_v55 = vadd.f32 %v2137_v61, %v3660_v31  ;;  %v2217_v7 = vpop.f32.mrf.mxu1  ;;  %v2156_v34 = vmax.f32 %v2146_v6, 0.0  ;;  %v2462_v63 = vsel %vm340_vm6, %v3884_v30, %v2461_v59  ;;  %v2607_v25 = vsel %vm343_vm7, %v3889_v33, %v2606_v51 }
 0x61c   : > { %v4262_v20 = vmax.f32 %v2018_v12, %v2153_v11  ;;  %v2021_v32 = vmax.f32 %v4167_v39, %v2013_v38  ;;  %v2011_v41 = vmax.f32 %v1995_v15, 0.0  ;;  %v2360_v49 = vpop.f32.mrf.mxu0  ;;  %v2218_v54 = vadd.f32 %v2217_v7, %v3578_v23 }
 0x61d   : > { %v3250_v42 = vpop.f32.mrf.mxu1  ;;  %v2154_v53 = vmax.f32 %v2138_v55, 0.0  ;;  %v2361_v39 = vadd.f32 %v2360_v49, %v3578_v23  ;;  %v2464_v43 = vsel %vm343_vm7, %v2463_v35, %v2462_v63  ;;  %v2608_v29 = vpack.c.b16 %v2607_v25, %v2607_v25 }
 0x61e   : > { %v4269_v52 = vmax.f32 %v2021_v32, %v2156_v34  ;;  %v2019_v36 = vmax.f32 %v4173_v47, %v2011_v41  ;;  %v3266_v18 = vpop.f32.mrf.mxu0  ;;  %v2224_v47 = vmax.f32 %v2218_v54, 0.0  ;;  %v2465_v11 = vpack.c.b16 %v2464_v43, %v2464_v43 }
 0x61f   : > { %v2220_v17 = vpop.f32.mrf.mxu1  ;;  %v2367_v44 = vmax.f32 %v2361_v39, 0.0  ;;  %v2610_v62 = vsel %vm350_vm8, %v2608_v29, 0 }
 0x620   : > { %v4274_v13 = vmax.f32 %v2019_v36, %v2154_v53  ;;  %v2221_v46 = vadd.f32 %v2220_v17, %v3589_v37  ;;  %v2363_v30 = vpop.f32.mrf.mxu0  ;;  %v2467_v59 = vsel %vm350_vm8, %v2465_v11, 0 }
 0x621   : > { %v2364_v50 = vadd.f32 %v2363_v30, %v3589_v37  ;;  %v3251_v45 = vpop.f32.mrf.mxu1 }
 0x622   : > { %v2225_v26 = vmax.f32 %v2221_v46, 0.0  ;;  %v3267_v21 = vpop.f32.mrf.mxu0 }
 0x623   : > { %v2368_v24 = vmax.f32 %v2364_v50, 0.0 }
 0x624   : > { %v2226_v16 = vpack.c.bf16 %v2225_v26, %v2224_v47 }
 0x625   : > { %v2369_v6 = vpack.c.bf16 %v2368_v24, %v2367_v44 }
 0x626   : > { %3252 = vmatprep.subr.bf16.mxu1 %v2226_v16 }
 0x627   : > { %3268 = vmatprep.subr.bf16.mxu0 %v2369_v6  ;;  %3253 = vmatpush3.bf16.msra.mxu1 %v2226_v16 }
 0x628   : > { %3269 = vmatpush3.bf16.msra.mxu0 %v2369_v6  ;;  %3278 = vmatprep.subr.bf16.mxu1 %v3389_v0 }
 0x629   : > { %3294 = vmatprep.subr.bf16.mxu0 %v3389_v0 }
 0x62a   : > { %3255 = vmatmul.mubr.msk.bf16.vlgmr.msra.gmra.mxu1 %vm474_vm10, %v4059_v57 }
 0x62b   : > { %3271 = vmatmul.mubr.msk.bf16.vlgmr.msra.gmra.mxu0 %vm474_vm10, %v4059_v57  ;;  %3279 = vmatpush3.bf16.msra.mxu1 %v2467_v59 }
 0x62c   : > { %3258 = vmatprep.mubr.msk.bf16.mxu1 %vm474_vm10, %v4069_v28  ;;  %3274 = vmatprep.mubr.msk.bf16.mxu0 %vm474_vm10, %v4069_v28 }
 0x62d   : > { %3295 = vmatpush3.bf16.msra.mxu0 %v2610_v62 }
 0x632   : > { %3259 = vmatmul.mubr.msk.bf16.gmra.mxu1 %vm474_vm10, %v4078_v19 }
 0x633   : > { %3275 = vmatmul.mubr.msk.bf16.gmra.mxu0 %vm474_vm10, %v4078_v19  ;;  %3280 = vmatprep.mubr.msk.bf16.mxu1 %vm3390_vm0, %v3389_v0 }
 0x634   : > { %3296 = vmatprep.mubr.msk.bf16.mxu0 %vm3390_vm0, %v3389_v0 }
 0x63a   : > { %3281 = vmatmul.mubr.msk.bf16.vlgmr.msra.gmra.mxu1 %vm346_vm9, %v4091_v5 }
 0x63b   : > { %3297 = vmatmul.mubr.msk.bf16.vlgmr.msra.gmra.mxu0 %vm346_vm9, %v4091_v5  ;;  %3286 = vmatprep.mubr.msk.bf16.mxu1 %vm474_vm10, %v4100_v22 }
 0x63c   : > { %3302 = vmatprep.mubr.msk.bf16.mxu0 %vm474_vm10, %v4100_v22 }
 0x6ea   : > { %v3256_v33 = vpop.f32.mrf.mxu1 }
 0x6eb   : > { %v2270_v12 = vadd.f32 %v3256_v33, %v3645_v3  ;;  %v3272_v38 = vpop.f32.mrf.mxu0 }
 0x6ec   : > { %v2413_v15 = vadd.f32 %v3272_v38, %v3645_v3  ;;  %v2261_v61 = vpop.f32.mrf.mxu1 }
 0x6ed   : > { %v2294_v0 = vmax.f32 %v2270_v12, 0.0  ;;  %v2262_v55 = vadd.f32 %v2261_v61, %v3641_v1  ;;  %v2404_v7 = vpop.f32.mrf.mxu0 }
 0x6ee   : > { %v2405_v27 = vadd.f32 %v2404_v7, %v3641_v1  ;;  %v3257_v5 = vpop.f32.mrf.mxu1  ;;  %v2437_v34 = vmax.f32 %v2413_v15, 0.0 }
 0x6ef   : > { %v2302_v32 = vmax.f32 %v4229_v40, %v2294_v0  ;;  %v2292_v41 = vmax.f32 %v2262_v55, 0.0  ;;  %v2273_v22 = vadd.f32 %v3257_v5, %v3647_v4  ;;  %v3273_v49 = vpop.f32.mrf.mxu0 }
 0x6f0   : > { %v2435_v42 = vmax.f32 %v2405_v27, 0.0  ;;  %v2416_v63 = vadd.f32 %v3273_v49, %v3647_v4  ;;  %v2264_v35 = vpop.f32.mrf.mxu1 }
 0x6f1   : > { %v4317_v56 = vmax.f32 %v2302_v32, %v2437_v34  ;;  %v2300_v36 = vmax.f32 %v4236_v14, %v2292_v41  ;;  %v2295_v53 = vmax.f32 %v2273_v22, 0.0  ;;  %v2265_v54 = vadd.f32 %v2264_v35, %v3643_v2  ;;  %v2407_v18 = vpop.f32.mrf.mxu0 }
 0x6f2   : > { %v2438_v39 = vmax.f32 %v2416_v63, 0.0  ;;  %v2408_v40 = vadd.f32 %v2407_v18, %v3643_v2  ;;  %v3260_v17 = vpop.f32.mrf.mxu1 }
 0x6f3   : > { %v4322_v46 = vmax.f32 %v2300_v36, %v2435_v42  ;;  %v2303_v30 = vmax.f32 %v4243_v60, %v2295_v53  ;;  %v2293_v51 = vmax.f32 %v2265_v54, 0.0  ;;  %v2286_v50 = vadd.f32 %v3260_v17, %v3672_v48  ;;  %v3276_v45 = vpop.f32.mrf.mxu0 }
 0x6f4   : > { %v2436_v43 = vmax.f32 %v2408_v40, 0.0  ;;  %v2429_v47 = vadd.f32 %v3276_v45, %v3672_v48  ;;  %v2277_v14 = vpop.f32.mrf.mxu1 }
 0x6f5   : > { %v4327_v26 = vmax.f32 %v2303_v30, %v2438_v39  ;;  %v2301_v21 = vmax.f32 %v4249_v58, %v2293_v51  ;;  %v2298_v44 = vmax.f32 %v2286_v50, 0.0  ;;  %v2278_v24 = vadd.f32 %v2277_v14, %v3652_v10  ;;  %v2420_v25 = vpop.f32.mrf.mxu0 }
 0x6f6   : > { %v2441_v16 = vmax.f32 %v2429_v47, 0.0  ;;  %v2421_v11 = vadd.f32 %v2420_v25, %v3652_v10  ;;  %v3261_v60 = vpop.f32.mrf.mxu1 }
 0x6f7   : > { %v4332_v6 = vmax.f32 %v2301_v21, %v2436_v43  ;;  %v2306_v29 = vmax.f32 %v4256_v9, %v2298_v44  ;;  %v2296_v59 = vmax.f32 %v2278_v24, 0.0  ;;  %v2289_v62 = vadd.f32 %v3261_v60, %v3683_v8  ;;  %v3277_v33 = vpop.f32.mrf.mxu0 }
 0x6f8   : > { %v2439_v12 = vmax.f32 %v2421_v11, 0.0  ;;  %v2432_v38 = vadd.f32 %v3277_v33, %v3683_v8  ;;  %v2280_v58 = vpop.f32.mrf.mxu1 }
 0x6f9   : > { %v4337_v15 = vmax.f32 %v2306_v29, %v2441_v16  ;;  %v2304_v61 = vmax.f32 %v4262_v20, %v2296_v59  ;;  %v2299_v0 = vmax.f32 %v2289_v62, 0.0  ;;  %v2281_v55 = vadd.f32 %v2280_v58, %v3660_v31  ;;  %v2423_v7 = vpop.f32.mrf.mxu0 }
 0x6fa   : > { %v2424_v27 = vadd.f32 %v2423_v7, %v3660_v31  ;;  %v2503_v5 = vpop.f32.mrf.mxu1  ;;  %v2442_v34 = vmax.f32 %v2432_v38, 0.0 }
 0x6fb   : > { %v4342_v9 = vmax.f32 %v2304_v61, %v2439_v12  ;;  %v2307_v32 = vmax.f32 %v4269_v52, %v2299_v0  ;;  %v2297_v41 = vmax.f32 %v2281_v55, 0.0  ;;  %v2646_v22 = vpop.f32.mrf.mxu0  ;;  %v2504_v35 = vadd.f32 %v2503_v5, %v3578_v23 }
 0x6fc   : > { %v3282_v49 = vpop.f32.mrf.mxu1  ;;  %v2440_v20 = vmax.f32 %v2424_v27, 0.0  ;;  %v2647_v53 = vadd.f32 %v2646_v22, %v3578_v23 }
 0x6fd   : > { %v4345_v42 = vmax.f32 %v2307_v32, %v2442_v34  ;;  %v2305_v63 = vmax.f32 %v4274_v13, %v2297_v41  ;;  %v3298_v36 = vpop.f32.mrf.mxu0  ;;  %v2510_v30 = vmax.f32 %v2504_v35, 0.0 }
 0x6fe   : > { %v2506_v54 = vpop.f32.mrf.mxu1  ;;  %v2653_v45 = vmax.f32 %v2647_v53, 0.0 }
 0x6ff   : > { %v4350_v18 = vmax.f32 %v2305_v63, %v2440_v20  ;;  %v2507_v39 = vadd.f32 %v2506_v54, %v3589_v37  ;;  %v2649_v52 = vpop.f32.mrf.mxu0 }
 0x700   : > { %v2650_v40 = vadd.f32 %v2649_v52, %v3589_v37  ;;  %v3283_v17 = vpop.f32.mrf.mxu1 }
 0x701   : > { %v2511_v51 = vmax.f32 %v2507_v39, 0.0  ;;  %v3299_v50 = vpop.f32.mrf.mxu0 }
 0x702   : > { %v2654_v13 = vmax.f32 %v2650_v40, 0.0 }
 0x703   : > { %v2512_v43 = vpack.c.bf16 %v2511_v51, %v2510_v30 }
 0x704   : > { %v2655_v47 = vpack.c.bf16 %v2654_v13, %v2653_v45 }
 0x705   : > { %3284 = vmatprep.subr.bf16.mxu1 %v2512_v43 }
 0x706   : > { %3300 = vmatprep.subr.bf16.mxu0 %v2655_v47  ;;  %3285 = vmatpush3.bf16.msra.mxu1 %v2512_v43 }
 0x707   : > { %3301 = vmatpush3.bf16.msra.mxu0 %v2655_v47 }
 0x709   : > { %3287 = vmatmul.mubr.msk.bf16.vlgmr.msra.gmra.mxu1 %vm474_vm10, %v4059_v57 }
 0x70a   : > { %3303 = vmatmul.mubr.msk.bf16.vlgmr.msra.gmra.mxu0 %vm474_vm10, %v4059_v57  ;;  %3290 = vmatprep.mubr.msk.bf16.mxu1 %vm474_vm10, %v4069_v28 }
 0x70b   : > { %3306 = vmatprep.mubr.msk.bf16.mxu0 %vm474_vm10, %v4069_v28 }
 0x711   : > { %3291 = vmatmul.mubr.msk.bf16.gmra.mxu1 %vm474_vm10, %v4078_v19 }
 0x712   : > { %3307 = vmatmul.mubr.msk.bf16.gmra.mxu0 %vm474_vm10, %v4078_v19 }
 0x7c9   : > { %v3288_v23 = vpop.f32.mrf.mxu1 }
 0x7ca   : > { %v2556_v37 = vadd.f32 %v3288_v23, %v3645_v3  ;;  %v3304_v14 = vpop.f32.mrf.mxu0 }
 0x7cb   : > { %v2699_v21 = vadd.f32 %v3304_v14, %v3645_v3  ;;  %v2547_v57 = vpop.f32.mrf.mxu1 }
 0x7cc   : > { %v2580_v44 = vmax.f32 %v2556_v37, 0.0  ;;  %v2548_v24 = vadd.f32 %v2547_v57, %v3641_v1  ;;  %v2690_v25 = vpop.f32.mrf.mxu0 }
 0x7cd   : > { %v2691_v28 = vadd.f32 %v2690_v25, %v3641_v1  ;;  %v3289_v16 = vpop.f32.mrf.mxu1  ;;  %v2723_v60 = vmax.f32 %v2699_v21, 0.0 }
 0x7ce   : > { %v2588_v11 = vmax.f32 %v4317_v56, %v2580_v44  ;;  %v2578_v29 = vmax.f32 %v2548_v24, 0.0  ;;  %v2559_v19 = vadd.f32 %v3289_v16, %v3647_v4  ;;  %v3305_v59 = vpop.f32.mrf.mxu0 }
 0x7cf   : > { %v2721_v3 = vmax.f32 %v2691_v28, 0.0  ;;  %v2702_v62 = vadd.f32 %v3305_v59, %v3647_v4  ;;  %v2550_v33 = vpop.f32.mrf.mxu1 }
 0x7d0   : > { %v2731_v1 = vmax.f32 %v2588_v11, %v2723_v60  ;;  %v2586_v12 = vmax.f32 %v4322_v46, %v2578_v29  ;;  %v2581_v56 = vmax.f32 %v2559_v19, 0.0  ;;  %v2551_v38 = vadd.f32 %v2550_v33, %v3643_v2  ;;  %v2693_v58 = vpop.f32.mrf.mxu0 }
 0x7d1   : > { %v2724_v61 = vmax.f32 %v2702_v62, 0.0  ;;  %v2694_v0 = vadd.f32 %v2693_v58, %v3643_v2  ;;  %v3292_v55 = vpop.f32.mrf.mxu1 }
 0x7d2   : > { %2739 = vst.msk [vmem:[%s4377_s28 + $0x10] sm:$0xff] %vm346_vm9, %v2731_v1  ;;  %v2729_v7 = vmax.f32 %v2586_v12, %v2721_v3  ;;  %v2589_v27 = vmax.f32 %v4327_v26, %v2581_v56  ;;  %v2579_v4 = vmax.f32 %v2551_v38, 0.0  ;;  %v2572_v5 = vadd.f32 %v3292_v55, %v3672_v48  ;;  %v3308_v32 = vpop.f32.mrf.mxu0 }
 0x7d3   : > { %v2722_v46 = vmax.f32 %v2694_v0, 0.0  ;;  %v2715_v34 = vadd.f32 %v3308_v32, %v3672_v48  ;;  %v2563_v41 = vpop.f32.mrf.mxu1 }
 0x7d4   : > { %2737 = vst.msk [vmem:[%s4377_s28] sm:$0xff] %vm346_vm9, %v2729_v7  ;;  %v2732_v22 = vmax.f32 %v2589_v27, %v2724_v61  ;;  %v2587_v2 = vmax.f32 %v4332_v6, %v2579_v4  ;;  %v2584_v49 = vmax.f32 %v2572_v5, 0.0  ;;  %v2564_v63 = vadd.f32 %v2563_v41, %v3652_v10  ;;  %v2706_v20 = vpop.f32.mrf.mxu0 }
 0x7d5   : > { %v2727_v26 = vmax.f32 %v2715_v34, 0.0  ;;  %v2707_v35 = vadd.f32 %v2706_v20, %v3652_v10  ;;  %v3293_v36 = vpop.f32.mrf.mxu1 }
 0x7d6   : > { %2740 = vst.msk [vmem:[%s4377_s28 + $0x18] sm:$0xff] %vm346_vm9, %v2732_v22  ;;  %v2730_v53 = vmax.f32 %v2587_v2, %v2722_v46  ;;  %v2592_v48 = vmax.f32 %v4337_v15, %v2584_v49  ;;  %v2582_v54 = vmax.f32 %v2564_v63, 0.0  ;;  %v2575_v39 = vadd.f32 %v3293_v36, %v3683_v8  ;;  %v3309_v52 = vpop.f32.mrf.mxu0 }
 0x7d7   : > { %v2725_v6 = vmax.f32 %v2707_v35, 0.0  ;;  %v2718_v40 = vadd.f32 %v3309_v52, %v3683_v8  ;;  %v2566_v17 = vpop.f32.mrf.mxu1 }
 0x7d8   : > { %2738 = vst.msk [vmem:[%s4377_s28 + $0x8] sm:$0xff] %vm346_vm9, %v2730_v53  ;;  %v2735_v10 = vmax.f32 %v2592_v48, %v2727_v26  ;;  %v2590_v30 = vmax.f32 %v4342_v9, %v2582_v54  ;;  %v2585_v51 = vmax.f32 %v2575_v39, 0.0  ;;  %v2567_v50 = vadd.f32 %v2566_v17, %v3660_v31  ;;  %v2709_v15 = vpop.f32.mrf.mxu0 }
 0x7d9   : > { %v2710_v45 = vadd.f32 %v2709_v15, %v3660_v31  ;;  %v2728_v8 = vmax.f32 %v2718_v40, 0.0 }
 0x7da   : > { %2743 = vst.msk [vmem:[%s4377_s28 + $0x30] sm:$0xff] %vm346_vm9, %v2735_v10  ;;  %v2733_v13 = vmax.f32 %v2590_v30, %v2725_v6  ;;  %v2593_v43 = vmax.f32 %v4345_v42, %v2585_v51  ;;  %v2583_v47 = vmax.f32 %v2567_v50, 0.0 }
 0x7db   : > { %v2726_v9 = vmax.f32 %v2710_v45, 0.0 }
 0x7dc   : > { %2741 = vst.msk [vmem:[%s4377_s28 + $0x20] sm:$0xff] %vm346_vm9, %v2733_v13  ;;  %v2736_v23 = vmax.f32 %v2593_v43, %v2728_v8  ;;  %v2591_v37 = vmax.f32 %v4350_v18, %v2583_v47 }
 0x7de   : > { %2744 = vst.msk [vmem:[%s4377_s28 + $0x38] sm:$0xff] %vm346_vm9, %v2736_v23  ;;  %v2734_v14 = vmax.f32 %v2591_v37, %v2726_v9 }
 0x7e0   : > { %2742 = vst.msk [vmem:[%s4377_s28 + $0x28] sm:$0xff] %vm346_vm9, %v2734_v14 }
 0x7e1 PF: > { %s15_s20 = sadd.s32 1, %s3387_s20   ;;  %s4428_s18 = smov %s3383_s19 }
 0x7e2   : > { %p12_p5 = scmp.ge.s32.totalorder %s15_s20, 4   ;;  %s4429_s19 = smov %s4431_s21 }
 0x7e4   :  { %14 = sbr.rel (!%p12_p5) target bundleno = 2 (0x2), region = 70 }

// kernel: _lambda_.6
= control target key start
LH: loop header
LB: loop body
LE: loop exit
PB: predicated region body
PF: predicated region fallthrough
CT: control target
= control target key end

     0   :  { %s1689_s18 = smov 0   ;;  %s1691_s19 = smov 0   ;;  %s2042_s0 = inlined_call_operand.vmem [shape: bf16[2,8,8,8], index: 0, kind: input, shape index: {}]   ;;  %s2043_s1 = inlined_call_operand.vmem [shape: bf16[16,8], index: 1, kind: input, shape index: {}]   ;;  %s2044_s2 = inlined_call_operand.vmem [shape: f32[16,1], index: 2, kind: input, shape index: {}]   ;;  %s2045_s3 = inlined_call_operand.vmem [shape: bf16[32,16], index: 3, kind: input, shape index: {}]   ;;  %s2046_s4 = inlined_call_operand.vmem [shape: f32[32,1], index: 4, kind: input, shape index: {}]   ;;  %s2047_s5 = inlined_call_operand.vmem [shape: f32[2,32,8], index: 5, kind: output, shape index: {}]  }
   0x1   :  { %s1693_s20 = smov 0  }
   0x2 LB: > { %s27_s21 = sadd.s32 1, %s1650_s19  ;;  %p1412_p0 = scmp.ge.s32.totalorder %s1654_s20, 1  ;;  %s1654_s20 = sphi %s1693_s20, %s15_s20   ;;  %s1650_s19 = sphi %s1691_s19, %s2049_s19   ;;  %s1646_s18 = sphi %s1689_s18, %s2048_s18  }
   0x3   : > { %p29_p1 = scmp.ge.s32.totalorder %s27_s21, 2  ;;  %p206_p2 = scmp.lt.s32.totalorder %s1654_s20, 3 }
   0x5   : > { %s2051_s21 = smov (%p29_p1, %s27_s21), 0  ;;  %p207_p3 = pnand %p1412_p0, %p206_p2 }
   0x6   : > { %p240_p4 = scmp.lt.s32.totalorder (!%p207_p3), %s1646_s18, 1 }
   0x7   : > { %210 = sbr.rel (%p207_p3) target bundleno = 502 (0x1f6), region = 40 }
   0xc   : > { %v1656_v0 = vmov 0.0   ;;  %s2053_s18 = smov (!%p240_p4, %s1646_s18), 1  ;;  %vm1657_vm0 = vmmov 0   ;;  %v267_v1 = vld [vmem:[%s2044_s2] sm:$0xff]  ;;  %vm317_vm1 = vcmask 1041409   ;;  %v1658_v2 = vmov 0  }
   0xd   : > { %1496 = vmatprep.subr.bf16.mxu0 %v1656_v0  ;;  %1498 = vmatprep.mubr.msk.bf16.mxu0 %vm1657_vm0, %v1656_v0  ;;  %s1454_s24 = sshll.u32 %s2053_s18, 5  ;;  %vm320_vm2 = vcmask 1042434   ;;  %v268_v3 = vld [vmem:[%s2044_s2 + $0x8] sm:$0xff]  ;;  %vm323_vm3 = vcmask 1043459   ;;  %vm326_vm4 = vcmask 1044484   ;;  %vm329_vm5 = vcmask 1045509  }
   0xe   : > { %1619 = vset.pattern.permute.xlu0 %v1658_v2  ;;  %1620 = vset.pattern.permute.xlu1 %v1658_v2  ;;  %s247_s27 = scalar_lea.vmem %s2042_s0, %s1454_s24  ;;  %v396_v5 = vld [vmem:[%s2046_s4 + $0x10] sm:$0xff]  ;;  %vm332_vm6 = vcmask 1046534   ;;  %vm335_vm7 = vcmask 1047559   ;;  %vm342_vm8 = vcmask 1043456   ;;  %vm338_vm9 = vcmask 64512   ;;  %s255_s26 = scalar_lea.vmem %s2047_s5, %s1454_s24 }
   0xf   : > { %271 = vperm.xlu0 %1619, %v267_v1   ;;  %v1621_v4 = vld [vmem:[%s247_s27] ss:$0 sps:$4 sm:$0xff]   ;;  %v1622_v6 = vld [vmem:[%s247_s27 + $0x4] ss:$0 sps:$4 sm:$0xff]   ;;  %v1623_v7 = vld [vmem:[%s247_s27 + $0x8] ss:$0 sps:$4 sm:$0xff]  }
  0x10   : > { %v1624_v8 = vld [vmem:[%s247_s27 + $0xc] ss:$0 sps:$4 sm:$0xff]   ;;  %v1625_v9 = vld [vmem:[%s247_s27 + $0x10] ss:$0 sps:$4 sm:$0xff]   ;;  %v1626_v10 = vld [vmem:[%s247_s27 + $0x14] ss:$0 sps:$4 sm:$0xff]   ;;  %v1727_v12 = vunpack.c.l.b16 %v1621_v4  ;;  %v1729_v14 = vunpack.c.l.b16 %v1622_v6  ;;  %v1731_v15 = vunpack.c.l.b16 %v1623_v7 }
  0x11   : > { %v1627_v11 = vld [vmem:[%s247_s27 + $0x18] ss:$0 sps:$4 sm:$0xff]   ;;  %v1628_v13 = vld [vmem:[%s247_s27 + $0x1c] ss:$0 sps:$4 sm:$0xff]   ;;  %v1733_v16 = vunpack.c.l.b16 %v1624_v8  ;;  %v1735_v17 = vunpack.c.l.b16 %v1625_v9  ;;  %v1737_v18 = vunpack.c.l.b16 %v1626_v10  ;;  %vm428_vm10 = vcmask 130048  }
  0x12   : > { %v1739_v19 = vunpack.c.l.b16 %v1627_v11  ;;  %v488_v20 = vrot.slane %v1727_v12, 1  ;;  %v1742_v21 = vunpack.c.l.b16 %v1628_v13  ;;  %v316_v22 = vrot.slane %v1729_v14, 7 }
  0x13   : > { %276 = vperm.xlu0 %1619, %v268_v3   ;;  %v319_v23 = vrot.slane %v1731_v15, 6  ;;  %v322_v24 = vrot.slane %v1733_v16, 5  ;;  %v325_v25 = vrot.slane %v1735_v17, 4  ;;  %v328_v26 = vrot.slane %v1737_v18, 3  ;;  %v1792_v3 = vld [vmem:[%s2043_s1] sm:$0xff]  }
  0x14   : > { %v331_v27 = vrot.slane %v1739_v19, 2  ;;  %v489_v28 = vsel %vm317_vm1, %v1729_v14, %v488_v20  ;;  %v318_v29 = vsel %vm317_vm1, %v316_v22, %v1727_v12  ;;  %v334_v30 = vrot.slane %v1742_v21, 1 }
  0x15   : > { %v490_v31 = vrot.slane %v1731_v15, 7  ;;  %v492_v32 = vrot.slane %v1733_v16, 6  ;;  %v321_v33 = vsel %vm320_vm2, %v319_v23, %v318_v29  ;;  %v494_v34 = vrot.slane %v1735_v17, 5 }
  0x16   : > { %v496_v35 = vrot.slane %v1737_v18, 4  ;;  %v498_v36 = vrot.slane %v1739_v19, 3  ;;  %v324_v37 = vsel %vm323_vm3, %v322_v24, %v321_v33  ;;  %v500_v39 = vrot.slane %v1742_v21, 2 }
  0x17   : > { %410 = vperm.xlu0 %1619, %v396_v5   ;;  %v491_v38 = vsel %vm320_vm2, %v490_v31, %v489_v28  ;;  %v607_v40 = vrot.slane %v1727_v12, 2  ;;  %v327_v41 = vsel %vm326_vm4, %v325_v25, %v324_v37  ;;  %v608_v43 = vrot.slane %v1729_v14, 1 }
  0x18   : > { %v493_v42 = vsel %vm323_vm3, %v492_v32, %v491_v38  ;;  %v611_v44 = vrot.slane %v1733_v16, 7  ;;  %v330_v45 = vsel %vm329_vm5, %v328_v26, %v327_v41  ;;  %v613_v47 = vrot.slane %v1735_v17, 6 }
  0x19   : > { %v495_v46 = vsel %vm326_vm4, %v494_v34, %v493_v42  ;;  %v615_v48 = vrot.slane %v1737_v18, 5  ;;  %v333_v49 = vsel %vm332_vm6, %v331_v27, %v330_v45  ;;  %v609_v51 = vsel %vm317_vm1, %v608_v43, %v607_v40 }
  0x1a   : > { %v497_v50 = vsel %vm329_vm5, %v496_v35, %v495_v46  ;;  %v617_v52 = vrot.slane %v1739_v19, 4  ;;  %v336_v53 = vsel %vm335_vm7, %v334_v30, %v333_v49  ;;  %v610_v55 = vsel %vm320_vm2, %v1731_v15, %v609_v51 }
  0x1b   : > { %v499_v54 = vsel %vm332_vm6, %v498_v36, %v497_v50  ;;  %v619_v56 = vrot.slane %v1742_v21, 3  ;;  %v337_v57 = vpack.c.b16 %v336_v53, %v336_v53  ;;  %v612_v59 = vsel %vm323_vm3, %v611_v44, %v610_v55 }
  0x1c   : > { %v501_v58 = vsel %vm335_vm7, %v500_v39, %v499_v54  ;;  %v726_v60 = vrot.slane %v1727_v12, 3  ;;  %v614_v62 = vsel %vm326_vm4, %v613_v47, %v612_v59  ;;  %v727_v63 = vrot.slane %v1729_v14, 2 }
  0x1d   : > { %v502_v61 = vpack.c.b16 %v501_v58, %v501_v58  ;;  %v729_v1 = vrot.slane %v1731_v15, 1  ;;  %v344_v2 = vsel %vm342_vm8, %v337_v57, 0  ;;  %v616_v4 = vsel %vm329_vm5, %v615_v48, %v614_v62 }
  0x1e   : > { %v732_v5 = vrot.slane %v1735_v17, 7  ;;  %1497 = vmatpush3.bf16.msra.mxu0 %v344_v2  ;;  %v618_v6 = vsel %vm332_vm6, %v617_v52, %v616_v4  ;;  %v728_v7 = vsel %vm317_vm1, %v727_v63, %v726_v60  ;;  %v734_v8 = vrot.slane %v1737_v18, 6 }
  0x1f   : > { %1508 = vmatprep.subr.bf16.mxu0 %v1656_v0  ;;  %v504_v9 = vsel %vm342_vm8, %v502_v61, 0  ;;  %v730_v10 = vsel %vm320_vm2, %v729_v1, %v728_v7  ;;  %v845_v11 = vrot.slane %v1727_v12, 4  ;;  %v620_v13 = vsel %vm335_vm7, %v619_v56, %v618_v6 }
  0x20   : > { %v731_v20 = vsel %vm323_vm3, %v1733_v16, %v730_v10  ;;  %v846_v22 = vrot.slane %v1729_v14, 3  ;;  %v848_v23 = vrot.slane %v1731_v15, 2  ;;  %v736_v25 = vrot.slane %v1739_v19, 5 }
  0x21   : > { %1499 = vmatmul.mubr.msk.bf16.vlgmr.msra.gmra.mxu0 %vm338_vm9, %v1792_v3  ;;  %v733_v24 = vsel %vm326_vm4, %v732_v5, %v731_v20  ;;  %v850_v26 = vrot.slane %v1733_v16, 1  ;;  %v621_v29 = vpack.c.b16 %v620_v13, %v620_v13  ;;  %v964_v31 = vrot.slane %v1727_v12, 5 }
  0x22   : > { %1509 = vmatpush3.bf16.msra.mxu0 %v504_v9  ;;  %1510 = vmatprep.mubr.msk.bf16.mxu0 %vm1657_vm0, %v1656_v0  ;;  %v735_v27 = vsel %vm329_vm5, %v734_v8, %v733_v24  ;;  %v847_v28 = vsel %vm317_vm1, %v846_v22, %v845_v11  ;;  %v965_v32 = vrot.slane %v1729_v14, 4  ;;  %v738_v33 = vrot.slane %v1742_v21, 4 }
  0x23   : > { %1520 = vmatprep.subr.bf16.mxu0 %v1656_v0  ;;  %v849_v30 = vsel %vm320_vm2, %v848_v23, %v847_v28  ;;  %v737_v35 = vsel %vm332_vm6, %v736_v25, %v735_v27  ;;  %v967_v36 = vrot.slane %v1731_v15, 3  ;;  %v853_v37 = vrot.slane %v1737_v18, 7 }
  0x24   : > { %v851_v34 = vsel %vm323_vm3, %v850_v26, %v849_v30  ;;  %v966_v38 = vsel %vm317_vm1, %v965_v32, %v964_v31  ;;  %v623_v39 = vsel %vm342_vm8, %v621_v29, 0  ;;  %v739_v41 = vsel %vm335_vm7, %v738_v33, %v737_v35 }
  0x25   : > { %v852_v40 = vsel %vm326_vm4, %v1735_v17, %v851_v34  ;;  %v969_v42 = vrot.slane %v1733_v16, 2  ;;  %v855_v43 = vrot.slane %v1739_v19, 6  ;;  %v968_v44 = vsel %vm320_vm2, %v967_v36, %v966_v38  ;;  %v394_v34 = vld [vmem:[%s2046_s4] sm:$0xff] }
  0x26   : > { %v854_v45 = vsel %vm329_vm5, %v853_v37, %v852_v40  ;;  %v1083_v46 = vrot.slane %v1727_v12, 6  ;;  %v1084_v47 = vrot.slane %v1729_v14, 5  ;;  %v740_v48 = vpack.c.b16 %v739_v41, %v739_v41  ;;  %400 = vperm.xlu1 %1620, %v394_v34  }
  0x27   : > { %v971_v49 = vrot.slane %v1735_v17, 1  ;;  %v857_v50 = vrot.slane %v1742_v21, 5  ;;  %v970_v51 = vsel %vm323_vm3, %v969_v42, %v968_v44  ;;  %v856_v52 = vsel %vm332_vm6, %v855_v43, %v854_v45 }
  0x28   : > { %v1086_v53 = vrot.slane %v1731_v15, 4  ;;  %v1085_v54 = vsel %vm317_vm1, %v1084_v47, %v1083_v46  ;;  %v742_v55 = vsel %vm342_vm8, %v740_v48, 0  ;;  %v1088_v58 = vrot.slane %v1733_v16, 3 }
  0x29   : > { %1511 = vmatmul.mubr.msk.bf16.vlgmr.msra.gmra.mxu0 %vm338_vm9, %v1792_v3  ;;  %v972_v56 = vsel %vm326_vm4, %v971_v49, %v970_v51  ;;  %v858_v57 = vsel %vm335_vm7, %v857_v50, %v856_v52  ;;  %v974_v59 = vrot.slane %v1739_v19, 7  ;;  %v1202_v62 = vrot.slane %v1727_v12, 7  ;;  %v1939_v49 = vld [vmem:[%s2045_s3 + $0x8] sm:$0xff]  }
  0x2a   : > { %1521 = vmatpush3.bf16.msra.mxu0 %v623_v39  ;;  %1522 = vmatprep.mubr.msk.bf16.mxu0 %vm1657_vm0, %v1656_v0  ;;  %v1087_v60 = vsel %vm320_vm2, %v1086_v53, %v1085_v54  ;;  %v973_v61 = vsel %vm329_vm5, %v1737_v18, %v972_v56  ;;  %v1203_v63 = vrot.slane %v1729_v14, 6  ;;  %v859_v1 = vpack.c.b16 %v858_v57, %v858_v57 }
  0x2b   : > { %1532 = vmatprep.subr.bf16.mxu0 %v1656_v0  ;;  %v1090_v2 = vrot.slane %v1735_v17, 2  ;;  %v976_v4 = vrot.slane %v1742_v21, 6  ;;  %v1089_v5 = vsel %vm323_vm3, %v1088_v58, %v1087_v60  ;;  %v975_v6 = vsel %vm332_vm6, %v974_v59, %v973_v61 }
  0x2c   : > { %v1205_v7 = vrot.slane %v1731_v15, 5  ;;  %v1092_v8 = vrot.slane %v1737_v18, 1  ;;  %v1204_v9 = vsel %vm317_vm1, %v1203_v63, %v1202_v62  ;;  %v861_v12 = vsel %vm342_vm8, %v859_v1, 0 }
  0x2d   : > { %v1091_v14 = vsel %vm326_vm4, %v1090_v2, %v1089_v5  ;;  %v977_v10 = vsel %vm335_vm7, %v976_v4, %v975_v6  ;;  %v1207_v11 = vrot.slane %v1733_v16, 4  ;;  %v1209_v22 = vrot.slane %v1735_v17, 3 }
  0x2e   : > { %v1206_v13 = vsel %vm320_vm2, %v1205_v7, %v1204_v9  ;;  %v1093_v15 = vsel %vm329_vm5, %v1092_v8, %v1091_v14  ;;  %v978_v20 = vpack.c.b16 %v977_v10, %v977_v10  ;;  %v1095_v23 = vrot.slane %v1742_v21, 7 }
  0x2f   : > { %v1208_v16 = vsel %vm323_vm3, %v1207_v11, %v1206_v13  ;;  %v1094_v24 = vsel %vm332_vm6, %v1739_v19, %v1093_v15  ;;  %v1211_v25 = vrot.slane %v1737_v18, 2  ;;  %v1213_v17 = vrot.slane %v1739_v19, 1 }
  0x30   : > { %v980_v26 = vsel %vm342_vm8, %v978_v20, 0  ;;  %v1210_v27 = vsel %vm326_vm4, %v1209_v22, %v1208_v16  ;;  %v1096_v28 = vsel %vm335_vm7, %v1095_v23, %v1094_v24 }
  0x31   : > { %1523 = vmatmul.mubr.msk.bf16.vlgmr.msra.gmra.mxu0 %vm338_vm9, %v1792_v3  ;;  %v1212_v29 = vsel %vm329_vm5, %v1211_v25, %v1210_v27  ;;  %v1097_v18 = vpack.c.b16 %v1096_v28, %v1096_v28 }
  0x32   : > { %1533 = vmatpush3.bf16.msra.mxu0 %v742_v55  ;;  %1534 = vmatprep.mubr.msk.bf16.mxu0 %vm1657_vm0, %v1656_v0  ;;  %v1214_v30 = vsel %vm332_vm6, %v1213_v17, %v1212_v29 }
  0x33   : > { %1544 = vmatprep.subr.bf16.mxu0 %v1656_v0  ;;  %v1099_v31 = vsel %vm342_vm8, %v1097_v18, 0  ;;  %v1215_v32 = vsel %vm335_vm7, %v1742_v21, %v1214_v30  ;;  %v1916_v21 = vld [vmem:[%s2045_s3] sm:$0xff]  }
  0x34   : > { %v1216_v19 = vpack.c.b16 %v1215_v32, %v1215_v32  ;;  %1504 = vmatprep.mubr.msk.bf16.mxu1 %vm428_vm10, %v1916_v21 }
  0x36   : > { %v1218_v33 = vsel %vm342_vm8, %v1216_v19, 0 }
  0x39   : > { %1535 = vmatmul.mubr.msk.bf16.vlgmr.msra.gmra.mxu0 %vm338_vm9, %v1792_v3 }
  0x3a   : > { %1545 = vmatpush3.bf16.msra.mxu0 %v861_v12  ;;  %1546 = vmatprep.mubr.msk.bf16.mxu0 %vm1657_vm0, %v1656_v0 }
  0x3b   : > { %1556 = vmatprep.subr.bf16.mxu0 %v1656_v0 }
  0x41   : > { %1547 = vmatmul.mubr.msk.bf16.vlgmr.msra.gmra.mxu0 %vm338_vm9, %v1792_v3 }
  0x42   : > { %1557 = vmatpush3.bf16.msra.mxu0 %v980_v26  ;;  %1558 = vmatprep.mubr.msk.bf16.mxu0 %vm1657_vm0, %v1656_v0 }
  0x43   : > { %1568 = vmatprep.subr.bf16.mxu0 %v1656_v0 }
  0x49   : > { %1559 = vmatmul.mubr.msk.bf16.vlgmr.msra.gmra.mxu0 %vm338_vm9, %v1792_v3 }
  0x4a   : > { %1569 = vmatpush3.bf16.msra.mxu0 %v1099_v31  ;;  %1570 = vmatprep.mubr.msk.bf16.mxu0 %vm1657_vm0, %v1656_v0 }
  0x4b   : > { %1580 = vmatprep.subr.bf16.mxu0 %v1656_v0 }
  0x51   : > { %1571 = vmatmul.mubr.msk.bf16.vlgmr.msra.gmra.mxu0 %vm338_vm9, %v1792_v3 }
  0x52   : > { %1581 = vmatpush3.bf16.msra.mxu0 %v1218_v33  ;;  %1582 = vmatprep.mubr.msk.bf16.mxu0 %vm1657_vm0, %v1656_v0  ;;  %v395_v0 = vld [vmem:[%s2046_s4 + $0x8] sm:$0xff] }
  0x53   : > { %405 = vperm.xlu1 %1620, %v395_v0  }
  0x59   : > { %1583 = vmatmul.mubr.msk.bf16.vlgmr.msra.gmra.mxu0 %vm338_vm9, %v1792_v3  ;;  %v397_v3 = vld [vmem:[%s2046_s4 + $0x18] sm:$0xff] }
  0x5a   : > { %415 = vperm.xlu1 %1620, %v397_v3  }
  0x8a   : > { %v1929_v35 = vpop.permute.xlu0 %271 }
  0x8e   : > { %v1932_v39 = vpop.permute.xlu0 %276 }
  0xe1   : > { %v380_v36 = vpop.f32.mrf.mxu0 }
  0xe2   : > { %v381_v38 = vadd.f32 %v380_v36, %v1929_v35 }
  0xe3   : > { %v1500_v37 = vpop.f32.mrf.mxu0 }
  0xe4   : > { %v387_v43 = vmax.f32 %v381_v38, 0.0 }
  0xe5   : > { %v383_v40 = vpop.f32.mrf.mxu0 }
  0xe6   : > { %v384_v41 = vadd.f32 %v383_v40, %v1932_v39 }
  0xe7   : > { %v1501_v42 = vpop.f32.mrf.mxu0 }
  0xe8   : > { %v388_v44 = vmax.f32 %v384_v41, 0.0 }
  0xe9   : > { %v540_v45 = vpop.f32.mrf.mxu0 }
  0xea   : > { %v389_v46 = vpack.c.bf16 %v388_v44, %v387_v43  ;;  %v541_v48 = vadd.f32 %v540_v45, %v1929_v35 }
  0xeb   : > { %v1512_v47 = vpop.f32.mrf.mxu0 }
  0xec   : > { %1502 = vmatprep.subr.bf16.mxu1 %v389_v46  ;;  %v547_v53 = vmax.f32 %v541_v48, 0.0 }
  0xed   : > { %1503 = vmatpush3.bf16.msra.mxu1 %v389_v46  ;;  %v543_v50 = vpop.f32.mrf.mxu0 }
  0xee   : > { %v544_v51 = vadd.f32 %v543_v50, %v1932_v39 }
  0xef   : > { %v1513_v52 = vpop.f32.mrf.mxu0 }
  0xf0   : > { %v548_v54 = vmax.f32 %v544_v51, 0.0  ;;  %1505 = vmatmul.mubr.msk.bf16.vlgmr.msra.gmra.mxu1 %vm428_vm10, %v1939_v49 }
  0xf1   : > { %v659_v55 = vpop.f32.mrf.mxu0  ;;  %1516 = vmatprep.mubr.msk.bf16.mxu1 %vm428_vm10, %v1916_v21 }
  0xf2   : > { %v549_v56 = vpack.c.bf16 %v548_v54, %v547_v53  ;;  %v660_v58 = vadd.f32 %v659_v55, %v1929_v35 }
  0xf3   : > { %v1524_v57 = vpop.f32.mrf.mxu0 }
  0xf4   : > { %1514 = vmatprep.subr.bf16.mxu1 %v549_v56  ;;  %v666_v62 = vmax.f32 %v660_v58, 0.0 }
  0xf5   : > { %1515 = vmatpush3.bf16.msra.mxu1 %v549_v56  ;;  %v662_v59 = vpop.f32.mrf.mxu0 }
  0xf6   : > { %v663_v60 = vadd.f32 %v662_v59, %v1932_v39 }
  0xf7   : > { %v1525_v61 = vpop.f32.mrf.mxu0 }
  0xf8   : > { %v667_v63 = vmax.f32 %v663_v60, 0.0  ;;  %1517 = vmatmul.mubr.msk.bf16.vlgmr.msra.gmra.mxu1 %vm428_vm10, %v1939_v49  ;;  %v1984_v61 = vpop.permute.xlu1 %400 }
  0xf9   : > { %v778_v1 = vpop.f32.mrf.mxu0  ;;  %1528 = vmatprep.mubr.msk.bf16.mxu1 %vm428_vm10, %v1916_v21 }
  0xfa   : > { %v668_v2 = vpack.c.bf16 %v667_v63, %v666_v62  ;;  %v779_v5 = vadd.f32 %v778_v1, %v1929_v35 }
  0xfb   : > { %v1536_v4 = vpop.f32.mrf.mxu0 }
  0xfc   : > { %1526 = vmatprep.subr.bf16.mxu1 %v668_v2  ;;  %v785_v9 = vmax.f32 %v779_v5, 0.0  ;;  %v1988_v5 = vpop.permute.xlu0 %410 }
  0xfd   : > { %1527 = vmatpush3.bf16.msra.mxu1 %v668_v2  ;;  %v781_v6 = vpop.f32.mrf.mxu0 }
  0xfe   : > { %v782_v7 = vadd.f32 %v781_v6, %v1932_v39 }
  0xff   : > { %v1537_v8 = vpop.f32.mrf.mxu0 }
 0x100   : > { %v786_v12 = vmax.f32 %v782_v7, 0.0  ;;  %1529 = vmatmul.mubr.msk.bf16.vlgmr.msra.gmra.mxu1 %vm428_vm10, %v1939_v49 }
 0x101   : > { %v897_v14 = vpop.f32.mrf.mxu0  ;;  %1540 = vmatprep.mubr.msk.bf16.mxu1 %vm428_vm10, %v1916_v21 }
 0x102   : > { %v787_v10 = vpack.c.bf16 %v786_v12, %v785_v9  ;;  %v898_v13 = vadd.f32 %v897_v14, %v1929_v35 }
 0x103   : > { %v1548_v11 = vpop.f32.mrf.mxu0 }
 0x104   : > { %1538 = vmatprep.subr.bf16.mxu1 %v787_v10  ;;  %v904_v23 = vmax.f32 %v898_v13, 0.0 }
 0x105   : > { %1539 = vmatpush3.bf16.msra.mxu1 %v787_v10  ;;  %v900_v15 = vpop.f32.mrf.mxu0 }
 0x106   : > { %v901_v20 = vadd.f32 %v900_v15, %v1932_v39 }
 0x107   : > { %v1549_v22 = vpop.f32.mrf.mxu0 }
 0x108   : > { %v905_v16 = vmax.f32 %v901_v20, 0.0  ;;  %1541 = vmatmul.mubr.msk.bf16.vlgmr.msra.gmra.mxu1 %vm428_vm10, %v1939_v49 }
 0x109   : > { %v1016_v24 = vpop.f32.mrf.mxu0  ;;  %1552 = vmatprep.mubr.msk.bf16.mxu1 %vm428_vm10, %v1916_v21 }
 0x10a   : > { %v906_v25 = vpack.c.bf16 %v905_v16, %v904_v23  ;;  %v1017_v27 = vadd.f32 %v1016_v24, %v1929_v35 }
 0x10b   : > { %v1560_v26 = vpop.f32.mrf.mxu0 }
 0x10c   : > { %1550 = vmatprep.subr.bf16.mxu1 %v906_v25  ;;  %v1023_v18 = vmax.f32 %v1017_v27, 0.0 }
 0x10d   : > { %1551 = vmatpush3.bf16.msra.mxu1 %v906_v25  ;;  %v1019_v28 = vpop.f32.mrf.mxu0 }
 0x10e   : > { %v1020_v17 = vadd.f32 %v1019_v28, %v1932_v39 }
 0x10f   : > { %v1561_v29 = vpop.f32.mrf.mxu0 }
 0x110   : > { %v1024_v30 = vmax.f32 %v1020_v17, 0.0  ;;  %1553 = vmatmul.mubr.msk.bf16.vlgmr.msra.gmra.mxu1 %vm428_vm10, %v1939_v49 }
 0x111   : > { %v1135_v31 = vpop.f32.mrf.mxu0  ;;  %1564 = vmatprep.mubr.msk.bf16.mxu1 %vm428_vm10, %v1916_v21 }
 0x112   : > { %v1025_v32 = vpack.c.bf16 %v1024_v30, %v1023_v18  ;;  %v1136_v33 = vadd.f32 %v1135_v31, %v1929_v35 }
 0x113   : > { %v1572_v19 = vpop.f32.mrf.mxu0 }
 0x114   : > { %1562 = vmatprep.subr.bf16.mxu1 %v1025_v32  ;;  %v1142_v36 = vmax.f32 %v1136_v33, 0.0 }
 0x115   : > { %1563 = vmatpush3.bf16.msra.mxu1 %v1025_v32  ;;  %v1138_v34 = vpop.f32.mrf.mxu0 }
 0x116   : > { %v1139_v0 = vadd.f32 %v1138_v34, %v1932_v39 }
 0x117   : > { %v1573_v3 = vpop.f32.mrf.mxu0 }
 0x118   : > { %v1143_v37 = vmax.f32 %v1139_v0, 0.0  ;;  %1565 = vmatmul.mubr.msk.bf16.vlgmr.msra.gmra.mxu1 %vm428_vm10, %v1939_v49 }
 0x119   : > { %v1254_v38 = vpop.f32.mrf.mxu0  ;;  %1576 = vmatprep.mubr.msk.bf16.mxu1 %vm428_vm10, %v1916_v21 }
 0x11a   : > { %v1144_v40 = vpack.c.bf16 %v1143_v37, %v1142_v36  ;;  %v1255_v42 = vadd.f32 %v1254_v38, %v1929_v35 }
 0x11b   : > { %v1584_v41 = vpop.f32.mrf.mxu0 }
 0x11c   : > { %1574 = vmatprep.subr.bf16.mxu1 %v1144_v40  ;;  %v1261_v46 = vmax.f32 %v1255_v42, 0.0 }
 0x11d   : > { %1575 = vmatpush3.bf16.msra.mxu1 %v1144_v40  ;;  %v1257_v43 = vpop.f32.mrf.mxu0 }
 0x11e   : > { %v1258_v44 = vadd.f32 %v1257_v43, %v1932_v39 }
 0x11f   : > { %v1585_v45 = vpop.f32.mrf.mxu0 }
 0x120   : > { %v1262_v47 = vmax.f32 %v1258_v44, 0.0  ;;  %1577 = vmatmul.mubr.msk.bf16.vlgmr.msra.gmra.mxu1 %vm428_vm10, %v1939_v49 }
 0x121   : > { %1588 = vmatprep.mubr.msk.bf16.mxu1 %vm428_vm10, %v1916_v21 }
 0x122   : > { %v1263_v48 = vpack.c.bf16 %v1262_v47, %v1261_v46 }
 0x124   : > { %1586 = vmatprep.subr.bf16.mxu1 %v1263_v48 }
 0x125   : > { %1587 = vmatpush3.bf16.msra.mxu1 %v1263_v48 }
 0x128   : > { %1589 = vmatmul.mubr.msk.bf16.vlgmr.msra.gmra.mxu1 %vm428_vm10, %v1939_v49  ;;  %v1986_v49 = vpop.permute.xlu1 %405 }
 0x12c   : > { %v1991_v8 = vpop.permute.xlu1 %415 }
 0x1b0   : > { %v1506_v35 = vpop.f32.mrf.mxu1 }
 0x1b1   : > { %v478_v12 = vadd.f32 %v1506_v35, %v1988_v5 }
 0x1b2   : > { %v469_v50 = vpop.f32.mrf.mxu1 }
 0x1b3   : > { %v470_v15 = vadd.f32 %v469_v50, %v1984_v61  ;;  %v486_v27 = vmax.f32 %v478_v12, 0.0 }
 0x1b4   : > { %v1507_v51 = vpop.f32.mrf.mxu1 }
 0x1b5   : > { %v481_v23 = vadd.f32 %v1507_v51, %v1991_v8  ;;  %v484_v30 = vmax.f32 %v470_v15, 0.0 }
 0x1b6   : > { %v472_v52 = vpop.f32.mrf.mxu1 }
 0x1b7   : > { %v473_v20 = vadd.f32 %v472_v52, %v1986_v49  ;;  %v487_v0 = vmax.f32 %v481_v23, 0.0 }
 0x1b8   : > { %v1518_v39 = vpop.f32.mrf.mxu1 }
 0x1b9   : > { %v593_v6 = vadd.f32 %v1518_v39, %v1988_v5  ;;  %v485_v33 = vmax.f32 %v473_v20, 0.0 }
 0x1ba   : > { %v584_v53 = vpop.f32.mrf.mxu1 }
 0x1bb   : > { %v585_v9 = vadd.f32 %v584_v53, %v1984_v61  ;;  %v601_v22 = vmax.f32 %v593_v6, 0.0 }
 0x1bc   : > { %v1519_v54 = vpop.f32.mrf.mxu1 }
 0x1bd   : > { %v596_v14 = vadd.f32 %v1519_v54, %v1991_v8  ;;  %v599_v25 = vmax.f32 %v585_v9, 0.0  ;;  %v605_v34 = vmax.f32 %v486_v27, %v601_v22 }
 0x1be   : > { %v587_v55 = vpop.f32.mrf.mxu1 }
 0x1bf   : > { %v588_v10 = vadd.f32 %v587_v55, %v1986_v49  ;;  %v602_v28 = vmax.f32 %v596_v14, 0.0  ;;  %v603_v37 = vmax.f32 %v484_v30, %v599_v25 }
 0x1c0   : > { %v1530_v56 = vpop.f32.mrf.mxu1 }
 0x1c1   : > { %v712_v11 = vadd.f32 %v1530_v56, %v1988_v5  ;;  %v600_v17 = vmax.f32 %v588_v10, 0.0  ;;  %v606_v42 = vmax.f32 %v487_v0, %v602_v28 }
 0x1c2   : > { %v703_v57 = vpop.f32.mrf.mxu1 }
 0x1c3   : > { %v704_v16 = vadd.f32 %v703_v57, %v1984_v61  ;;  %v720_v29 = vmax.f32 %v712_v11, 0.0  ;;  %v604_v43 = vmax.f32 %v485_v33, %v600_v17 }
 0x1c4   : > { %v1531_v58 = vpop.f32.mrf.mxu1 }
 0x1c5   : > { %v715_v26 = vadd.f32 %v1531_v58, %v1991_v8  ;;  %v718_v3 = vmax.f32 %v704_v16, 0.0  ;;  %v724_v44 = vmax.f32 %v605_v34, %v720_v29 }
 0x1c6   : > { %v706_v59 = vpop.f32.mrf.mxu1 }
 0x1c7   : > { %v707_v31 = vadd.f32 %v706_v59, %v1986_v49  ;;  %v721_v38 = vmax.f32 %v715_v26, 0.0  ;;  %v722_v51 = vmax.f32 %v603_v37, %v718_v3 }
 0x1c8   : > { %v1542_v60 = vpop.f32.mrf.mxu1 }
 0x1c9   : > { %v831_v32 = vadd.f32 %v1542_v60, %v1988_v5  ;;  %v719_v47 = vmax.f32 %v707_v31, 0.0  ;;  %v725_v55 = vmax.f32 %v606_v42, %v721_v38 }
 0x1ca   : > { %v822_v21 = vpop.f32.mrf.mxu1 }
 0x1cb   : > { %v823_v19 = vadd.f32 %v822_v21, %v1984_v61  ;;  %v839_v48 = vmax.f32 %v831_v32, 0.0 }
 0x1cc   : > { %v1543_v62 = vpop.f32.mrf.mxu1 }
 0x1cd   : > { %v834_v40 = vadd.f32 %v1543_v62, %v1991_v8  ;;  %v837_v35 = vmax.f32 %v823_v19, 0.0 }
 0x1ce   : > { %v825_v63 = vpop.f32.mrf.mxu1 }
 0x1cf   : > { %v826_v52 = vadd.f32 %v825_v63, %v1986_v49  ;;  %v840_v56 = vmax.f32 %v834_v40, 0.0  ;;  %v843_v63 = vmax.f32 %v724_v44, %v839_v48  ;;  %v841_v6 = vmax.f32 %v722_v51, %v837_v35 }
 0x1d0   : > { %v1554_v1 = vpop.f32.mrf.mxu1 }
 0x1d1   : > { %v950_v41 = vadd.f32 %v1554_v1, %v1988_v5  ;;  %v838_v9 = vmax.f32 %v826_v52, 0.0 }
 0x1d2   : > { %v941_v2 = vpop.f32.mrf.mxu1 }
 0x1d3   : > { %v942_v45 = vadd.f32 %v941_v2, %v1984_v61  ;;  %v958_v57 = vmax.f32 %v950_v41, 0.0  ;;  %v723_v2 = vmax.f32 %v604_v43, %v719_v47 }
 0x1d4   : > { %v1555_v4 = vpop.f32.mrf.mxu1 }
 0x1d5   : > { %v953_v39 = vadd.f32 %v1555_v4, %v1991_v8  ;;  %v956_v59 = vmax.f32 %v942_v45, 0.0  ;;  %v962_v15 = vmax.f32 %v843_v63, %v958_v57  ;;  %v842_v17 = vmax.f32 %v723_v2, %v838_v9 }
 0x1d6   : > { %v944_v7 = vpop.f32.mrf.mxu1 }
 0x1d7   : > { %v945_v60 = vadd.f32 %v944_v7, %v1986_v49  ;;  %v959_v12 = vmax.f32 %v953_v39, 0.0  ;;  %v960_v22 = vmax.f32 %v841_v6, %v956_v59 }
 0x1d8   : > { %v1566_v13 = vpop.f32.mrf.mxu1 }
 0x1d9   : > { %v1069_v50 = vadd.f32 %v1566_v13, %v1988_v5  ;;  %v844_v13 = vmax.f32 %v725_v55, %v840_v56  ;;  %v957_v23 = vmax.f32 %v945_v60, 0.0 }
 0x1da   : > { %v1060_v24 = vpop.f32.mrf.mxu1 }
 0x1db   : > { %v1061_v53 = vadd.f32 %v1060_v24, %v1984_v61  ;;  %v1077_v4 = vmax.f32 %v1069_v50, 0.0  ;;  %v963_v29 = vmax.f32 %v844_v13, %v959_v12  ;;  %v961_v0 = vmax.f32 %v842_v17, %v957_v23 }
 0x1dc   : > { %v1567_v18 = vpop.f32.mrf.mxu1 }
 0x1dd   : > { %v1072_v21 = vadd.f32 %v1567_v18, %v1991_v8  ;;  %v1075_v14 = vmax.f32 %v1061_v53, 0.0  ;;  %v1081_v26 = vmax.f32 %v962_v15, %v1077_v4 }
 0x1de   : > { %v1063_v36 = vpop.f32.mrf.mxu1 }
 0x1df   : > { %v1064_v10 = vadd.f32 %v1063_v36, %v1986_v49  ;;  %v1078_v16 = vmax.f32 %v1072_v21, 0.0  ;;  %v1079_v18 = vmax.f32 %v960_v22, %v1075_v14 }
 0x1e0   : > { %v1578_v46 = vpop.f32.mrf.mxu1 }
 0x1e1   : > { %v1188_v58 = vadd.f32 %v1578_v46, %v1988_v5  ;;  %v1076_v30 = vmax.f32 %v1064_v10, 0.0  ;;  %v1082_v3 = vmax.f32 %v963_v29, %v1078_v16 }
 0x1e2   : > { %v1179_v54 = vpop.f32.mrf.mxu1 }
 0x1e3   : > { %v1180_v62 = vadd.f32 %v1179_v54, %v1984_v61  ;;  %v1196_v20 = vmax.f32 %v1188_v58, 0.0  ;;  %v1080_v42 = vmax.f32 %v961_v0, %v1076_v30 }
 0x1e4   : > { %v1579_v1 = vpop.f32.mrf.mxu1 }
 0x1e5   : > { %v1191_v7 = vadd.f32 %v1579_v1, %v1991_v8  ;;  %v1194_v24 = vmax.f32 %v1180_v62, 0.0  ;;  %v1200_v32 = vmax.f32 %v1081_v26, %v1196_v20 }
 0x1e6   : > { %v1182_v11 = vpop.f32.mrf.mxu1 }
 0x1e7   : > { %v1183_v27 = vadd.f32 %v1182_v11, %v1986_v49  ;;  %v1197_v19 = vmax.f32 %v1191_v7, 0.0  ;;  %v1198_v36 = vmax.f32 %v1079_v18, %v1194_v24 }
 0x1e8   : > { %v1590_v25 = vpop.f32.mrf.mxu1 }
 0x1e9   : > { %v1307_v28 = vadd.f32 %v1590_v25, %v1988_v5  ;;  %v1195_v5 = vmax.f32 %v1183_v27, 0.0  ;;  %v1201_v44 = vmax.f32 %v1082_v3, %v1197_v19 }
 0x1ea   : > { %v1298_v31 = vpop.f32.mrf.mxu1 }
 0x1eb   : > { %v1315_v33 = vmax.f32 %v1307_v28, 0.0  ;;  %v1299_v34 = vadd.f32 %v1298_v31, %v1984_v61  ;;  %v1199_v47 = vmax.f32 %v1080_v42, %v1195_v5 }
 0x1ec   : > { %v1591_v37 = vpop.f32.mrf.mxu1 }
 0x1ed   : > { %v1319_v38 = vmax.f32 %v1200_v32, %v1315_v33  ;;  %v1313_v40 = vmax.f32 %v1299_v34, 0.0  ;;  %v1310_v41 = vadd.f32 %v1591_v37, %v1991_v8 }
 0x1ee   : > { %v1301_v43 = vpop.f32.mrf.mxu1 }
 0x1ef   : > { %1323 = vst.msk [vmem:[%s255_s26 + $0x10] sm:$0xff] %vm338_vm9, %v1319_v38  ;;  %v1317_v61 = vmax.f32 %v1198_v36, %v1313_v40  ;;  %v1316_v45 = vmax.f32 %v1310_v41, 0.0  ;;  %v1302_v46 = vadd.f32 %v1301_v43, %v1986_v49 }
 0x1f1   : > { %1321 = vst.msk [vmem:[%s255_s26] sm:$0xff] %vm338_vm9, %v1317_v61  ;;  %v1320_v48 = vmax.f32 %v1201_v44, %v1316_v45  ;;  %v1314_v35 = vmax.f32 %v1302_v46, 0.0 }
 0x1f3   : > { %1324 = vst.msk [vmem:[%s255_s26 + $0x18] sm:$0xff] %vm338_vm9, %v1320_v48  ;;  %v1318_v50 = vmax.f32 %v1199_v47, %v1314_v35 }
 0x1f5   : > { %1322 = vst.msk [vmem:[%s255_s26 + $0x8] sm:$0xff] %vm338_vm9, %v1318_v50 }
 0x1f6 PF: > { %s15_s20 = sadd.s32 1, %s1654_s20   ;;  %s2048_s18 = smov %s1650_s19 }
 0x1f7   : > { %p12_p5 = scmp.ge.s32.totalorder %s15_s20, 4   ;;  %s2049_s19 = smov %s2051_s21 }
 0x1f9   :  { %14 = sbr.rel (!%p12_p5) target bundleno = 2 (0x2), region = 70 }

</bundles_post_ra>
